<compile_context>
chip_gen: v5e
topology: v5e:2x2
jax: 0.10.0
libtpu: 0.0.40
codegen_flags: <defaults>
</compile_context>

<pallas_src>
import numpy as np
import jax
import jax.numpy as jnp
from jax.experimental import pallas as pl
from jax.experimental.pallas import tpu as pltpu

GROUPS = 3      # GroupNorm groups == channel_shuffle groups
SE_RED = 3      # SeModule reduction
EPS = 1e-5
_PH = jax.lax.Precision.HIGHEST


def _act(v):
    # torch.where((x>=-3)&(x<=3), Hardswish(x), clamp(x,0,6) + 0.01*clamp(x,max=0))
    hsw = v * jnp.clip(v + 3.0, 0.0, 6.0) * (1.0 / 6.0)
    other = jnp.clip(v, 0.0, 6.0) + 0.01 * jnp.minimum(v, 0.0)
    return jnp.where((v >= -3.0) & (v <= 3.0), hsw, other)


# --------------------------- in-kernel building blocks ---------------------------
def _group_norm(y, M, gamma, beta, cpg, npix):
    """GroupNorm on a lane-dense (CP, npix) tile (channels already in shuffled order).

    Two lane reductions total; group combine + broadcast-back is one (CP,CP)x(CP,2)
    membership matmul.  Variance clamped >= 0 (single-pass formula can cancel)."""
    n = float(cpg * npix)
    s1 = jnp.sum(y, axis=1, keepdims=True)
    s2 = jnp.sum(y * y, axis=1, keepdims=True)
    gs = jnp.dot(M, jnp.concatenate([s1, s2], axis=1),
                 preferred_element_type=jnp.float32)            # (CP, 2) group sums
    mean = gs[:, 0:1] * (1.0 / n)
    var = jnp.maximum(gs[:, 1:2] * (1.0 / n) - mean * mean, 0.0)
    inv = jax.lax.rsqrt(var + EPS)
    return (y - mean) * (inv * gamma) + beta


def _block_tail(y, cfg, M, cpg, gamma, beta, wdw, bdw, wsse, fc1, fc2):
    """dilated_upsample_up after layer1: GN -> depthwise dilated ConvT -> act -> GN
    -> act -> scSE.  Operates on a lane-dense (CP, H*W) value, returns (CP, Ho*Wo).
    Channel order is the post-shuffle order (folded into params)."""
    H, W, k, d = cfg['H'], cfg['W'], cfg['k'], cfg['d']
    Ho, Wo = cfg['Ho'], cfg['Wo']
    HWo = Ho * Wo

    # ---- GroupNorm #1 ----
    y = _group_norm(y, M, gamma, beta, cpg, H * W)

    # ---- layer3: depthwise dilated ConvTranspose2d (stride 1, padding 0) ----
    # Each input pixel scatters to a k x k dilated stencil with its (unflipped)
    # per-channel tap.  Laying input rows at stride Wo makes every tap one lane
    # shift of the whole image: fully register resident, no scratch, no masked IO.
    Lw = (H - 1) * Wo + W
    pieces = []
    for h in range(H):
        row = y[:, h * W:(h + 1) * W]
        if h < H - 1:
            row = jnp.pad(row, ((0, 0), (0, Wo - W)))
        pieces.append(row)
    yw = jnp.concatenate(pieces, axis=1)                          # (CP, Lw)

    acc = None
    for a in range(k):
        for b in range(k):
            s = (d * a) * Wo + d * b
            term = jnp.pad(yw * wdw[:, a * k + b:a * k + b + 1],
                           ((0, 0), (s, HWo - Lw - s)))           # (CP, Ho*Wo)
            acc = term if acc is None else acc + term
    y2 = acc + bdw

    # ---- act -> GroupNorm #2 (shared affine, as in the module) -> act ----
    y2 = _act(y2)
    y2 = _group_norm(y2, M, gamma, beta, cpg, HWo)
    y2 = _act(y2)

    # ---- scSE = sSE(U) + SeModule(U) on the (already shuffled-order) tensor ----
    q = jax.nn.sigmoid(jnp.dot(wsse, y2, preferred_element_type=jnp.float32))  # (1,HWo)
    means = jnp.sum(y2, axis=1, keepdims=True) * (1.0 / float(HWo))            # (CP,1)
    hid = jnp.maximum(jnp.dot(fc1, means, preferred_element_type=jnp.float32), 0.0)
    z = jnp.clip((jnp.dot(fc2, hid, preferred_element_type=jnp.float32) + 3.0)
                 * (1.0 / 6.0), 0.0, 1.0)                                      # Hardsigmoid
    return y2 * (z + q)                                          # U_cse + U_sse


def _make_kernel(meta, cfgs, C2, CP, LW):
    cpg = C2 // GROUPS
    HWf = cfgs['d1']['Ho'] * cfgs['d1']['Wo']

    def kernel(x_ref, slab_ref, o_ref):
        def getp(name):
            o, r, c = meta[name]
            return slab_ref[o:o + r, :c]

        # Group membership in SHUFFLED channel order: group(c) = c % GROUPS.
        # Zero-padded channels get private groups so they never touch real stats.
        ri = jax.lax.broadcasted_iota(jnp.int32, (CP, CP), 0)
        ci = jax.lax.broadcasted_iota(jnp.int32, (CP, CP), 1)
        gi = jnp.where(ri < C2, ri % GROUPS, GROUPS + ri)
        gj = jnp.where(ci < C2, ci % GROUPS, GROUPS + ci)
        M = (gi == gj).astype(jnp.float32)

        xin = x_ref[0]                                           # (C_in, H*W)

        # fused layer1 (d1|d2|d3 stacked): one MXU dot, aligned 8-row branch slices
        yf = jnp.dot(getp('w1f'), xin,
                     preferred_element_type=jnp.float32) + getp('b1f')   # (3CP, HW)

        def tail(key, y):
            return _block_tail(y, cfgs[key], M, cpg,
                               getp(key + '_gam'), getp(key + '_bet'),
                               getp(key + '_wdw'), getp(key + '_bdw'),
                               getp(key + '_wsse'), getp(key + '_fc1'),
                               getp(key + '_fc2'))

        r1 = tail('d1', yf[0:CP])
        r2a = tail('d2', yf[CP:2 * CP])
        yrs = jnp.dot(getp('rs_w1'), r2a,
                      preferred_element_type=jnp.float32) + getp('rs_b1')
        r2 = tail('rs', yrs)
        r3 = tail('d3', yf[2 * CP:3 * CP])

        full = jnp.concatenate([r1, r2, r3], axis=0)             # (3CP, HWf)
        # single full, unmasked (3CP, 128)-aligned store == the channel concat
        o_ref[0] = jnp.pad(full, ((0, 0), (0, LW - HWf)))

    return kernel


# --------------------------------- wrapper ---------------------------------------
def _mkcfg(H, W, k, d):
    # ConvTranspose2d, stride=1, padding=0, dilation=d
    return dict(H=H, W=W, k=k, d=d, Ho=H + d * (k - 1), Wo=W + d * (k - 1))


def _pack_slab(entries):
    """Pack all small params into one (rows, maxcols) slab; 8-aligned row offsets."""
    maxc = max(int(a.shape[1]) for _, a in entries)
    pieces, meta, r = [], {}, 0
    for name, a in entries:
        rows, cols = int(a.shape[0]), int(a.shape[1])
        rpad = (-rows) % 8
        pieces.append(jnp.pad(a.astype(jnp.float32), ((0, rpad), (0, maxc - cols))))
        meta[name] = (r, rows, cols)
        r += rows + rpad
    return jnp.concatenate(pieces, axis=0), meta


def _prep_params(params, C2, CP):
    """channel_shuffle folded into the params: per-output-channel params permuted to
    shuffled order and zero-padded to CP channels; SE params stay natural."""
    cpg = C2 // GROUPS
    idx_src = np.array([(c % GROUPS) * cpg + c // GROUPS for c in range(C2)], np.int32)

    def col(a):                      # (C2,) -> (CP,1), shuffled order
        return jnp.pad(jnp.asarray(a, jnp.float32)[idx_src].reshape(C2, 1),
                       ((0, CP - C2), (0, 0)))

    def rows(a):                     # (C2, n) -> (CP, n), shuffled order
        return jnp.pad(jnp.asarray(a, jnp.float32)[idx_src], ((0, CP - C2), (0, 0)))

    entries = []
    entries.append(('w1f', jnp.concatenate(
        [rows(params[n]['w1']) for n in ('d1', 'd2', 'd3')], axis=0)))       # (3CP,C_in)
    entries.append(('b1f', jnp.concatenate(
        [col(params[n]['b1']) for n in ('d1', 'd2', 'd3')], axis=0)))        # (3CP,1)
    # resize consumes the (already shuffled, channel-padded) d2 output -> pad cols
    entries.append(('rs_w1', jnp.pad(rows(params['resize']['w1']),
                                     ((0, 0), (0, CP - C2)))))
    entries.append(('rs_b1', col(params['resize']['b1'])))

    for key, src in (('d1', 'd1'), ('d2', 'd2'), ('rs', 'resize'), ('d3', 'd3')):
        p = params[src]
        k = p['wdw'].shape[-1]
        entries.append((key + '_gam', col(p['gamma'])))
        entries.append((key + '_bet', col(p['beta'])))
        entries.append((key + '_wdw', rows(p['wdw'].reshape(C2, k * k))))    # unflipped
        entries.append((key + '_bdw', col(p['bdw'])))
        # SE acts on the shuffled tensor (== kernel channel order): natural order,
        # padded channels zeroed so they cannot leak into real channels.
        entries.append((key + '_wsse', jnp.pad(
            jnp.asarray(p['wsse'], jnp.float32).reshape(1, C2), ((0, 0), (0, CP - C2)))))
        entries.append((key + '_fc1', jnp.pad(
            jnp.asarray(p['fc1'], jnp.float32), ((0, 0), (0, CP - C2)))))
        entries.append((key + '_fc2', jnp.pad(
            jnp.asarray(p['fc2'], jnp.float32), ((0, CP - C2), (0, 0)))))
    return _pack_slab(entries)


def basic_block_upsample_up(x, params, k1, k2, k3):
    B, C_in, H, W = x.shape
    C2 = params['d1']['w1'].shape[0]
    assert C2 % GROUPS == 0 and C2 % SE_RED == 0
    CP = ((C2 + 7) // 8) * 8                     # channel pad -> aligned sublane tiles

    cfgs = dict(d1=_mkcfg(H, W, k1, 3), d2=_mkcfg(H, W, k2, 2), d3=_mkcfg(H, W, k3, 1))
    cfgs['rs'] = _mkcfg(cfgs['d2']['Ho'], cfgs['d2']['Wo'], 2, 1)
    Hf, Wf = cfgs['d1']['Ho'], cfgs['d1']['Wo']
    assert (cfgs['rs']['Ho'], cfgs['rs']['Wo']) == (Hf, Wf)
    assert (cfgs['d3']['Ho'], cfgs['d3']['Wo']) == (Hf, Wf)
    HWf = Hf * Wf
    LW = ((HWf + 127) // 128) * 128              # lane pad -> aligned 128-wide store

    slab, meta = _prep_params(params, C2, CP)    # ONE parameter DMA
    x_flat = x.reshape(B, C_in, H * W).astype(jnp.float32)

    kernel = _make_kernel(meta, cfgs, C2, CP, LW)
    out = pl.pallas_call(
        kernel,
        out_shape=jax.ShapeDtypeStruct((B, 3 * CP, LW), jnp.float32),
        grid_spec=pltpu.PrefetchScalarGridSpec(
            num_scalar_prefetch=0,
            grid=(B,),
            in_specs=[pl.BlockSpec((1, C_in, H * W), lambda b: (b, 0, 0)),
                      pl.BlockSpec(slab.shape, lambda b: (0, 0))],
            out_specs=pl.BlockSpec((1, 3 * CP, LW), lambda b: (b, 0, 0))),
        compiler_params=pltpu.CompilerParams(dimension_semantics=("parallel",)),
    )(x_flat, slab)

    # strip the alignment padding (channels already in final / shuffled order)
    out = out[:, :, :HWf].reshape(B, 3, CP, HWf)[:, :, :C2]
    return out.reshape(B, 3 * C2, Hf, Wf)


def init_block_params(key, C_in, C_out, k):
    ks = jax.random.split(key, 7)
    return dict(
        w1=0.25 * jax.random.normal(ks[0], (C_out, C_in), jnp.float32),
        b1=0.05 * jax.random.normal(ks[1], (C_out,), jnp.float32),
        gamma=jnp.ones((C_out,), jnp.float32),   # GroupNorm default affine init
        beta=jnp.zeros((C_out,), jnp.float32),
        wdw=0.25 * jax.random.normal(ks[2], (C_out, k, k), jnp.float32),
        bdw=0.05 * jax.random.normal(ks[3], (C_out,), jnp.float32),
        wsse=0.25 * jax.random.normal(ks[4], (C_out,), jnp.float32),
        fc1=0.4 * jax.random.normal(ks[5], (C_out // SE_RED, C_out), jnp.float32),
        fc2=0.4 * jax.random.normal(ks[6], (C_out, C_out // SE_RED), jnp.float32),
    )


# ----------------------- pure-JAX reference (for checking) -----------------------
def _ref_groupnorm(y, gamma, beta):
    B, C, H, W = y.shape
    g = y.reshape(B, GROUPS, C // GROUPS, H, W)
    m = g.mean(axis=(2, 3, 4), keepdims=True)
    v = ((g - m) ** 2).mean(axis=(2, 3, 4), keepdims=True)
    g = (g - m) * jax.lax.rsqrt(v + EPS)
    return g.reshape(B, C, H, W) * gamma[None, :, None, None] + beta[None, :, None, None]


def _ref_block(x, prm, k, d):
    C_out = prm['w1'].shape[0]
    y = jnp.einsum('bihw,oi->bohw', x, prm['w1'], precision=_PH) + prm['b1'][None, :, None, None]
    y = _ref_groupnorm(y, prm['gamma'], prm['beta'])
    pp = d * (k - 1)
    wflip = prm['wdw'][:, ::-1, ::-1][:, None]
    y = jax.lax.conv_general_dilated(
        y, wflip, window_strides=(1, 1), padding=[(pp, pp), (pp, pp)],
        rhs_dilation=(d, d), dimension_numbers=('NCHW', 'OIHW', 'NCHW'),
        feature_group_count=C_out, precision=_PH) + prm['bdw'][None, :, None, None]
    y = _act(y)
    y = _ref_groupnorm(y, prm['gamma'], prm['beta'])
    y = _act(y)
    B, C, H, W = y.shape
    y = y.reshape(B, GROUPS, C // GROUPS, H, W).transpose(0, 2, 1, 3, 4).reshape(B, C, H, W)
    q = jax.nn.sigmoid(jnp.einsum('bchw,c->bhw', y, prm['wsse'], precision=_PH))[:, None]
    ym = jnp.mean(y, axis=(2, 3))
    h = jnp.maximum(jnp.einsum('bc,rc->br', ym, prm['fc1'], precision=_PH), 0.0)
    z = jnp.clip((jnp.einsum('br,cr->bc', h, prm['fc2'], precision=_PH) + 3.0) / 6.0, 0.0, 1.0)
    return y * z[:, :, None, None] + y * q


def _ref_forward(x, params, k1, k2, k3):
    x1 = _ref_block(x, params['d1'], k1, 3)
    x2 = _ref_block(_ref_block(x, params['d2'], k2, 2), params['resize'], 2, 1)
    x3 = _ref_block(x, params['d3'], k3, 1)
    return jnp.concatenate([x1, x2, x3], axis=1)


if __name__ == "__main__":
    key = jax.random.PRNGKey(0)
    kx, kp = jax.random.split(key)
    # small config (strides 1, paddings 0) chosen so the three branches concat cleanly
    B, c1, c2 = 2, 6, 6
    H = W = 8
    k1, k2, k3 = 2, 2, 4
    x = jax.random.normal(kx, (B, c1, H, W), jnp.float32)

    kd1, kd2, kd3, kr = jax.random.split(kp, 4)
    params = dict(
        d1=init_block_params(kd1, c1, c2, k1),
        d2=init_block_params(kd2, c1, c2, k2),
        d3=init_block_params(kd3, c1, c2, k3),
        resize=init_block_params(kr, c2, c2, 2),
    )

    out = basic_block_upsample_up(x, params, k1, k2, k3)
    out = jax.block_until_ready(out)
    assert out.shape == (B, 3 * c2, H + 3, W + 3), out.shape

    ref = _ref_forward(x, params, k1, k2, k3)
    err = float(jnp.max(jnp.abs(out - ref)))
    assert err < 2e-2, f"max abs err {err}"
    print("KERNEL_OK")
</pallas_src>

<mosaic_0001>
module attributes {stable_mosaic.version = 11 : i64} {
  func.func @kernel(%arg0: i32, %arg1: memref<1x6x64xf32, #tpu.memory_space<vmem>>, %arg2: memref<288x16xf32, #tpu.memory_space<vmem>>, %arg3: memref<1x24x128xf32, #tpu.memory_space<vmem>>) attributes {dimension_semantics = [#tpu.dimension_semantics<parallel>], iteration_bounds = array<i64: 2>, scalar_prefetch = 0 : i64, scratch_operands = 0 : i64, tpu.core_type = #tpu.core_type<tc>, window_params = [{transform_indices = @transform_0, window_bounds = array<i64: 1, 6, 64>}, {pipeline_mode = #tpu.pipeline_mode<synchronous>, transform_indices = @transform_1, window_bounds = array<i64: 288, 16>}, {transform_indices = @transform_2, window_bounds = array<i64: 1, 24, 128>}]} {
    %0 = tpu.iota {dimensions = array<i32: 0>} : vector<8x8xi32>
    %1 = tpu.iota {dimensions = array<i32: 1>} : vector<8x8xi32>
    %c6_i32 = arith.constant 6 : i32
    %2 = vector.broadcast %c6_i32 : i32 to vector<8x8xi32>
    %3 = arith.cmpi slt, %0, %2 : vector<8x8xi32>
    %c3_i32 = arith.constant 3 : i32
    %c0_i32 = arith.constant 0 : i32
    %4 = arith.cmpi eq, %c3_i32, %c0_i32 : i32
    %c1_i32 = arith.constant 1 : i32
    %5 = arith.select %4, %c1_i32, %c3_i32 : i32
    %6 = vector.broadcast %5 : i32 to vector<8x8xi32>
    %7 = arith.remsi %0, %6 : vector<8x8xi32>
    %c0_i32_0 = arith.constant 0 : i32
    %8 = vector.broadcast %c0_i32_0 : i32 to vector<8x8xi32>
    %9 = arith.cmpi ne, %7, %8 : vector<8x8xi32>
    %c0_i32_1 = arith.constant 0 : i32
    %10 = vector.broadcast %c0_i32_1 : i32 to vector<8x8xi32>
    %11 = arith.cmpi slt, %7, %10 : vector<8x8xi32>
    %c0_i32_2 = arith.constant 0 : i32
    %12 = arith.cmpi slt, %5, %c0_i32_2 : i32
    %13 = vector.broadcast %12 : i1 to vector<8x8xi1>
    %14 = vector.broadcast %13 : vector<8x8xi1> to vector<8x8xi1>
    %15 = arith.xori %11, %14 : vector<8x8xi1>
    %16 = arith.andi %15, %9 : vector<8x8xi1>
    %17 = vector.broadcast %5 : i32 to vector<8x8xi32>
    %18 = arith.addi %7, %17 : vector<8x8xi32>
    %19 = arith.select %16, %18, %7 : vector<8x8xi1>, vector<8x8xi32>
    %c3_i32_3 = arith.constant 3 : i32
    %20 = vector.broadcast %c3_i32_3 : i32 to vector<8x8xi32>
    %21 = arith.addi %20, %0 : vector<8x8xi32>
    %22 = arith.select %3, %19, %21 : vector<8x8xi1>, vector<8x8xi32>
    %c6_i32_4 = arith.constant 6 : i32
    %23 = vector.broadcast %c6_i32_4 : i32 to vector<8x8xi32>
    %24 = arith.cmpi slt, %1, %23 : vector<8x8xi32>
    %c3_i32_5 = arith.constant 3 : i32
    %c0_i32_6 = arith.constant 0 : i32
    %25 = arith.cmpi eq, %c3_i32_5, %c0_i32_6 : i32
    %c1_i32_7 = arith.constant 1 : i32
    %26 = arith.select %25, %c1_i32_7, %c3_i32_5 : i32
    %27 = vector.broadcast %26 : i32 to vector<8x8xi32>
    %28 = arith.remsi %1, %27 : vector<8x8xi32>
    %c0_i32_8 = arith.constant 0 : i32
    %29 = vector.broadcast %c0_i32_8 : i32 to vector<8x8xi32>
    %30 = arith.cmpi ne, %28, %29 : vector<8x8xi32>
    %c0_i32_9 = arith.constant 0 : i32
    %31 = vector.broadcast %c0_i32_9 : i32 to vector<8x8xi32>
    %32 = arith.cmpi slt, %28, %31 : vector<8x8xi32>
    %c0_i32_10 = arith.constant 0 : i32
    %33 = arith.cmpi slt, %26, %c0_i32_10 : i32
    %34 = vector.broadcast %33 : i1 to vector<8x8xi1>
    %35 = vector.broadcast %34 : vector<8x8xi1> to vector<8x8xi1>
    %36 = arith.xori %32, %35 : vector<8x8xi1>
    %37 = arith.andi %36, %30 : vector<8x8xi1>
    %38 = vector.broadcast %26 : i32 to vector<8x8xi32>
    %39 = arith.addi %28, %38 : vector<8x8xi32>
    %40 = arith.select %37, %39, %28 : vector<8x8xi1>, vector<8x8xi32>
    %c3_i32_11 = arith.constant 3 : i32
    %41 = vector.broadcast %c3_i32_11 : i32 to vector<8x8xi32>
    %42 = arith.addi %41, %1 : vector<8x8xi32>
    %43 = arith.select %24, %40, %42 : vector<8x8xi1>, vector<8x8xi32>
    %44 = arith.cmpi eq, %22, %43 : vector<8x8xi32>
    %45 = arith.extui %44 : vector<8x8xi1> to vector<8x8xi32>
    %46 = arith.sitofp %45 : vector<8x8xi32> to vector<8x8xf32>
    %c0 = arith.constant 0 : index
    %c0_12 = arith.constant 0 : index
    %c0_13 = arith.constant 0 : index
    %47 = vector.load %arg1[%c0, %c0_12, %c0_13] : memref<1x6x64xf32, #tpu.memory_space<vmem>>, vector<1x6x64xf32>
    %48 = vector.shape_cast %47 : vector<1x6x64xf32> to vector<6x64xf32>
    %c0_14 = arith.constant 0 : index
    %c0_15 = arith.constant 0 : index
    %49 = vector.load %arg2[%c0_14, %c0_15] : memref<288x16xf32, #tpu.memory_space<vmem>>, vector<24x6xf32>
    %cst = arith.constant dense<0.000000e+00> : vector<24x64xf32>
    %50 = tpu.matmul %49, %48, %cst {dimension_numbers = #tpu.dot_dimension_numbers<[1], [0], [0], [1], [0, 0, 1, 1], [], []>} : vector<24x6xf32>, vector<6x64xf32>, vector<24x64xf32> -> vector<24x64xf32>
    %c24 = arith.constant 24 : index
    %c0_16 = arith.constant 0 : index
    %51 = vector.load %arg2[%c24, %c0_16] : memref<288x16xf32, #tpu.memory_space<vmem>>, vector<24x1xf32>
    %52 = vector.broadcast %51 : vector<24x1xf32> to vector<24x64xf32>
    %53 = arith.addf %50, %52 : vector<24x64xf32>
    %54 = vector.extract_strided_slice %53 {offsets = [0, 0], sizes = [8, 64], strides = [1, 1]} : vector<24x64xf32> to vector<8x64xf32>
    %c64 = arith.constant 64 : index
    %c0_17 = arith.constant 0 : index
    %55 = vector.load %arg2[%c64, %c0_17] : memref<288x16xf32, #tpu.memory_space<vmem>>, vector<8x1xf32>
    %c72 = arith.constant 72 : index
    %c0_18 = arith.constant 0 : index
    %56 = vector.load %arg2[%c72, %c0_18] : memref<288x16xf32, #tpu.memory_space<vmem>>, vector<8x1xf32>
    %c80 = arith.constant 80 : index
    %c0_19 = arith.constant 0 : index
    %57 = vector.load %arg2[%c80, %c0_19] : memref<288x16xf32, #tpu.memory_space<vmem>>, vector<8x4xf32>
    %c88 = arith.constant 88 : index
    %c0_20 = arith.constant 0 : index
    %58 = vector.load %arg2[%c88, %c0_20] : memref<288x16xf32, #tpu.memory_space<vmem>>, vector<8x1xf32>
    %c96 = arith.constant 96 : index
    %c0_21 = arith.constant 0 : index
    %59 = vector.load %arg2[%c96, %c0_21] : memref<288x16xf32, #tpu.memory_space<vmem>>, vector<1x8xf32>
    %c104 = arith.constant 104 : index
    %c0_22 = arith.constant 0 : index
    %60 = vector.load %arg2[%c104, %c0_22] : memref<288x16xf32, #tpu.memory_space<vmem>>, vector<2x8xf32>
    %c112 = arith.constant 112 : index
    %c0_23 = arith.constant 0 : index
    %61 = vector.load %arg2[%c112, %c0_23] : memref<288x16xf32, #tpu.memory_space<vmem>>, vector<8x2xf32>
    %cst_24 = arith.constant dense<0.000000e+00> : vector<8xf32>
    %62 = vector.multi_reduction <add>, %54, %cst_24 [1] : vector<8x64xf32> to vector<8xf32>
    %63 = vector.shape_cast %62 : vector<8xf32> to vector<8x1xf32>
    %64 = arith.mulf %54, %54 : vector<8x64xf32>
    %cst_25 = arith.constant dense<0.000000e+00> : vector<8xf32>
    %65 = vector.multi_reduction <add>, %64, %cst_25 [1] : vector<8x64xf32> to vector<8xf32>
    %66 = vector.shape_cast %65 : vector<8xf32> to vector<8x1xf32>
    %67 = tpu.concatenate %63, %66 in 1 : vector<8x1xf32>, vector<8x1xf32> -> vector<8x2xf32>
    %cst_26 = arith.constant dense<0.000000e+00> : vector<8x2xf32>
    %68 = tpu.matmul %46, %67, %cst_26 {dimension_numbers = #tpu.dot_dimension_numbers<[1], [0], [0], [1], [0, 0, 1, 1], [], []>} : vector<8x8xf32>, vector<8x2xf32>, vector<8x2xf32> -> vector<8x2xf32>
    %69 = vector.extract_strided_slice %68 {offsets = [0, 0], sizes = [8, 1], strides = [1, 1]} : vector<8x2xf32> to vector<8x1xf32>
    %cst_27 = arith.constant 7.812500e-03 : f32
    %70 = vector.broadcast %cst_27 : f32 to vector<8x1xf32>
    %71 = arith.mulf %69, %70 : vector<8x1xf32>
    %72 = vector.extract_strided_slice %68 {offsets = [0, 1], sizes = [8, 1], strides = [1, 1]} : vector<8x2xf32> to vector<8x1xf32>
    %cst_28 = arith.constant 7.812500e-03 : f32
    %73 = vector.broadcast %cst_28 : f32 to vector<8x1xf32>
    %74 = arith.mulf %72, %73 : vector<8x1xf32>
    %75 = arith.mulf %71, %71 : vector<8x1xf32>
    %76 = arith.subf %74, %75 : vector<8x1xf32>
    %cst_29 = arith.constant 0.000000e+00 : f32
    %77 = vector.broadcast %cst_29 : f32 to vector<8x1xf32>
    %78 = arith.maximumf %76, %77 : vector<8x1xf32>
    %cst_30 = arith.constant 9.99999974E-6 : f32
    %79 = vector.broadcast %cst_30 : f32 to vector<8x1xf32>
    %80 = arith.addf %78, %79 : vector<8x1xf32>
    %81 = math.rsqrt %80 : vector<8x1xf32>
    %82 = vector.broadcast %71 : vector<8x1xf32> to vector<8x64xf32>
    %83 = arith.subf %54, %82 : vector<8x64xf32>
    %84 = arith.mulf %81, %55 : vector<8x1xf32>
    %85 = vector.broadcast %84 : vector<8x1xf32> to vector<8x64xf32>
    %86 = arith.mulf %83, %85 : vector<8x64xf32>
    %87 = vector.broadcast %56 : vector<8x1xf32> to vector<8x64xf32>
    %88 = arith.addf %86, %87 : vector<8x64xf32>
    %89 = vector.extract_strided_slice %88 {offsets = [0, 0], sizes = [8, 8], strides = [1, 1]} : vector<8x64xf32> to vector<8x8xf32>
    %c0_i32_31 = arith.constant 0 : i32
    %90 = arith.sitofp %c0_i32_31 : i32 to f32
    %91 = vector.broadcast %90 : f32 to vector<8x3xf32>
    %92 = tpu.concatenate %89, %91 in 1 : vector<8x8xf32>, vector<8x3xf32> -> vector<8x11xf32>
    %93 = vector.extract_strided_slice %88 {offsets = [0, 8], sizes = [8, 8], strides = [1, 1]} : vector<8x64xf32> to vector<8x8xf32>
    %c0_i32_32 = arith.constant 0 : i32
    %94 = arith.sitofp %c0_i32_32 : i32 to f32
    %95 = vector.broadcast %94 : f32 to vector<8x3xf32>
    %96 = tpu.concatenate %93, %95 in 1 : vector<8x8xf32>, vector<8x3xf32> -> vector<8x11xf32>
    %97 = vector.extract_strided_slice %88 {offsets = [0, 16], sizes = [8, 8], strides = [1, 1]} : vector<8x64xf32> to vector<8x8xf32>
    %c0_i32_33 = arith.constant 0 : i32
    %98 = arith.sitofp %c0_i32_33 : i32 to f32
    %99 = vector.broadcast %98 : f32 to vector<8x3xf32>
    %100 = tpu.concatenate %97, %99 in 1 : vector<8x8xf32>, vector<8x3xf32> -> vector<8x11xf32>
    %101 = vector.extract_strided_slice %88 {offsets = [0, 24], sizes = [8, 8], strides = [1, 1]} : vector<8x64xf32> to vector<8x8xf32>
    %c0_i32_34 = arith.constant 0 : i32
    %102 = arith.sitofp %c0_i32_34 : i32 to f32
    %103 = vector.broadcast %102 : f32 to vector<8x3xf32>
    %104 = tpu.concatenate %101, %103 in 1 : vector<8x8xf32>, vector<8x3xf32> -> vector<8x11xf32>
    %105 = vector.extract_strided_slice %88 {offsets = [0, 32], sizes = [8, 8], strides = [1, 1]} : vector<8x64xf32> to vector<8x8xf32>
    %c0_i32_35 = arith.constant 0 : i32
    %106 = arith.sitofp %c0_i32_35 : i32 to f32
    %107 = vector.broadcast %106 : f32 to vector<8x3xf32>
    %108 = tpu.concatenate %105, %107 in 1 : vector<8x8xf32>, vector<8x3xf32> -> vector<8x11xf32>
    %109 = vector.extract_strided_slice %88 {offsets = [0, 40], sizes = [8, 8], strides = [1, 1]} : vector<8x64xf32> to vector<8x8xf32>
    %c0_i32_36 = arith.constant 0 : i32
    %110 = arith.sitofp %c0_i32_36 : i32 to f32
    %111 = vector.broadcast %110 : f32 to vector<8x3xf32>
    %112 = tpu.concatenate %109, %111 in 1 : vector<8x8xf32>, vector<8x3xf32> -> vector<8x11xf32>
    %113 = vector.extract_strided_slice %88 {offsets = [0, 48], sizes = [8, 8], strides = [1, 1]} : vector<8x64xf32> to vector<8x8xf32>
    %c0_i32_37 = arith.constant 0 : i32
    %114 = arith.sitofp %c0_i32_37 : i32 to f32
    %115 = vector.broadcast %114 : f32 to vector<8x3xf32>
    %116 = tpu.concatenate %113, %115 in 1 : vector<8x8xf32>, vector<8x3xf32> -> vector<8x11xf32>
    %117 = vector.extract_strided_slice %88 {offsets = [0, 56], sizes = [8, 8], strides = [1, 1]} : vector<8x64xf32> to vector<8x8xf32>
    %118 = tpu.concatenate %92, %96, %100, %104, %108, %112, %116, %117 in 1 : vector<8x11xf32>, vector<8x11xf32>, vector<8x11xf32>, vector<8x11xf32>, vector<8x11xf32>, vector<8x11xf32>, vector<8x11xf32>, vector<8x8xf32> -> vector<8x85xf32>
    %119 = vector.extract_strided_slice %57 {offsets = [0, 0], sizes = [8, 1], strides = [1, 1]} : vector<8x4xf32> to vector<8x1xf32>
    %120 = vector.broadcast %119 : vector<8x1xf32> to vector<8x85xf32>
    %121 = arith.mulf %118, %120 : vector<8x85xf32>
    %c0_i32_38 = arith.constant 0 : i32
    %122 = arith.sitofp %c0_i32_38 : i32 to f32
    %123 = vector.broadcast %122 : f32 to vector<8x36xf32>
    %124 = tpu.concatenate %121, %123 in 1 : vector<8x85xf32>, vector<8x36xf32> -> vector<8x121xf32>
    %125 = vector.extract_strided_slice %57 {offsets = [0, 1], sizes = [8, 1], strides = [1, 1]} : vector<8x4xf32> to vector<8x1xf32>
    %126 = vector.broadcast %125 : vector<8x1xf32> to vector<8x85xf32>
    %127 = arith.mulf %118, %126 : vector<8x85xf32>
    %c0_i32_39 = arith.constant 0 : i32
    %128 = arith.sitofp %c0_i32_39 : i32 to f32
    %129 = vector.broadcast %128 : f32 to vector<8x3xf32>
    %130 = tpu.concatenate %129, %127 in 1 : vector<8x3xf32>, vector<8x85xf32> -> vector<8x88xf32>
    %131 = vector.broadcast %128 : f32 to vector<8x33xf32>
    %132 = tpu.concatenate %130, %131 in 1 : vector<8x88xf32>, vector<8x33xf32> -> vector<8x121xf32>
    %133 = arith.addf %124, %132 : vector<8x121xf32>
    %134 = vector.extract_strided_slice %57 {offsets = [0, 2], sizes = [8, 1], strides = [1, 1]} : vector<8x4xf32> to vector<8x1xf32>
    %135 = vector.broadcast %134 : vector<8x1xf32> to vector<8x85xf32>
    %136 = arith.mulf %118, %135 : vector<8x85xf32>
    %c0_i32_40 = arith.constant 0 : i32
    %137 = arith.sitofp %c0_i32_40 : i32 to f32
    %138 = vector.broadcast %137 : f32 to vector<8x33xf32>
    %139 = tpu.concatenate %138, %136 in 1 : vector<8x33xf32>, vector<8x85xf32> -> vector<8x118xf32>
    %140 = vector.broadcast %137 : f32 to vector<8x3xf32>
    %141 = tpu.concatenate %139, %140 in 1 : vector<8x118xf32>, vector<8x3xf32> -> vector<8x121xf32>
    %142 = arith.addf %133, %141 : vector<8x121xf32>
    %143 = vector.extract_strided_slice %57 {offsets = [0, 3], sizes = [8, 1], strides = [1, 1]} : vector<8x4xf32> to vector<8x1xf32>
    %144 = vector.broadcast %143 : vector<8x1xf32> to vector<8x85xf32>
    %145 = arith.mulf %118, %144 : vector<8x85xf32>
    %c0_i32_41 = arith.constant 0 : i32
    %146 = arith.sitofp %c0_i32_41 : i32 to f32
    %147 = vector.broadcast %146 : f32 to vector<8x36xf32>
    %148 = tpu.concatenate %147, %145 in 1 : vector<8x36xf32>, vector<8x85xf32> -> vector<8x121xf32>
    %149 = arith.addf %142, %148 : vector<8x121xf32>
    %150 = vector.broadcast %58 : vector<8x1xf32> to vector<8x121xf32>
    %151 = arith.addf %149, %150 : vector<8x121xf32>
    %cst_42 = arith.constant 3.000000e+00 : f32
    %152 = vector.broadcast %cst_42 : f32 to vector<8x121xf32>
    %153 = arith.addf %151, %152 : vector<8x121xf32>
    %cst_43 = arith.constant 0.000000e+00 : f32
    %cst_44 = arith.constant 6.000000e+00 : f32
    %154 = vector.broadcast %cst_43 : f32 to vector<8x121xf32>
    %155 = arith.maximumf %154, %153 : vector<8x121xf32>
    %156 = vector.broadcast %cst_44 : f32 to vector<8x121xf32>
    %157 = arith.minimumf %156, %155 : vector<8x121xf32>
    %158 = arith.mulf %151, %157 : vector<8x121xf32>
    %cst_45 = arith.constant 0.166666672 : f32
    %159 = vector.broadcast %cst_45 : f32 to vector<8x121xf32>
    %160 = arith.mulf %158, %159 : vector<8x121xf32>
    %cst_46 = arith.constant 0.000000e+00 : f32
    %cst_47 = arith.constant 6.000000e+00 : f32
    %161 = vector.broadcast %cst_46 : f32 to vector<8x121xf32>
    %162 = arith.maximumf %161, %151 : vector<8x121xf32>
    %163 = vector.broadcast %cst_47 : f32 to vector<8x121xf32>
    %164 = arith.minimumf %163, %162 : vector<8x121xf32>
    %cst_48 = arith.constant 0.000000e+00 : f32
    %165 = vector.broadcast %cst_48 : f32 to vector<8x121xf32>
    %166 = arith.minimumf %151, %165 : vector<8x121xf32>
    %cst_49 = arith.constant 0.00999999977 : f32
    %167 = vector.broadcast %cst_49 : f32 to vector<8x121xf32>
    %168 = arith.mulf %167, %166 : vector<8x121xf32>
    %169 = arith.addf %164, %168 : vector<8x121xf32>
    %cst_50 = arith.constant -3.000000e+00 : f32
    %170 = vector.broadcast %cst_50 : f32 to vector<8x121xf32>
    %171 = arith.cmpf oge, %151, %170 : vector<8x121xf32>
    %cst_51 = arith.constant 3.000000e+00 : f32
    %172 = vector.broadcast %cst_51 : f32 to vector<8x121xf32>
    %173 = arith.cmpf ole, %151, %172 : vector<8x121xf32>
    %174 = arith.andi %171, %173 : vector<8x121xi1>
    %175 = arith.select %174, %160, %169 : vector<8x121xi1>, vector<8x121xf32>
    %cst_52 = arith.constant dense<0.000000e+00> : vector<8xf32>
    %176 = vector.multi_reduction <add>, %175, %cst_52 [1] : vector<8x121xf32> to vector<8xf32>
    %177 = vector.shape_cast %176 : vector<8xf32> to vector<8x1xf32>
    %178 = arith.mulf %175, %175 : vector<8x121xf32>
    %cst_53 = arith.constant dense<0.000000e+00> : vector<8xf32>
    %179 = vector.multi_reduction <add>, %178, %cst_53 [1] : vector<8x121xf32> to vector<8xf32>
    %180 = vector.shape_cast %179 : vector<8xf32> to vector<8x1xf32>
    %181 = tpu.concatenate %177, %180 in 1 : vector<8x1xf32>, vector<8x1xf32> -> vector<8x2xf32>
    %cst_54 = arith.constant dense<0.000000e+00> : vector<8x2xf32>
    %182 = tpu.matmul %46, %181, %cst_54 {dimension_numbers = #tpu.dot_dimension_numbers<[1], [0], [0], [1], [0, 0, 1, 1], [], []>} : vector<8x8xf32>, vector<8x2xf32>, vector<8x2xf32> -> vector<8x2xf32>
    %183 = vector.extract_strided_slice %182 {offsets = [0, 0], sizes = [8, 1], strides = [1, 1]} : vector<8x2xf32> to vector<8x1xf32>
    %cst_55 = arith.constant 0.00413223123 : f32
    %184 = vector.broadcast %cst_55 : f32 to vector<8x1xf32>
    %185 = arith.mulf %183, %184 : vector<8x1xf32>
    %186 = vector.extract_strided_slice %182 {offsets = [0, 1], sizes = [8, 1], strides = [1, 1]} : vector<8x2xf32> to vector<8x1xf32>
    %cst_56 = arith.constant 0.00413223123 : f32
    %187 = vector.broadcast %cst_56 : f32 to vector<8x1xf32>
    %188 = arith.mulf %186, %187 : vector<8x1xf32>
    %189 = arith.mulf %185, %185 : vector<8x1xf32>
    %190 = arith.subf %188, %189 : vector<8x1xf32>
    %cst_57 = arith.constant 0.000000e+00 : f32
    %191 = vector.broadcast %cst_57 : f32 to vector<8x1xf32>
    %192 = arith.maximumf %190, %191 : vector<8x1xf32>
    %cst_58 = arith.constant 9.99999974E-6 : f32
    %193 = vector.broadcast %cst_58 : f32 to vector<8x1xf32>
    %194 = arith.addf %192, %193 : vector<8x1xf32>
    %195 = math.rsqrt %194 : vector<8x1xf32>
    %196 = vector.broadcast %185 : vector<8x1xf32> to vector<8x121xf32>
    %197 = arith.subf %175, %196 : vector<8x121xf32>
    %198 = arith.mulf %195, %55 : vector<8x1xf32>
    %199 = vector.broadcast %198 : vector<8x1xf32> to vector<8x121xf32>
    %200 = arith.mulf %197, %199 : vector<8x121xf32>
    %201 = vector.broadcast %56 : vector<8x1xf32> to vector<8x121xf32>
    %202 = arith.addf %200, %201 : vector<8x121xf32>
    %cst_59 = arith.constant 3.000000e+00 : f32
    %203 = vector.broadcast %cst_59 : f32 to vector<8x121xf32>
    %204 = arith.addf %202, %203 : vector<8x121xf32>
    %cst_60 = arith.constant 0.000000e+00 : f32
    %cst_61 = arith.constant 6.000000e+00 : f32
    %205 = vector.broadcast %cst_60 : f32 to vector<8x121xf32>
    %206 = arith.maximumf %205, %204 : vector<8x121xf32>
    %207 = vector.broadcast %cst_61 : f32 to vector<8x121xf32>
    %208 = arith.minimumf %207, %206 : vector<8x121xf32>
    %209 = arith.mulf %202, %208 : vector<8x121xf32>
    %cst_62 = arith.constant 0.166666672 : f32
    %210 = vector.broadcast %cst_62 : f32 to vector<8x121xf32>
    %211 = arith.mulf %209, %210 : vector<8x121xf32>
    %cst_63 = arith.constant 0.000000e+00 : f32
    %cst_64 = arith.constant 6.000000e+00 : f32
    %212 = vector.broadcast %cst_63 : f32 to vector<8x121xf32>
    %213 = arith.maximumf %212, %202 : vector<8x121xf32>
    %214 = vector.broadcast %cst_64 : f32 to vector<8x121xf32>
    %215 = arith.minimumf %214, %213 : vector<8x121xf32>
    %cst_65 = arith.constant 0.000000e+00 : f32
    %216 = vector.broadcast %cst_65 : f32 to vector<8x121xf32>
    %217 = arith.minimumf %202, %216 : vector<8x121xf32>
    %cst_66 = arith.constant 0.00999999977 : f32
    %218 = vector.broadcast %cst_66 : f32 to vector<8x121xf32>
    %219 = arith.mulf %218, %217 : vector<8x121xf32>
    %220 = arith.addf %215, %219 : vector<8x121xf32>
    %cst_67 = arith.constant -3.000000e+00 : f32
    %221 = vector.broadcast %cst_67 : f32 to vector<8x121xf32>
    %222 = arith.cmpf oge, %202, %221 : vector<8x121xf32>
    %cst_68 = arith.constant 3.000000e+00 : f32
    %223 = vector.broadcast %cst_68 : f32 to vector<8x121xf32>
    %224 = arith.cmpf ole, %202, %223 : vector<8x121xf32>
    %225 = arith.andi %222, %224 : vector<8x121xi1>
    %226 = arith.select %225, %211, %220 : vector<8x121xi1>, vector<8x121xf32>
    %cst_69 = arith.constant dense<0.000000e+00> : vector<1x121xf32>
    %227 = tpu.matmul %59, %226, %cst_69 {dimension_numbers = #tpu.dot_dimension_numbers<[1], [0], [0], [1], [0, 0, 1, 1], [], []>} : vector<1x8xf32>, vector<8x121xf32>, vector<1x121xf32> -> vector<1x121xf32>
    %228 = arith.negf %227 : vector<1x121xf32>
    %229 = math.exp %228 : vector<1x121xf32>
    %cst_70 = arith.constant 1.000000e+00 : f32
    %230 = vector.broadcast %cst_70 : f32 to vector<1x121xf32>
    %231 = arith.addf %230, %229 : vector<1x121xf32>
    %232 = arith.divf %230, %231 : vector<1x121xf32>
    %cst_71 = arith.constant dense<0.000000e+00> : vector<8xf32>
    %233 = vector.multi_reduction <add>, %226, %cst_71 [1] : vector<8x121xf32> to vector<8xf32>
    %234 = vector.shape_cast %233 : vector<8xf32> to vector<8x1xf32>
    %cst_72 = arith.constant 0.00826446246 : f32
    %235 = vector.broadcast %cst_72 : f32 to vector<8x1xf32>
    %236 = arith.mulf %234, %235 : vector<8x1xf32>
    %cst_73 = arith.constant dense<0.000000e+00> : vector<2x1xf32>
    %237 = tpu.matmul %60, %236, %cst_73 {dimension_numbers = #tpu.dot_dimension_numbers<[1], [0], [0], [1], [0, 0, 1, 1], [], []>} : vector<2x8xf32>, vector<8x1xf32>, vector<2x1xf32> -> vector<2x1xf32>
    %cst_74 = arith.constant 0.000000e+00 : f32
    %238 = vector.broadcast %cst_74 : f32 to vector<2x1xf32>
    %239 = arith.maximumf %237, %238 : vector<2x1xf32>
    %cst_75 = arith.constant dense<0.000000e+00> : vector<8x1xf32>
    %240 = tpu.matmul %61, %239, %cst_75 {dimension_numbers = #tpu.dot_dimension_numbers<[1], [0], [0], [1], [0, 0, 1, 1], [], []>} : vector<8x2xf32>, vector<2x1xf32>, vector<8x1xf32> -> vector<8x1xf32>
    %cst_76 = arith.constant 3.000000e+00 : f32
    %241 = vector.broadcast %cst_76 : f32 to vector<8x1xf32>
    %242 = arith.addf %240, %241 : vector<8x1xf32>
    %cst_77 = arith.constant 0.166666672 : f32
    %243 = vector.broadcast %cst_77 : f32 to vector<8x1xf32>
    %244 = arith.mulf %242, %243 : vector<8x1xf32>
    %cst_78 = arith.constant 0.000000e+00 : f32
    %cst_79 = arith.constant 1.000000e+00 : f32
    %245 = vector.broadcast %cst_78 : f32 to vector<8x1xf32>
    %246 = arith.maximumf %245, %244 : vector<8x1xf32>
    %247 = vector.broadcast %cst_79 : f32 to vector<8x1xf32>
    %248 = arith.minimumf %247, %246 : vector<8x1xf32>
    %249 = vector.broadcast %248 : vector<8x1xf32> to vector<8x121xf32>
    %250 = vector.broadcast %232 : vector<1x121xf32> to vector<8x121xf32>
    %251 = arith.addf %249, %250 : vector<8x121xf32>
    %252 = arith.mulf %226, %251 : vector<8x121xf32>
    %253 = vector.extract_strided_slice %53 {offsets = [8, 0], sizes = [8, 64], strides = [1, 1]} : vector<24x64xf32> to vector<8x64xf32>
    %c120 = arith.constant 120 : index
    %c0_80 = arith.constant 0 : index
    %254 = vector.load %arg2[%c120, %c0_80] : memref<288x16xf32, #tpu.memory_space<vmem>>, vector<8x1xf32>
    %c128 = arith.constant 128 : index
    %c0_81 = arith.constant 0 : index
    %255 = vector.load %arg2[%c128, %c0_81] : memref<288x16xf32, #tpu.memory_space<vmem>>, vector<8x1xf32>
    %c136 = arith.constant 136 : index
    %c0_82 = arith.constant 0 : index
    %256 = vector.load %arg2[%c136, %c0_82] : memref<288x16xf32, #tpu.memory_space<vmem>>, vector<8x4xf32>
    %c144 = arith.constant 144 : index
    %c0_83 = arith.constant 0 : index
    %257 = vector.load %arg2[%c144, %c0_83] : memref<288x16xf32, #tpu.memory_space<vmem>>, vector<8x1xf32>
    %c152 = arith.constant 152 : index
    %c0_84 = arith.constant 0 : index
    %258 = vector.load %arg2[%c152, %c0_84] : memref<288x16xf32, #tpu.memory_space<vmem>>, vector<1x8xf32>
    %c160 = arith.constant 160 : index
    %c0_85 = arith.constant 0 : index
    %259 = vector.load %arg2[%c160, %c0_85] : memref<288x16xf32, #tpu.memory_space<vmem>>, vector<2x8xf32>
    %c168 = arith.constant 168 : index
    %c0_86 = arith.constant 0 : index
    %260 = vector.load %arg2[%c168, %c0_86] : memref<288x16xf32, #tpu.memory_space<vmem>>, vector<8x2xf32>
    %cst_87 = arith.constant dense<0.000000e+00> : vector<8xf32>
    %261 = vector.multi_reduction <add>, %253, %cst_87 [1] : vector<8x64xf32> to vector<8xf32>
    %262 = vector.shape_cast %261 : vector<8xf32> to vector<8x1xf32>
    %263 = arith.mulf %253, %253 : vector<8x64xf32>
    %cst_88 = arith.constant dense<0.000000e+00> : vector<8xf32>
    %264 = vector.multi_reduction <add>, %263, %cst_88 [1] : vector<8x64xf32> to vector<8xf32>
    %265 = vector.shape_cast %264 : vector<8xf32> to vector<8x1xf32>
    %266 = tpu.concatenate %262, %265 in 1 : vector<8x1xf32>, vector<8x1xf32> -> vector<8x2xf32>
    %cst_89 = arith.constant dense<0.000000e+00> : vector<8x2xf32>
    %267 = tpu.matmul %46, %266, %cst_89 {dimension_numbers = #tpu.dot_dimension_numbers<[1], [0], [0], [1], [0, 0, 1, 1], [], []>} : vector<8x8xf32>, vector<8x2xf32>, vector<8x2xf32> -> vector<8x2xf32>
    %268 = vector.extract_strided_slice %267 {offsets = [0, 0], sizes = [8, 1], strides = [1, 1]} : vector<8x2xf32> to vector<8x1xf32>
    %cst_90 = arith.constant 7.812500e-03 : f32
    %269 = vector.broadcast %cst_90 : f32 to vector<8x1xf32>
    %270 = arith.mulf %268, %269 : vector<8x1xf32>
    %271 = vector.extract_strided_slice %267 {offsets = [0, 1], sizes = [8, 1], strides = [1, 1]} : vector<8x2xf32> to vector<8x1xf32>
    %cst_91 = arith.constant 7.812500e-03 : f32
    %272 = vector.broadcast %cst_91 : f32 to vector<8x1xf32>
    %273 = arith.mulf %271, %272 : vector<8x1xf32>
    %274 = arith.mulf %270, %270 : vector<8x1xf32>
    %275 = arith.subf %273, %274 : vector<8x1xf32>
    %cst_92 = arith.constant 0.000000e+00 : f32
    %276 = vector.broadcast %cst_92 : f32 to vector<8x1xf32>
    %277 = arith.maximumf %275, %276 : vector<8x1xf32>
    %cst_93 = arith.constant 9.99999974E-6 : f32
    %278 = vector.broadcast %cst_93 : f32 to vector<8x1xf32>
    %279 = arith.addf %277, %278 : vector<8x1xf32>
    %280 = math.rsqrt %279 : vector<8x1xf32>
    %281 = vector.broadcast %270 : vector<8x1xf32> to vector<8x64xf32>
    %282 = arith.subf %253, %281 : vector<8x64xf32>
    %283 = arith.mulf %280, %254 : vector<8x1xf32>
    %284 = vector.broadcast %283 : vector<8x1xf32> to vector<8x64xf32>
    %285 = arith.mulf %282, %284 : vector<8x64xf32>
    %286 = vector.broadcast %255 : vector<8x1xf32> to vector<8x64xf32>
    %287 = arith.addf %285, %286 : vector<8x64xf32>
    %288 = vector.extract_strided_slice %287 {offsets = [0, 0], sizes = [8, 8], strides = [1, 1]} : vector<8x64xf32> to vector<8x8xf32>
    %c0_i32_94 = arith.constant 0 : i32
    %289 = arith.sitofp %c0_i32_94 : i32 to f32
    %290 = vector.broadcast %289 : f32 to vector<8x2xf32>
    %291 = tpu.concatenate %288, %290 in 1 : vector<8x8xf32>, vector<8x2xf32> -> vector<8x10xf32>
    %292 = vector.extract_strided_slice %287 {offsets = [0, 8], sizes = [8, 8], strides = [1, 1]} : vector<8x64xf32> to vector<8x8xf32>
    %c0_i32_95 = arith.constant 0 : i32
    %293 = arith.sitofp %c0_i32_95 : i32 to f32
    %294 = vector.broadcast %293 : f32 to vector<8x2xf32>
    %295 = tpu.concatenate %292, %294 in 1 : vector<8x8xf32>, vector<8x2xf32> -> vector<8x10xf32>
    %296 = vector.extract_strided_slice %287 {offsets = [0, 16], sizes = [8, 8], strides = [1, 1]} : vector<8x64xf32> to vector<8x8xf32>
    %c0_i32_96 = arith.constant 0 : i32
    %297 = arith.sitofp %c0_i32_96 : i32 to f32
    %298 = vector.broadcast %297 : f32 to vector<8x2xf32>
    %299 = tpu.concatenate %296, %298 in 1 : vector<8x8xf32>, vector<8x2xf32> -> vector<8x10xf32>
    %300 = vector.extract_strided_slice %287 {offsets = [0, 24], sizes = [8, 8], strides = [1, 1]} : vector<8x64xf32> to vector<8x8xf32>
    %c0_i32_97 = arith.constant 0 : i32
    %301 = arith.sitofp %c0_i32_97 : i32 to f32
    %302 = vector.broadcast %301 : f32 to vector<8x2xf32>
    %303 = tpu.concatenate %300, %302 in 1 : vector<8x8xf32>, vector<8x2xf32> -> vector<8x10xf32>
    %304 = vector.extract_strided_slice %287 {offsets = [0, 32], sizes = [8, 8], strides = [1, 1]} : vector<8x64xf32> to vector<8x8xf32>
    %c0_i32_98 = arith.constant 0 : i32
    %305 = arith.sitofp %c0_i32_98 : i32 to f32
    %306 = vector.broadcast %305 : f32 to vector<8x2xf32>
    %307 = tpu.concatenate %304, %306 in 1 : vector<8x8xf32>, vector<8x2xf32> -> vector<8x10xf32>
    %308 = vector.extract_strided_slice %287 {offsets = [0, 40], sizes = [8, 8], strides = [1, 1]} : vector<8x64xf32> to vector<8x8xf32>
    %c0_i32_99 = arith.constant 0 : i32
    %309 = arith.sitofp %c0_i32_99 : i32 to f32
    %310 = vector.broadcast %309 : f32 to vector<8x2xf32>
    %311 = tpu.concatenate %308, %310 in 1 : vector<8x8xf32>, vector<8x2xf32> -> vector<8x10xf32>
    %312 = vector.extract_strided_slice %287 {offsets = [0, 48], sizes = [8, 8], strides = [1, 1]} : vector<8x64xf32> to vector<8x8xf32>
    %c0_i32_100 = arith.constant 0 : i32
    %313 = arith.sitofp %c0_i32_100 : i32 to f32
    %314 = vector.broadcast %313 : f32 to vector<8x2xf32>
    %315 = tpu.concatenate %312, %314 in 1 : vector<8x8xf32>, vector<8x2xf32> -> vector<8x10xf32>
    %316 = vector.extract_strided_slice %287 {offsets = [0, 56], sizes = [8, 8], strides = [1, 1]} : vector<8x64xf32> to vector<8x8xf32>
    %317 = tpu.concatenate %291, %295, %299, %303, %307, %311, %315, %316 in 1 : vector<8x10xf32>, vector<8x10xf32>, vector<8x10xf32>, vector<8x10xf32>, vector<8x10xf32>, vector<8x10xf32>, vector<8x10xf32>, vector<8x8xf32> -> vector<8x78xf32>
    %318 = vector.extract_strided_slice %256 {offsets = [0, 0], sizes = [8, 1], strides = [1, 1]} : vector<8x4xf32> to vector<8x1xf32>
    %319 = vector.broadcast %318 : vector<8x1xf32> to vector<8x78xf32>
    %320 = arith.mulf %317, %319 : vector<8x78xf32>
    %c0_i32_101 = arith.constant 0 : i32
    %321 = arith.sitofp %c0_i32_101 : i32 to f32
    %322 = vector.broadcast %321 : f32 to vector<8x22xf32>
    %323 = tpu.concatenate %320, %322 in 1 : vector<8x78xf32>, vector<8x22xf32> -> vector<8x100xf32>
    %324 = vector.extract_strided_slice %256 {offsets = [0, 1], sizes = [8, 1], strides = [1, 1]} : vector<8x4xf32> to vector<8x1xf32>
    %325 = vector.broadcast %324 : vector<8x1xf32> to vector<8x78xf32>
    %326 = arith.mulf %317, %325 : vector<8x78xf32>
    %c0_i32_102 = arith.constant 0 : i32
    %327 = arith.sitofp %c0_i32_102 : i32 to f32
    %328 = vector.broadcast %327 : f32 to vector<8x2xf32>
    %329 = tpu.concatenate %328, %326 in 1 : vector<8x2xf32>, vector<8x78xf32> -> vector<8x80xf32>
    %330 = vector.broadcast %327 : f32 to vector<8x20xf32>
    %331 = tpu.concatenate %329, %330 in 1 : vector<8x80xf32>, vector<8x20xf32> -> vector<8x100xf32>
    %332 = arith.addf %323, %331 : vector<8x100xf32>
    %333 = vector.extract_strided_slice %256 {offsets = [0, 2], sizes = [8, 1], strides = [1, 1]} : vector<8x4xf32> to vector<8x1xf32>
    %334 = vector.broadcast %333 : vector<8x1xf32> to vector<8x78xf32>
    %335 = arith.mulf %317, %334 : vector<8x78xf32>
    %c0_i32_103 = arith.constant 0 : i32
    %336 = arith.sitofp %c0_i32_103 : i32 to f32
    %337 = vector.broadcast %336 : f32 to vector<8x20xf32>
    %338 = tpu.concatenate %337, %335 in 1 : vector<8x20xf32>, vector<8x78xf32> -> vector<8x98xf32>
    %339 = vector.broadcast %336 : f32 to vector<8x2xf32>
    %340 = tpu.concatenate %338, %339 in 1 : vector<8x98xf32>, vector<8x2xf32> -> vector<8x100xf32>
    %341 = arith.addf %332, %340 : vector<8x100xf32>
    %342 = vector.extract_strided_slice %256 {offsets = [0, 3], sizes = [8, 1], strides = [1, 1]} : vector<8x4xf32> to vector<8x1xf32>
    %343 = vector.broadcast %342 : vector<8x1xf32> to vector<8x78xf32>
    %344 = arith.mulf %317, %343 : vector<8x78xf32>
    %c0_i32_104 = arith.constant 0 : i32
    %345 = arith.sitofp %c0_i32_104 : i32 to f32
    %346 = vector.broadcast %345 : f32 to vector<8x22xf32>
    %347 = tpu.concatenate %346, %344 in 1 : vector<8x22xf32>, vector<8x78xf32> -> vector<8x100xf32>
    %348 = arith.addf %341, %347 : vector<8x100xf32>
    %349 = vector.broadcast %257 : vector<8x1xf32> to vector<8x100xf32>
    %350 = arith.addf %348, %349 : vector<8x100xf32>
    %cst_105 = arith.constant 3.000000e+00 : f32
    %351 = vector.broadcast %cst_105 : f32 to vector<8x100xf32>
    %352 = arith.addf %350, %351 : vector<8x100xf32>
    %cst_106 = arith.constant 0.000000e+00 : f32
    %cst_107 = arith.constant 6.000000e+00 : f32
    %353 = vector.broadcast %cst_106 : f32 to vector<8x100xf32>
    %354 = arith.maximumf %353, %352 : vector<8x100xf32>
    %355 = vector.broadcast %cst_107 : f32 to vector<8x100xf32>
    %356 = arith.minimumf %355, %354 : vector<8x100xf32>
    %357 = arith.mulf %350, %356 : vector<8x100xf32>
    %cst_108 = arith.constant 0.166666672 : f32
    %358 = vector.broadcast %cst_108 : f32 to vector<8x100xf32>
    %359 = arith.mulf %357, %358 : vector<8x100xf32>
    %cst_109 = arith.constant 0.000000e+00 : f32
    %cst_110 = arith.constant 6.000000e+00 : f32
    %360 = vector.broadcast %cst_109 : f32 to vector<8x100xf32>
    %361 = arith.maximumf %360, %350 : vector<8x100xf32>
    %362 = vector.broadcast %cst_110 : f32 to vector<8x100xf32>
    %363 = arith.minimumf %362, %361 : vector<8x100xf32>
    %cst_111 = arith.constant 0.000000e+00 : f32
    %364 = vector.broadcast %cst_111 : f32 to vector<8x100xf32>
    %365 = arith.minimumf %350, %364 : vector<8x100xf32>
    %cst_112 = arith.constant 0.00999999977 : f32
    %366 = vector.broadcast %cst_112 : f32 to vector<8x100xf32>
    %367 = arith.mulf %366, %365 : vector<8x100xf32>
    %368 = arith.addf %363, %367 : vector<8x100xf32>
    %cst_113 = arith.constant -3.000000e+00 : f32
    %369 = vector.broadcast %cst_113 : f32 to vector<8x100xf32>
    %370 = arith.cmpf oge, %350, %369 : vector<8x100xf32>
    %cst_114 = arith.constant 3.000000e+00 : f32
    %371 = vector.broadcast %cst_114 : f32 to vector<8x100xf32>
    %372 = arith.cmpf ole, %350, %371 : vector<8x100xf32>
    %373 = arith.andi %370, %372 : vector<8x100xi1>
    %374 = arith.select %373, %359, %368 : vector<8x100xi1>, vector<8x100xf32>
    %cst_115 = arith.constant dense<0.000000e+00> : vector<8xf32>
    %375 = vector.multi_reduction <add>, %374, %cst_115 [1] : vector<8x100xf32> to vector<8xf32>
    %376 = vector.shape_cast %375 : vector<8xf32> to vector<8x1xf32>
    %377 = arith.mulf %374, %374 : vector<8x100xf32>
    %cst_116 = arith.constant dense<0.000000e+00> : vector<8xf32>
    %378 = vector.multi_reduction <add>, %377, %cst_116 [1] : vector<8x100xf32> to vector<8xf32>
    %379 = vector.shape_cast %378 : vector<8xf32> to vector<8x1xf32>
    %380 = tpu.concatenate %376, %379 in 1 : vector<8x1xf32>, vector<8x1xf32> -> vector<8x2xf32>
    %cst_117 = arith.constant dense<0.000000e+00> : vector<8x2xf32>
    %381 = tpu.matmul %46, %380, %cst_117 {dimension_numbers = #tpu.dot_dimension_numbers<[1], [0], [0], [1], [0, 0, 1, 1], [], []>} : vector<8x8xf32>, vector<8x2xf32>, vector<8x2xf32> -> vector<8x2xf32>
    %382 = vector.extract_strided_slice %381 {offsets = [0, 0], sizes = [8, 1], strides = [1, 1]} : vector<8x2xf32> to vector<8x1xf32>
    %cst_118 = arith.constant 5.000000e-03 : f32
    %383 = vector.broadcast %cst_118 : f32 to vector<8x1xf32>
    %384 = arith.mulf %382, %383 : vector<8x1xf32>
    %385 = vector.extract_strided_slice %381 {offsets = [0, 1], sizes = [8, 1], strides = [1, 1]} : vector<8x2xf32> to vector<8x1xf32>
    %cst_119 = arith.constant 5.000000e-03 : f32
    %386 = vector.broadcast %cst_119 : f32 to vector<8x1xf32>
    %387 = arith.mulf %385, %386 : vector<8x1xf32>
    %388 = arith.mulf %384, %384 : vector<8x1xf32>
    %389 = arith.subf %387, %388 : vector<8x1xf32>
    %cst_120 = arith.constant 0.000000e+00 : f32
    %390 = vector.broadcast %cst_120 : f32 to vector<8x1xf32>
    %391 = arith.maximumf %389, %390 : vector<8x1xf32>
    %cst_121 = arith.constant 9.99999974E-6 : f32
    %392 = vector.broadcast %cst_121 : f32 to vector<8x1xf32>
    %393 = arith.addf %391, %392 : vector<8x1xf32>
    %394 = math.rsqrt %393 : vector<8x1xf32>
    %395 = vector.broadcast %384 : vector<8x1xf32> to vector<8x100xf32>
    %396 = arith.subf %374, %395 : vector<8x100xf32>
    %397 = arith.mulf %394, %254 : vector<8x1xf32>
    %398 = vector.broadcast %397 : vector<8x1xf32> to vector<8x100xf32>
    %399 = arith.mulf %396, %398 : vector<8x100xf32>
    %400 = vector.broadcast %255 : vector<8x1xf32> to vector<8x100xf32>
    %401 = arith.addf %399, %400 : vector<8x100xf32>
    %cst_122 = arith.constant 3.000000e+00 : f32
    %402 = vector.broadcast %cst_122 : f32 to vector<8x100xf32>
    %403 = arith.addf %401, %402 : vector<8x100xf32>
    %cst_123 = arith.constant 0.000000e+00 : f32
    %cst_124 = arith.constant 6.000000e+00 : f32
    %404 = vector.broadcast %cst_123 : f32 to vector<8x100xf32>
    %405 = arith.maximumf %404, %403 : vector<8x100xf32>
    %406 = vector.broadcast %cst_124 : f32 to vector<8x100xf32>
    %407 = arith.minimumf %406, %405 : vector<8x100xf32>
    %408 = arith.mulf %401, %407 : vector<8x100xf32>
    %cst_125 = arith.constant 0.166666672 : f32
    %409 = vector.broadcast %cst_125 : f32 to vector<8x100xf32>
    %410 = arith.mulf %408, %409 : vector<8x100xf32>
    %cst_126 = arith.constant 0.000000e+00 : f32
    %cst_127 = arith.constant 6.000000e+00 : f32
    %411 = vector.broadcast %cst_126 : f32 to vector<8x100xf32>
    %412 = arith.maximumf %411, %401 : vector<8x100xf32>
    %413 = vector.broadcast %cst_127 : f32 to vector<8x100xf32>
    %414 = arith.minimumf %413, %412 : vector<8x100xf32>
    %cst_128 = arith.constant 0.000000e+00 : f32
    %415 = vector.broadcast %cst_128 : f32 to vector<8x100xf32>
    %416 = arith.minimumf %401, %415 : vector<8x100xf32>
    %cst_129 = arith.constant 0.00999999977 : f32
    %417 = vector.broadcast %cst_129 : f32 to vector<8x100xf32>
    %418 = arith.mulf %417, %416 : vector<8x100xf32>
    %419 = arith.addf %414, %418 : vector<8x100xf32>
    %cst_130 = arith.constant -3.000000e+00 : f32
    %420 = vector.broadcast %cst_130 : f32 to vector<8x100xf32>
    %421 = arith.cmpf oge, %401, %420 : vector<8x100xf32>
    %cst_131 = arith.constant 3.000000e+00 : f32
    %422 = vector.broadcast %cst_131 : f32 to vector<8x100xf32>
    %423 = arith.cmpf ole, %401, %422 : vector<8x100xf32>
    %424 = arith.andi %421, %423 : vector<8x100xi1>
    %425 = arith.select %424, %410, %419 : vector<8x100xi1>, vector<8x100xf32>
    %cst_132 = arith.constant dense<0.000000e+00> : vector<1x100xf32>
    %426 = tpu.matmul %258, %425, %cst_132 {dimension_numbers = #tpu.dot_dimension_numbers<[1], [0], [0], [1], [0, 0, 1, 1], [], []>} : vector<1x8xf32>, vector<8x100xf32>, vector<1x100xf32> -> vector<1x100xf32>
    %427 = arith.negf %426 : vector<1x100xf32>
    %428 = math.exp %427 : vector<1x100xf32>
    %cst_133 = arith.constant 1.000000e+00 : f32
    %429 = vector.broadcast %cst_133 : f32 to vector<1x100xf32>
    %430 = arith.addf %429, %428 : vector<1x100xf32>
    %431 = arith.divf %429, %430 : vector<1x100xf32>
    %cst_134 = arith.constant dense<0.000000e+00> : vector<8xf32>
    %432 = vector.multi_reduction <add>, %425, %cst_134 [1] : vector<8x100xf32> to vector<8xf32>
    %433 = vector.shape_cast %432 : vector<8xf32> to vector<8x1xf32>
    %cst_135 = arith.constant 0.00999999977 : f32
    %434 = vector.broadcast %cst_135 : f32 to vector<8x1xf32>
    %435 = arith.mulf %433, %434 : vector<8x1xf32>
    %cst_136 = arith.constant dense<0.000000e+00> : vector<2x1xf32>
    %436 = tpu.matmul %259, %435, %cst_136 {dimension_numbers = #tpu.dot_dimension_numbers<[1], [0], [0], [1], [0, 0, 1, 1], [], []>} : vector<2x8xf32>, vector<8x1xf32>, vector<2x1xf32> -> vector<2x1xf32>
    %cst_137 = arith.constant 0.000000e+00 : f32
    %437 = vector.broadcast %cst_137 : f32 to vector<2x1xf32>
    %438 = arith.maximumf %436, %437 : vector<2x1xf32>
    %cst_138 = arith.constant dense<0.000000e+00> : vector<8x1xf32>
    %439 = tpu.matmul %260, %438, %cst_138 {dimension_numbers = #tpu.dot_dimension_numbers<[1], [0], [0], [1], [0, 0, 1, 1], [], []>} : vector<8x2xf32>, vector<2x1xf32>, vector<8x1xf32> -> vector<8x1xf32>
    %cst_139 = arith.constant 3.000000e+00 : f32
    %440 = vector.broadcast %cst_139 : f32 to vector<8x1xf32>
    %441 = arith.addf %439, %440 : vector<8x1xf32>
    %cst_140 = arith.constant 0.166666672 : f32
    %442 = vector.broadcast %cst_140 : f32 to vector<8x1xf32>
    %443 = arith.mulf %441, %442 : vector<8x1xf32>
    %cst_141 = arith.constant 0.000000e+00 : f32
    %cst_142 = arith.constant 1.000000e+00 : f32
    %444 = vector.broadcast %cst_141 : f32 to vector<8x1xf32>
    %445 = arith.maximumf %444, %443 : vector<8x1xf32>
    %446 = vector.broadcast %cst_142 : f32 to vector<8x1xf32>
    %447 = arith.minimumf %446, %445 : vector<8x1xf32>
    %448 = vector.broadcast %447 : vector<8x1xf32> to vector<8x100xf32>
    %449 = vector.broadcast %431 : vector<1x100xf32> to vector<8x100xf32>
    %450 = arith.addf %448, %449 : vector<8x100xf32>
    %451 = arith.mulf %425, %450 : vector<8x100xf32>
    %c48 = arith.constant 48 : index
    %c0_143 = arith.constant 0 : index
    %452 = vector.load %arg2[%c48, %c0_143] : memref<288x16xf32, #tpu.memory_space<vmem>>, vector<8x8xf32>
    %cst_144 = arith.constant dense<0.000000e+00> : vector<8x100xf32>
    %453 = tpu.matmul %452, %451, %cst_144 {dimension_numbers = #tpu.dot_dimension_numbers<[1], [0], [0], [1], [0, 0, 1, 1], [], []>} : vector<8x8xf32>, vector<8x100xf32>, vector<8x100xf32> -> vector<8x100xf32>
    %c56 = arith.constant 56 : index
    %c0_145 = arith.constant 0 : index
    %454 = vector.load %arg2[%c56, %c0_145] : memref<288x16xf32, #tpu.memory_space<vmem>>, vector<8x1xf32>
    %455 = vector.broadcast %454 : vector<8x1xf32> to vector<8x100xf32>
    %456 = arith.addf %453, %455 : vector<8x100xf32>
    %c176 = arith.constant 176 : index
    %c0_146 = arith.constant 0 : index
    %457 = vector.load %arg2[%c176, %c0_146] : memref<288x16xf32, #tpu.memory_space<vmem>>, vector<8x1xf32>
    %c184 = arith.constant 184 : index
    %c0_147 = arith.constant 0 : index
    %458 = vector.load %arg2[%c184, %c0_147] : memref<288x16xf32, #tpu.memory_space<vmem>>, vector<8x1xf32>
    %c192 = arith.constant 192 : index
    %c0_148 = arith.constant 0 : index
    %459 = vector.load %arg2[%c192, %c0_148] : memref<288x16xf32, #tpu.memory_space<vmem>>, vector<8x4xf32>
    %c200 = arith.constant 200 : index
    %c0_149 = arith.constant 0 : index
    %460 = vector.load %arg2[%c200, %c0_149] : memref<288x16xf32, #tpu.memory_space<vmem>>, vector<8x1xf32>
    %c208 = arith.constant 208 : index
    %c0_150 = arith.constant 0 : index
    %461 = vector.load %arg2[%c208, %c0_150] : memref<288x16xf32, #tpu.memory_space<vmem>>, vector<1x8xf32>
    %c216 = arith.constant 216 : index
    %c0_151 = arith.constant 0 : index
    %462 = vector.load %arg2[%c216, %c0_151] : memref<288x16xf32, #tpu.memory_space<vmem>>, vector<2x8xf32>
    %c224 = arith.constant 224 : index
    %c0_152 = arith.constant 0 : index
    %463 = vector.load %arg2[%c224, %c0_152] : memref<288x16xf32, #tpu.memory_space<vmem>>, vector<8x2xf32>
    %cst_153 = arith.constant dense<0.000000e+00> : vector<8xf32>
    %464 = vector.multi_reduction <add>, %456, %cst_153 [1] : vector<8x100xf32> to vector<8xf32>
    %465 = vector.shape_cast %464 : vector<8xf32> to vector<8x1xf32>
    %466 = arith.mulf %456, %456 : vector<8x100xf32>
    %cst_154 = arith.constant dense<0.000000e+00> : vector<8xf32>
    %467 = vector.multi_reduction <add>, %466, %cst_154 [1] : vector<8x100xf32> to vector<8xf32>
    %468 = vector.shape_cast %467 : vector<8xf32> to vector<8x1xf32>
    %469 = tpu.concatenate %465, %468 in 1 : vector<8x1xf32>, vector<8x1xf32> -> vector<8x2xf32>
    %cst_155 = arith.constant dense<0.000000e+00> : vector<8x2xf32>
    %470 = tpu.matmul %46, %469, %cst_155 {dimension_numbers = #tpu.dot_dimension_numbers<[1], [0], [0], [1], [0, 0, 1, 1], [], []>} : vector<8x8xf32>, vector<8x2xf32>, vector<8x2xf32> -> vector<8x2xf32>
    %471 = vector.extract_strided_slice %470 {offsets = [0, 0], sizes = [8, 1], strides = [1, 1]} : vector<8x2xf32> to vector<8x1xf32>
    %cst_156 = arith.constant 5.000000e-03 : f32
    %472 = vector.broadcast %cst_156 : f32 to vector<8x1xf32>
    %473 = arith.mulf %471, %472 : vector<8x1xf32>
    %474 = vector.extract_strided_slice %470 {offsets = [0, 1], sizes = [8, 1], strides = [1, 1]} : vector<8x2xf32> to vector<8x1xf32>
    %cst_157 = arith.constant 5.000000e-03 : f32
    %475 = vector.broadcast %cst_157 : f32 to vector<8x1xf32>
    %476 = arith.mulf %474, %475 : vector<8x1xf32>
    %477 = arith.mulf %473, %473 : vector<8x1xf32>
    %478 = arith.subf %476, %477 : vector<8x1xf32>
    %cst_158 = arith.constant 0.000000e+00 : f32
    %479 = vector.broadcast %cst_158 : f32 to vector<8x1xf32>
    %480 = arith.maximumf %478, %479 : vector<8x1xf32>
    %cst_159 = arith.constant 9.99999974E-6 : f32
    %481 = vector.broadcast %cst_159 : f32 to vector<8x1xf32>
    %482 = arith.addf %480, %481 : vector<8x1xf32>
    %483 = math.rsqrt %482 : vector<8x1xf32>
    %484 = vector.broadcast %473 : vector<8x1xf32> to vector<8x100xf32>
    %485 = arith.subf %456, %484 : vector<8x100xf32>
    %486 = arith.mulf %483, %457 : vector<8x1xf32>
    %487 = vector.broadcast %486 : vector<8x1xf32> to vector<8x100xf32>
    %488 = arith.mulf %485, %487 : vector<8x100xf32>
    %489 = vector.broadcast %458 : vector<8x1xf32> to vector<8x100xf32>
    %490 = arith.addf %488, %489 : vector<8x100xf32>
    %491 = vector.extract_strided_slice %490 {offsets = [0, 0], sizes = [8, 10], strides = [1, 1]} : vector<8x100xf32> to vector<8x10xf32>
    %c0_i32_160 = arith.constant 0 : i32
    %492 = arith.sitofp %c0_i32_160 : i32 to f32
    %493 = vector.broadcast %492 : f32 to vector<8x1xf32>
    %494 = tpu.concatenate %491, %493 in 1 : vector<8x10xf32>, vector<8x1xf32> -> vector<8x11xf32>
    %495 = vector.extract_strided_slice %490 {offsets = [0, 10], sizes = [8, 10], strides = [1, 1]} : vector<8x100xf32> to vector<8x10xf32>
    %c0_i32_161 = arith.constant 0 : i32
    %496 = arith.sitofp %c0_i32_161 : i32 to f32
    %497 = vector.broadcast %496 : f32 to vector<8x1xf32>
    %498 = tpu.concatenate %495, %497 in 1 : vector<8x10xf32>, vector<8x1xf32> -> vector<8x11xf32>
    %499 = vector.extract_strided_slice %490 {offsets = [0, 20], sizes = [8, 10], strides = [1, 1]} : vector<8x100xf32> to vector<8x10xf32>
    %c0_i32_162 = arith.constant 0 : i32
    %500 = arith.sitofp %c0_i32_162 : i32 to f32
    %501 = vector.broadcast %500 : f32 to vector<8x1xf32>
    %502 = tpu.concatenate %499, %501 in 1 : vector<8x10xf32>, vector<8x1xf32> -> vector<8x11xf32>
    %503 = vector.extract_strided_slice %490 {offsets = [0, 30], sizes = [8, 10], strides = [1, 1]} : vector<8x100xf32> to vector<8x10xf32>
    %c0_i32_163 = arith.constant 0 : i32
    %504 = arith.sitofp %c0_i32_163 : i32 to f32
    %505 = vector.broadcast %504 : f32 to vector<8x1xf32>
    %506 = tpu.concatenate %503, %505 in 1 : vector<8x10xf32>, vector<8x1xf32> -> vector<8x11xf32>
    %507 = vector.extract_strided_slice %490 {offsets = [0, 40], sizes = [8, 10], strides = [1, 1]} : vector<8x100xf32> to vector<8x10xf32>
    %c0_i32_164 = arith.constant 0 : i32
    %508 = arith.sitofp %c0_i32_164 : i32 to f32
    %509 = vector.broadcast %508 : f32 to vector<8x1xf32>
    %510 = tpu.concatenate %507, %509 in 1 : vector<8x10xf32>, vector<8x1xf32> -> vector<8x11xf32>
    %511 = vector.extract_strided_slice %490 {offsets = [0, 50], sizes = [8, 10], strides = [1, 1]} : vector<8x100xf32> to vector<8x10xf32>
    %c0_i32_165 = arith.constant 0 : i32
    %512 = arith.sitofp %c0_i32_165 : i32 to f32
    %513 = vector.broadcast %512 : f32 to vector<8x1xf32>
    %514 = tpu.concatenate %511, %513 in 1 : vector<8x10xf32>, vector<8x1xf32> -> vector<8x11xf32>
    %515 = vector.extract_strided_slice %490 {offsets = [0, 60], sizes = [8, 10], strides = [1, 1]} : vector<8x100xf32> to vector<8x10xf32>
    %c0_i32_166 = arith.constant 0 : i32
    %516 = arith.sitofp %c0_i32_166 : i32 to f32
    %517 = vector.broadcast %516 : f32 to vector<8x1xf32>
    %518 = tpu.concatenate %515, %517 in 1 : vector<8x10xf32>, vector<8x1xf32> -> vector<8x11xf32>
    %519 = vector.extract_strided_slice %490 {offsets = [0, 70], sizes = [8, 10], strides = [1, 1]} : vector<8x100xf32> to vector<8x10xf32>
    %c0_i32_167 = arith.constant 0 : i32
    %520 = arith.sitofp %c0_i32_167 : i32 to f32
    %521 = vector.broadcast %520 : f32 to vector<8x1xf32>
    %522 = tpu.concatenate %519, %521 in 1 : vector<8x10xf32>, vector<8x1xf32> -> vector<8x11xf32>
    %523 = vector.extract_strided_slice %490 {offsets = [0, 80], sizes = [8, 10], strides = [1, 1]} : vector<8x100xf32> to vector<8x10xf32>
    %c0_i32_168 = arith.constant 0 : i32
    %524 = arith.sitofp %c0_i32_168 : i32 to f32
    %525 = vector.broadcast %524 : f32 to vector<8x1xf32>
    %526 = tpu.concatenate %523, %525 in 1 : vector<8x10xf32>, vector<8x1xf32> -> vector<8x11xf32>
    %527 = vector.extract_strided_slice %490 {offsets = [0, 90], sizes = [8, 10], strides = [1, 1]} : vector<8x100xf32> to vector<8x10xf32>
    %528 = tpu.concatenate %494, %498, %502, %506, %510, %514, %518, %522, %526, %527 in 1 : vector<8x11xf32>, vector<8x11xf32>, vector<8x11xf32>, vector<8x11xf32>, vector<8x11xf32>, vector<8x11xf32>, vector<8x11xf32>, vector<8x11xf32>, vector<8x11xf32>, vector<8x10xf32> -> vector<8x109xf32>
    %529 = vector.extract_strided_slice %459 {offsets = [0, 0], sizes = [8, 1], strides = [1, 1]} : vector<8x4xf32> to vector<8x1xf32>
    %530 = vector.broadcast %529 : vector<8x1xf32> to vector<8x109xf32>
    %531 = arith.mulf %528, %530 : vector<8x109xf32>
    %c0_i32_169 = arith.constant 0 : i32
    %532 = arith.sitofp %c0_i32_169 : i32 to f32
    %533 = vector.broadcast %532 : f32 to vector<8x12xf32>
    %534 = tpu.concatenate %531, %533 in 1 : vector<8x109xf32>, vector<8x12xf32> -> vector<8x121xf32>
    %535 = vector.extract_strided_slice %459 {offsets = [0, 1], sizes = [8, 1], strides = [1, 1]} : vector<8x4xf32> to vector<8x1xf32>
    %536 = vector.broadcast %535 : vector<8x1xf32> to vector<8x109xf32>
    %537 = arith.mulf %528, %536 : vector<8x109xf32>
    %c0_i32_170 = arith.constant 0 : i32
    %538 = arith.sitofp %c0_i32_170 : i32 to f32
    %539 = vector.broadcast %538 : f32 to vector<8x1xf32>
    %540 = tpu.concatenate %539, %537 in 1 : vector<8x1xf32>, vector<8x109xf32> -> vector<8x110xf32>
    %541 = vector.broadcast %538 : f32 to vector<8x11xf32>
    %542 = tpu.concatenate %540, %541 in 1 : vector<8x110xf32>, vector<8x11xf32> -> vector<8x121xf32>
    %543 = arith.addf %534, %542 : vector<8x121xf32>
    %544 = vector.extract_strided_slice %459 {offsets = [0, 2], sizes = [8, 1], strides = [1, 1]} : vector<8x4xf32> to vector<8x1xf32>
    %545 = vector.broadcast %544 : vector<8x1xf32> to vector<8x109xf32>
    %546 = arith.mulf %528, %545 : vector<8x109xf32>
    %c0_i32_171 = arith.constant 0 : i32
    %547 = arith.sitofp %c0_i32_171 : i32 to f32
    %548 = vector.broadcast %547 : f32 to vector<8x11xf32>
    %549 = tpu.concatenate %548, %546 in 1 : vector<8x11xf32>, vector<8x109xf32> -> vector<8x120xf32>
    %550 = vector.broadcast %547 : f32 to vector<8x1xf32>
    %551 = tpu.concatenate %549, %550 in 1 : vector<8x120xf32>, vector<8x1xf32> -> vector<8x121xf32>
    %552 = arith.addf %543, %551 : vector<8x121xf32>
    %553 = vector.extract_strided_slice %459 {offsets = [0, 3], sizes = [8, 1], strides = [1, 1]} : vector<8x4xf32> to vector<8x1xf32>
    %554 = vector.broadcast %553 : vector<8x1xf32> to vector<8x109xf32>
    %555 = arith.mulf %528, %554 : vector<8x109xf32>
    %c0_i32_172 = arith.constant 0 : i32
    %556 = arith.sitofp %c0_i32_172 : i32 to f32
    %557 = vector.broadcast %556 : f32 to vector<8x12xf32>
    %558 = tpu.concatenate %557, %555 in 1 : vector<8x12xf32>, vector<8x109xf32> -> vector<8x121xf32>
    %559 = arith.addf %552, %558 : vector<8x121xf32>
    %560 = vector.broadcast %460 : vector<8x1xf32> to vector<8x121xf32>
    %561 = arith.addf %559, %560 : vector<8x121xf32>
    %cst_173 = arith.constant 3.000000e+00 : f32
    %562 = vector.broadcast %cst_173 : f32 to vector<8x121xf32>
    %563 = arith.addf %561, %562 : vector<8x121xf32>
    %cst_174 = arith.constant 0.000000e+00 : f32
    %cst_175 = arith.constant 6.000000e+00 : f32
    %564 = vector.broadcast %cst_174 : f32 to vector<8x121xf32>
    %565 = arith.maximumf %564, %563 : vector<8x121xf32>
    %566 = vector.broadcast %cst_175 : f32 to vector<8x121xf32>
    %567 = arith.minimumf %566, %565 : vector<8x121xf32>
    %568 = arith.mulf %561, %567 : vector<8x121xf32>
    %cst_176 = arith.constant 0.166666672 : f32
    %569 = vector.broadcast %cst_176 : f32 to vector<8x121xf32>
    %570 = arith.mulf %568, %569 : vector<8x121xf32>
    %cst_177 = arith.constant 0.000000e+00 : f32
    %cst_178 = arith.constant 6.000000e+00 : f32
    %571 = vector.broadcast %cst_177 : f32 to vector<8x121xf32>
    %572 = arith.maximumf %571, %561 : vector<8x121xf32>
    %573 = vector.broadcast %cst_178 : f32 to vector<8x121xf32>
    %574 = arith.minimumf %573, %572 : vector<8x121xf32>
    %cst_179 = arith.constant 0.000000e+00 : f32
    %575 = vector.broadcast %cst_179 : f32 to vector<8x121xf32>
    %576 = arith.minimumf %561, %575 : vector<8x121xf32>
    %cst_180 = arith.constant 0.00999999977 : f32
    %577 = vector.broadcast %cst_180 : f32 to vector<8x121xf32>
    %578 = arith.mulf %577, %576 : vector<8x121xf32>
    %579 = arith.addf %574, %578 : vector<8x121xf32>
    %cst_181 = arith.constant -3.000000e+00 : f32
    %580 = vector.broadcast %cst_181 : f32 to vector<8x121xf32>
    %581 = arith.cmpf oge, %561, %580 : vector<8x121xf32>
    %cst_182 = arith.constant 3.000000e+00 : f32
    %582 = vector.broadcast %cst_182 : f32 to vector<8x121xf32>
    %583 = arith.cmpf ole, %561, %582 : vector<8x121xf32>
    %584 = arith.andi %581, %583 : vector<8x121xi1>
    %585 = arith.select %584, %570, %579 : vector<8x121xi1>, vector<8x121xf32>
    %cst_183 = arith.constant dense<0.000000e+00> : vector<8xf32>
    %586 = vector.multi_reduction <add>, %585, %cst_183 [1] : vector<8x121xf32> to vector<8xf32>
    %587 = vector.shape_cast %586 : vector<8xf32> to vector<8x1xf32>
    %588 = arith.mulf %585, %585 : vector<8x121xf32>
    %cst_184 = arith.constant dense<0.000000e+00> : vector<8xf32>
    %589 = vector.multi_reduction <add>, %588, %cst_184 [1] : vector<8x121xf32> to vector<8xf32>
    %590 = vector.shape_cast %589 : vector<8xf32> to vector<8x1xf32>
    %591 = tpu.concatenate %587, %590 in 1 : vector<8x1xf32>, vector<8x1xf32> -> vector<8x2xf32>
    %cst_185 = arith.constant dense<0.000000e+00> : vector<8x2xf32>
    %592 = tpu.matmul %46, %591, %cst_185 {dimension_numbers = #tpu.dot_dimension_numbers<[1], [0], [0], [1], [0, 0, 1, 1], [], []>} : vector<8x8xf32>, vector<8x2xf32>, vector<8x2xf32> -> vector<8x2xf32>
    %593 = vector.extract_strided_slice %592 {offsets = [0, 0], sizes = [8, 1], strides = [1, 1]} : vector<8x2xf32> to vector<8x1xf32>
    %cst_186 = arith.constant 0.00413223123 : f32
    %594 = vector.broadcast %cst_186 : f32 to vector<8x1xf32>
    %595 = arith.mulf %593, %594 : vector<8x1xf32>
    %596 = vector.extract_strided_slice %592 {offsets = [0, 1], sizes = [8, 1], strides = [1, 1]} : vector<8x2xf32> to vector<8x1xf32>
    %cst_187 = arith.constant 0.00413223123 : f32
    %597 = vector.broadcast %cst_187 : f32 to vector<8x1xf32>
    %598 = arith.mulf %596, %597 : vector<8x1xf32>
    %599 = arith.mulf %595, %595 : vector<8x1xf32>
    %600 = arith.subf %598, %599 : vector<8x1xf32>
    %cst_188 = arith.constant 0.000000e+00 : f32
    %601 = vector.broadcast %cst_188 : f32 to vector<8x1xf32>
    %602 = arith.maximumf %600, %601 : vector<8x1xf32>
    %cst_189 = arith.constant 9.99999974E-6 : f32
    %603 = vector.broadcast %cst_189 : f32 to vector<8x1xf32>
    %604 = arith.addf %602, %603 : vector<8x1xf32>
    %605 = math.rsqrt %604 : vector<8x1xf32>
    %606 = vector.broadcast %595 : vector<8x1xf32> to vector<8x121xf32>
    %607 = arith.subf %585, %606 : vector<8x121xf32>
    %608 = arith.mulf %605, %457 : vector<8x1xf32>
    %609 = vector.broadcast %608 : vector<8x1xf32> to vector<8x121xf32>
    %610 = arith.mulf %607, %609 : vector<8x121xf32>
    %611 = vector.broadcast %458 : vector<8x1xf32> to vector<8x121xf32>
    %612 = arith.addf %610, %611 : vector<8x121xf32>
    %cst_190 = arith.constant 3.000000e+00 : f32
    %613 = vector.broadcast %cst_190 : f32 to vector<8x121xf32>
    %614 = arith.addf %612, %613 : vector<8x121xf32>
    %cst_191 = arith.constant 0.000000e+00 : f32
    %cst_192 = arith.constant 6.000000e+00 : f32
    %615 = vector.broadcast %cst_191 : f32 to vector<8x121xf32>
    %616 = arith.maximumf %615, %614 : vector<8x121xf32>
    %617 = vector.broadcast %cst_192 : f32 to vector<8x121xf32>
    %618 = arith.minimumf %617, %616 : vector<8x121xf32>
    %619 = arith.mulf %612, %618 : vector<8x121xf32>
    %cst_193 = arith.constant 0.166666672 : f32
    %620 = vector.broadcast %cst_193 : f32 to vector<8x121xf32>
    %621 = arith.mulf %619, %620 : vector<8x121xf32>
    %cst_194 = arith.constant 0.000000e+00 : f32
    %cst_195 = arith.constant 6.000000e+00 : f32
    %622 = vector.broadcast %cst_194 : f32 to vector<8x121xf32>
    %623 = arith.maximumf %622, %612 : vector<8x121xf32>
    %624 = vector.broadcast %cst_195 : f32 to vector<8x121xf32>
    %625 = arith.minimumf %624, %623 : vector<8x121xf32>
    %cst_196 = arith.constant 0.000000e+00 : f32
    %626 = vector.broadcast %cst_196 : f32 to vector<8x121xf32>
    %627 = arith.minimumf %612, %626 : vector<8x121xf32>
    %cst_197 = arith.constant 0.00999999977 : f32
    %628 = vector.broadcast %cst_197 : f32 to vector<8x121xf32>
    %629 = arith.mulf %628, %627 : vector<8x121xf32>
    %630 = arith.addf %625, %629 : vector<8x121xf32>
    %cst_198 = arith.constant -3.000000e+00 : f32
    %631 = vector.broadcast %cst_198 : f32 to vector<8x121xf32>
    %632 = arith.cmpf oge, %612, %631 : vector<8x121xf32>
    %cst_199 = arith.constant 3.000000e+00 : f32
    %633 = vector.broadcast %cst_199 : f32 to vector<8x121xf32>
    %634 = arith.cmpf ole, %612, %633 : vector<8x121xf32>
    %635 = arith.andi %632, %634 : vector<8x121xi1>
    %636 = arith.select %635, %621, %630 : vector<8x121xi1>, vector<8x121xf32>
    %cst_200 = arith.constant dense<0.000000e+00> : vector<1x121xf32>
    %637 = tpu.matmul %461, %636, %cst_200 {dimension_numbers = #tpu.dot_dimension_numbers<[1], [0], [0], [1], [0, 0, 1, 1], [], []>} : vector<1x8xf32>, vector<8x121xf32>, vector<1x121xf32> -> vector<1x121xf32>
    %638 = arith.negf %637 : vector<1x121xf32>
    %639 = math.exp %638 : vector<1x121xf32>
    %cst_201 = arith.constant 1.000000e+00 : f32
    %640 = vector.broadcast %cst_201 : f32 to vector<1x121xf32>
    %641 = arith.addf %640, %639 : vector<1x121xf32>
    %642 = arith.divf %640, %641 : vector<1x121xf32>
    %cst_202 = arith.constant dense<0.000000e+00> : vector<8xf32>
    %643 = vector.multi_reduction <add>, %636, %cst_202 [1] : vector<8x121xf32> to vector<8xf32>
    %644 = vector.shape_cast %643 : vector<8xf32> to vector<8x1xf32>
    %cst_203 = arith.constant 0.00826446246 : f32
    %645 = vector.broadcast %cst_203 : f32 to vector<8x1xf32>
    %646 = arith.mulf %644, %645 : vector<8x1xf32>
    %cst_204 = arith.constant dense<0.000000e+00> : vector<2x1xf32>
    %647 = tpu.matmul %462, %646, %cst_204 {dimension_numbers = #tpu.dot_dimension_numbers<[1], [0], [0], [1], [0, 0, 1, 1], [], []>} : vector<2x8xf32>, vector<8x1xf32>, vector<2x1xf32> -> vector<2x1xf32>
    %cst_205 = arith.constant 0.000000e+00 : f32
    %648 = vector.broadcast %cst_205 : f32 to vector<2x1xf32>
    %649 = arith.maximumf %647, %648 : vector<2x1xf32>
    %cst_206 = arith.constant dense<0.000000e+00> : vector<8x1xf32>
    %650 = tpu.matmul %463, %649, %cst_206 {dimension_numbers = #tpu.dot_dimension_numbers<[1], [0], [0], [1], [0, 0, 1, 1], [], []>} : vector<8x2xf32>, vector<2x1xf32>, vector<8x1xf32> -> vector<8x1xf32>
    %cst_207 = arith.constant 3.000000e+00 : f32
    %651 = vector.broadcast %cst_207 : f32 to vector<8x1xf32>
    %652 = arith.addf %650, %651 : vector<8x1xf32>
    %cst_208 = arith.constant 0.166666672 : f32
    %653 = vector.broadcast %cst_208 : f32 to vector<8x1xf32>
    %654 = arith.mulf %652, %653 : vector<8x1xf32>
    %cst_209 = arith.constant 0.000000e+00 : f32
    %cst_210 = arith.constant 1.000000e+00 : f32
    %655 = vector.broadcast %cst_209 : f32 to vector<8x1xf32>
    %656 = arith.maximumf %655, %654 : vector<8x1xf32>
    %657 = vector.broadcast %cst_210 : f32 to vector<8x1xf32>
    %658 = arith.minimumf %657, %656 : vector<8x1xf32>
    %659 = vector.broadcast %658 : vector<8x1xf32> to vector<8x121xf32>
    %660 = vector.broadcast %642 : vector<1x121xf32> to vector<8x121xf32>
    %661 = arith.addf %659, %660 : vector<8x121xf32>
    %662 = arith.mulf %636, %661 : vector<8x121xf32>
    %663 = vector.extract_strided_slice %53 {offsets = [16, 0], sizes = [8, 64], strides = [1, 1]} : vector<24x64xf32> to vector<8x64xf32>
    %c232 = arith.constant 232 : index
    %c0_211 = arith.constant 0 : index
    %664 = vector.load %arg2[%c232, %c0_211] : memref<288x16xf32, #tpu.memory_space<vmem>>, vector<8x1xf32>
    %c240 = arith.constant 240 : index
    %c0_212 = arith.constant 0 : index
    %665 = vector.load %arg2[%c240, %c0_212] : memref<288x16xf32, #tpu.memory_space<vmem>>, vector<8x1xf32>
    %c248 = arith.constant 248 : index
    %c0_213 = arith.constant 0 : index
    %666 = vector.load %arg2[%c248, %c0_213] : memref<288x16xf32, #tpu.memory_space<vmem>>, vector<8x16xf32>
    %c256 = arith.constant 256 : index
    %c0_214 = arith.constant 0 : index
    %667 = vector.load %arg2[%c256, %c0_214] : memref<288x16xf32, #tpu.memory_space<vmem>>, vector<8x1xf32>
    %c264 = arith.constant 264 : index
    %c0_215 = arith.constant 0 : index
    %668 = vector.load %arg2[%c264, %c0_215] : memref<288x16xf32, #tpu.memory_space<vmem>>, vector<1x8xf32>
    %c272 = arith.constant 272 : index
    %c0_216 = arith.constant 0 : index
    %669 = vector.load %arg2[%c272, %c0_216] : memref<288x16xf32, #tpu.memory_space<vmem>>, vector<2x8xf32>
    %c280 = arith.constant 280 : index
    %c0_217 = arith.constant 0 : index
    %670 = vector.load %arg2[%c280, %c0_217] : memref<288x16xf32, #tpu.memory_space<vmem>>, vector<8x2xf32>
    %cst_218 = arith.constant dense<0.000000e+00> : vector<8xf32>
    %671 = vector.multi_reduction <add>, %663, %cst_218 [1] : vector<8x64xf32> to vector<8xf32>
    %672 = vector.shape_cast %671 : vector<8xf32> to vector<8x1xf32>
    %673 = arith.mulf %663, %663 : vector<8x64xf32>
    %cst_219 = arith.constant dense<0.000000e+00> : vector<8xf32>
    %674 = vector.multi_reduction <add>, %673, %cst_219 [1] : vector<8x64xf32> to vector<8xf32>
    %675 = vector.shape_cast %674 : vector<8xf32> to vector<8x1xf32>
    %676 = tpu.concatenate %672, %675 in 1 : vector<8x1xf32>, vector<8x1xf32> -> vector<8x2xf32>
    %cst_220 = arith.constant dense<0.000000e+00> : vector<8x2xf32>
    %677 = tpu.matmul %46, %676, %cst_220 {dimension_numbers = #tpu.dot_dimension_numbers<[1], [0], [0], [1], [0, 0, 1, 1], [], []>} : vector<8x8xf32>, vector<8x2xf32>, vector<8x2xf32> -> vector<8x2xf32>
    %678 = vector.extract_strided_slice %677 {offsets = [0, 0], sizes = [8, 1], strides = [1, 1]} : vector<8x2xf32> to vector<8x1xf32>
    %cst_221 = arith.constant 7.812500e-03 : f32
    %679 = vector.broadcast %cst_221 : f32 to vector<8x1xf32>
    %680 = arith.mulf %678, %679 : vector<8x1xf32>
    %681 = vector.extract_strided_slice %677 {offsets = [0, 1], sizes = [8, 1], strides = [1, 1]} : vector<8x2xf32> to vector<8x1xf32>
    %cst_222 = arith.constant 7.812500e-03 : f32
    %682 = vector.broadcast %cst_222 : f32 to vector<8x1xf32>
    %683 = arith.mulf %681, %682 : vector<8x1xf32>
    %684 = arith.mulf %680, %680 : vector<8x1xf32>
    %685 = arith.subf %683, %684 : vector<8x1xf32>
    %cst_223 = arith.constant 0.000000e+00 : f32
    %686 = vector.broadcast %cst_223 : f32 to vector<8x1xf32>
    %687 = arith.maximumf %685, %686 : vector<8x1xf32>
    %cst_224 = arith.constant 9.99999974E-6 : f32
    %688 = vector.broadcast %cst_224 : f32 to vector<8x1xf32>
    %689 = arith.addf %687, %688 : vector<8x1xf32>
    %690 = math.rsqrt %689 : vector<8x1xf32>
    %691 = vector.broadcast %680 : vector<8x1xf32> to vector<8x64xf32>
    %692 = arith.subf %663, %691 : vector<8x64xf32>
    %693 = arith.mulf %690, %664 : vector<8x1xf32>
    %694 = vector.broadcast %693 : vector<8x1xf32> to vector<8x64xf32>
    %695 = arith.mulf %692, %694 : vector<8x64xf32>
    %696 = vector.broadcast %665 : vector<8x1xf32> to vector<8x64xf32>
    %697 = arith.addf %695, %696 : vector<8x64xf32>
    %698 = vector.extract_strided_slice %697 {offsets = [0, 0], sizes = [8, 8], strides = [1, 1]} : vector<8x64xf32> to vector<8x8xf32>
    %c0_i32_225 = arith.constant 0 : i32
    %699 = arith.sitofp %c0_i32_225 : i32 to f32
    %700 = vector.broadcast %699 : f32 to vector<8x3xf32>
    %701 = tpu.concatenate %698, %700 in 1 : vector<8x8xf32>, vector<8x3xf32> -> vector<8x11xf32>
    %702 = vector.extract_strided_slice %697 {offsets = [0, 8], sizes = [8, 8], strides = [1, 1]} : vector<8x64xf32> to vector<8x8xf32>
    %c0_i32_226 = arith.constant 0 : i32
    %703 = arith.sitofp %c0_i32_226 : i32 to f32
    %704 = vector.broadcast %703 : f32 to vector<8x3xf32>
    %705 = tpu.concatenate %702, %704 in 1 : vector<8x8xf32>, vector<8x3xf32> -> vector<8x11xf32>
    %706 = vector.extract_strided_slice %697 {offsets = [0, 16], sizes = [8, 8], strides = [1, 1]} : vector<8x64xf32> to vector<8x8xf32>
    %c0_i32_227 = arith.constant 0 : i32
    %707 = arith.sitofp %c0_i32_227 : i32 to f32
    %708 = vector.broadcast %707 : f32 to vector<8x3xf32>
    %709 = tpu.concatenate %706, %708 in 1 : vector<8x8xf32>, vector<8x3xf32> -> vector<8x11xf32>
    %710 = vector.extract_strided_slice %697 {offsets = [0, 24], sizes = [8, 8], strides = [1, 1]} : vector<8x64xf32> to vector<8x8xf32>
    %c0_i32_228 = arith.constant 0 : i32
    %711 = arith.sitofp %c0_i32_228 : i32 to f32
    %712 = vector.broadcast %711 : f32 to vector<8x3xf32>
    %713 = tpu.concatenate %710, %712 in 1 : vector<8x8xf32>, vector<8x3xf32> -> vector<8x11xf32>
    %714 = vector.extract_strided_slice %697 {offsets = [0, 32], sizes = [8, 8], strides = [1, 1]} : vector<8x64xf32> to vector<8x8xf32>
    %c0_i32_229 = arith.constant 0 : i32
    %715 = arith.sitofp %c0_i32_229 : i32 to f32
    %716 = vector.broadcast %715 : f32 to vector<8x3xf32>
    %717 = tpu.concatenate %714, %716 in 1 : vector<8x8xf32>, vector<8x3xf32> -> vector<8x11xf32>
    %718 = vector.extract_strided_slice %697 {offsets = [0, 40], sizes = [8, 8], strides = [1, 1]} : vector<8x64xf32> to vector<8x8xf32>
    %c0_i32_230 = arith.constant 0 : i32
    %719 = arith.sitofp %c0_i32_230 : i32 to f32
    %720 = vector.broadcast %719 : f32 to vector<8x3xf32>
    %721 = tpu.concatenate %718, %720 in 1 : vector<8x8xf32>, vector<8x3xf32> -> vector<8x11xf32>
    %722 = vector.extract_strided_slice %697 {offsets = [0, 48], sizes = [8, 8], strides = [1, 1]} : vector<8x64xf32> to vector<8x8xf32>
    %c0_i32_231 = arith.constant 0 : i32
    %723 = arith.sitofp %c0_i32_231 : i32 to f32
    %724 = vector.broadcast %723 : f32 to vector<8x3xf32>
    %725 = tpu.concatenate %722, %724 in 1 : vector<8x8xf32>, vector<8x3xf32> -> vector<8x11xf32>
    %726 = vector.extract_strided_slice %697 {offsets = [0, 56], sizes = [8, 8], strides = [1, 1]} : vector<8x64xf32> to vector<8x8xf32>
    %727 = tpu.concatenate %701, %705, %709, %713, %717, %721, %725, %726 in 1 : vector<8x11xf32>, vector<8x11xf32>, vector<8x11xf32>, vector<8x11xf32>, vector<8x11xf32>, vector<8x11xf32>, vector<8x11xf32>, vector<8x8xf32> -> vector<8x85xf32>
    %728 = vector.extract_strided_slice %666 {offsets = [0, 0], sizes = [8, 1], strides = [1, 1]} : vector<8x16xf32> to vector<8x1xf32>
    %729 = vector.broadcast %728 : vector<8x1xf32> to vector<8x85xf32>
    %730 = arith.mulf %727, %729 : vector<8x85xf32>
    %c0_i32_232 = arith.constant 0 : i32
    %731 = arith.sitofp %c0_i32_232 : i32 to f32
    %732 = vector.broadcast %731 : f32 to vector<8x36xf32>
    %733 = tpu.concatenate %730, %732 in 1 : vector<8x85xf32>, vector<8x36xf32> -> vector<8x121xf32>
    %734 = vector.extract_strided_slice %666 {offsets = [0, 1], sizes = [8, 1], strides = [1, 1]} : vector<8x16xf32> to vector<8x1xf32>
    %735 = vector.broadcast %734 : vector<8x1xf32> to vector<8x85xf32>
    %736 = arith.mulf %727, %735 : vector<8x85xf32>
    %c0_i32_233 = arith.constant 0 : i32
    %737 = arith.sitofp %c0_i32_233 : i32 to f32
    %738 = vector.broadcast %737 : f32 to vector<8x1xf32>
    %739 = tpu.concatenate %738, %736 in 1 : vector<8x1xf32>, vector<8x85xf32> -> vector<8x86xf32>
    %740 = vector.broadcast %737 : f32 to vector<8x35xf32>
    %741 = tpu.concatenate %739, %740 in 1 : vector<8x86xf32>, vector<8x35xf32> -> vector<8x121xf32>
    %742 = arith.addf %733, %741 : vector<8x121xf32>
    %743 = vector.extract_strided_slice %666 {offsets = [0, 2], sizes = [8, 1], strides = [1, 1]} : vector<8x16xf32> to vector<8x1xf32>
    %744 = vector.broadcast %743 : vector<8x1xf32> to vector<8x85xf32>
    %745 = arith.mulf %727, %744 : vector<8x85xf32>
    %c0_i32_234 = arith.constant 0 : i32
    %746 = arith.sitofp %c0_i32_234 : i32 to f32
    %747 = vector.broadcast %746 : f32 to vector<8x2xf32>
    %748 = tpu.concatenate %747, %745 in 1 : vector<8x2xf32>, vector<8x85xf32> -> vector<8x87xf32>
    %749 = vector.broadcast %746 : f32 to vector<8x34xf32>
    %750 = tpu.concatenate %748, %749 in 1 : vector<8x87xf32>, vector<8x34xf32> -> vector<8x121xf32>
    %751 = arith.addf %742, %750 : vector<8x121xf32>
    %752 = vector.extract_strided_slice %666 {offsets = [0, 3], sizes = [8, 1], strides = [1, 1]} : vector<8x16xf32> to vector<8x1xf32>
    %753 = vector.broadcast %752 : vector<8x1xf32> to vector<8x85xf32>
    %754 = arith.mulf %727, %753 : vector<8x85xf32>
    %c0_i32_235 = arith.constant 0 : i32
    %755 = arith.sitofp %c0_i32_235 : i32 to f32
    %756 = vector.broadcast %755 : f32 to vector<8x3xf32>
    %757 = tpu.concatenate %756, %754 in 1 : vector<8x3xf32>, vector<8x85xf32> -> vector<8x88xf32>
    %758 = vector.broadcast %755 : f32 to vector<8x33xf32>
    %759 = tpu.concatenate %757, %758 in 1 : vector<8x88xf32>, vector<8x33xf32> -> vector<8x121xf32>
    %760 = arith.addf %751, %759 : vector<8x121xf32>
    %761 = vector.extract_strided_slice %666 {offsets = [0, 4], sizes = [8, 1], strides = [1, 1]} : vector<8x16xf32> to vector<8x1xf32>
    %762 = vector.broadcast %761 : vector<8x1xf32> to vector<8x85xf32>
    %763 = arith.mulf %727, %762 : vector<8x85xf32>
    %c0_i32_236 = arith.constant 0 : i32
    %764 = arith.sitofp %c0_i32_236 : i32 to f32
    %765 = vector.broadcast %764 : f32 to vector<8x11xf32>
    %766 = tpu.concatenate %765, %763 in 1 : vector<8x11xf32>, vector<8x85xf32> -> vector<8x96xf32>
    %767 = vector.broadcast %764 : f32 to vector<8x25xf32>
    %768 = tpu.concatenate %766, %767 in 1 : vector<8x96xf32>, vector<8x25xf32> -> vector<8x121xf32>
    %769 = arith.addf %760, %768 : vector<8x121xf32>
    %770 = vector.extract_strided_slice %666 {offsets = [0, 5], sizes = [8, 1], strides = [1, 1]} : vector<8x16xf32> to vector<8x1xf32>
    %771 = vector.broadcast %770 : vector<8x1xf32> to vector<8x85xf32>
    %772 = arith.mulf %727, %771 : vector<8x85xf32>
    %c0_i32_237 = arith.constant 0 : i32
    %773 = arith.sitofp %c0_i32_237 : i32 to f32
    %774 = vector.broadcast %773 : f32 to vector<8x12xf32>
    %775 = tpu.concatenate %774, %772 in 1 : vector<8x12xf32>, vector<8x85xf32> -> vector<8x97xf32>
    %776 = vector.broadcast %773 : f32 to vector<8x24xf32>
    %777 = tpu.concatenate %775, %776 in 1 : vector<8x97xf32>, vector<8x24xf32> -> vector<8x121xf32>
    %778 = arith.addf %769, %777 : vector<8x121xf32>
    %779 = vector.extract_strided_slice %666 {offsets = [0, 6], sizes = [8, 1], strides = [1, 1]} : vector<8x16xf32> to vector<8x1xf32>
    %780 = vector.broadcast %779 : vector<8x1xf32> to vector<8x85xf32>
    %781 = arith.mulf %727, %780 : vector<8x85xf32>
    %c0_i32_238 = arith.constant 0 : i32
    %782 = arith.sitofp %c0_i32_238 : i32 to f32
    %783 = vector.broadcast %782 : f32 to vector<8x13xf32>
    %784 = tpu.concatenate %783, %781 in 1 : vector<8x13xf32>, vector<8x85xf32> -> vector<8x98xf32>
    %785 = vector.broadcast %782 : f32 to vector<8x23xf32>
    %786 = tpu.concatenate %784, %785 in 1 : vector<8x98xf32>, vector<8x23xf32> -> vector<8x121xf32>
    %787 = arith.addf %778, %786 : vector<8x121xf32>
    %788 = vector.extract_strided_slice %666 {offsets = [0, 7], sizes = [8, 1], strides = [1, 1]} : vector<8x16xf32> to vector<8x1xf32>
    %789 = vector.broadcast %788 : vector<8x1xf32> to vector<8x85xf32>
    %790 = arith.mulf %727, %789 : vector<8x85xf32>
    %c0_i32_239 = arith.constant 0 : i32
    %791 = arith.sitofp %c0_i32_239 : i32 to f32
    %792 = vector.broadcast %791 : f32 to vector<8x14xf32>
    %793 = tpu.concatenate %792, %790 in 1 : vector<8x14xf32>, vector<8x85xf32> -> vector<8x99xf32>
    %794 = vector.broadcast %791 : f32 to vector<8x22xf32>
    %795 = tpu.concatenate %793, %794 in 1 : vector<8x99xf32>, vector<8x22xf32> -> vector<8x121xf32>
    %796 = arith.addf %787, %795 : vector<8x121xf32>
    %797 = vector.extract_strided_slice %666 {offsets = [0, 8], sizes = [8, 1], strides = [1, 1]} : vector<8x16xf32> to vector<8x1xf32>
    %798 = vector.broadcast %797 : vector<8x1xf32> to vector<8x85xf32>
    %799 = arith.mulf %727, %798 : vector<8x85xf32>
    %c0_i32_240 = arith.constant 0 : i32
    %800 = arith.sitofp %c0_i32_240 : i32 to f32
    %801 = vector.broadcast %800 : f32 to vector<8x22xf32>
    %802 = tpu.concatenate %801, %799 in 1 : vector<8x22xf32>, vector<8x85xf32> -> vector<8x107xf32>
    %803 = vector.broadcast %800 : f32 to vector<8x14xf32>
    %804 = tpu.concatenate %802, %803 in 1 : vector<8x107xf32>, vector<8x14xf32> -> vector<8x121xf32>
    %805 = arith.addf %796, %804 : vector<8x121xf32>
    %806 = vector.extract_strided_slice %666 {offsets = [0, 9], sizes = [8, 1], strides = [1, 1]} : vector<8x16xf32> to vector<8x1xf32>
    %807 = vector.broadcast %806 : vector<8x1xf32> to vector<8x85xf32>
    %808 = arith.mulf %727, %807 : vector<8x85xf32>
    %c0_i32_241 = arith.constant 0 : i32
    %809 = arith.sitofp %c0_i32_241 : i32 to f32
    %810 = vector.broadcast %809 : f32 to vector<8x23xf32>
    %811 = tpu.concatenate %810, %808 in 1 : vector<8x23xf32>, vector<8x85xf32> -> vector<8x108xf32>
    %812 = vector.broadcast %809 : f32 to vector<8x13xf32>
    %813 = tpu.concatenate %811, %812 in 1 : vector<8x108xf32>, vector<8x13xf32> -> vector<8x121xf32>
    %814 = arith.addf %805, %813 : vector<8x121xf32>
    %815 = vector.extract_strided_slice %666 {offsets = [0, 10], sizes = [8, 1], strides = [1, 1]} : vector<8x16xf32> to vector<8x1xf32>
    %816 = vector.broadcast %815 : vector<8x1xf32> to vector<8x85xf32>
    %817 = arith.mulf %727, %816 : vector<8x85xf32>
    %c0_i32_242 = arith.constant 0 : i32
    %818 = arith.sitofp %c0_i32_242 : i32 to f32
    %819 = vector.broadcast %818 : f32 to vector<8x24xf32>
    %820 = tpu.concatenate %819, %817 in 1 : vector<8x24xf32>, vector<8x85xf32> -> vector<8x109xf32>
    %821 = vector.broadcast %818 : f32 to vector<8x12xf32>
    %822 = tpu.concatenate %820, %821 in 1 : vector<8x109xf32>, vector<8x12xf32> -> vector<8x121xf32>
    %823 = arith.addf %814, %822 : vector<8x121xf32>
    %824 = vector.extract_strided_slice %666 {offsets = [0, 11], sizes = [8, 1], strides = [1, 1]} : vector<8x16xf32> to vector<8x1xf32>
    %825 = vector.broadcast %824 : vector<8x1xf32> to vector<8x85xf32>
    %826 = arith.mulf %727, %825 : vector<8x85xf32>
    %c0_i32_243 = arith.constant 0 : i32
    %827 = arith.sitofp %c0_i32_243 : i32 to f32
    %828 = vector.broadcast %827 : f32 to vector<8x25xf32>
    %829 = tpu.concatenate %828, %826 in 1 : vector<8x25xf32>, vector<8x85xf32> -> vector<8x110xf32>
    %830 = vector.broadcast %827 : f32 to vector<8x11xf32>
    %831 = tpu.concatenate %829, %830 in 1 : vector<8x110xf32>, vector<8x11xf32> -> vector<8x121xf32>
    %832 = arith.addf %823, %831 : vector<8x121xf32>
    %833 = vector.extract_strided_slice %666 {offsets = [0, 12], sizes = [8, 1], strides = [1, 1]} : vector<8x16xf32> to vector<8x1xf32>
    %834 = vector.broadcast %833 : vector<8x1xf32> to vector<8x85xf32>
    %835 = arith.mulf %727, %834 : vector<8x85xf32>
    %c0_i32_244 = arith.constant 0 : i32
    %836 = arith.sitofp %c0_i32_244 : i32 to f32
    %837 = vector.broadcast %836 : f32 to vector<8x33xf32>
    %838 = tpu.concatenate %837, %835 in 1 : vector<8x33xf32>, vector<8x85xf32> -> vector<8x118xf32>
    %839 = vector.broadcast %836 : f32 to vector<8x3xf32>
    %840 = tpu.concatenate %838, %839 in 1 : vector<8x118xf32>, vector<8x3xf32> -> vector<8x121xf32>
    %841 = arith.addf %832, %840 : vector<8x121xf32>
    %842 = vector.extract_strided_slice %666 {offsets = [0, 13], sizes = [8, 1], strides = [1, 1]} : vector<8x16xf32> to vector<8x1xf32>
    %843 = vector.broadcast %842 : vector<8x1xf32> to vector<8x85xf32>
    %844 = arith.mulf %727, %843 : vector<8x85xf32>
    %c0_i32_245 = arith.constant 0 : i32
    %845 = arith.sitofp %c0_i32_245 : i32 to f32
    %846 = vector.broadcast %845 : f32 to vector<8x34xf32>
    %847 = tpu.concatenate %846, %844 in 1 : vector<8x34xf32>, vector<8x85xf32> -> vector<8x119xf32>
    %848 = vector.broadcast %845 : f32 to vector<8x2xf32>
    %849 = tpu.concatenate %847, %848 in 1 : vector<8x119xf32>, vector<8x2xf32> -> vector<8x121xf32>
    %850 = arith.addf %841, %849 : vector<8x121xf32>
    %851 = vector.extract_strided_slice %666 {offsets = [0, 14], sizes = [8, 1], strides = [1, 1]} : vector<8x16xf32> to vector<8x1xf32>
    %852 = vector.broadcast %851 : vector<8x1xf32> to vector<8x85xf32>
    %853 = arith.mulf %727, %852 : vector<8x85xf32>
    %c0_i32_246 = arith.constant 0 : i32
    %854 = arith.sitofp %c0_i32_246 : i32 to f32
    %855 = vector.broadcast %854 : f32 to vector<8x35xf32>
    %856 = tpu.concatenate %855, %853 in 1 : vector<8x35xf32>, vector<8x85xf32> -> vector<8x120xf32>
    %857 = vector.broadcast %854 : f32 to vector<8x1xf32>
    %858 = tpu.concatenate %856, %857 in 1 : vector<8x120xf32>, vector<8x1xf32> -> vector<8x121xf32>
    %859 = arith.addf %850, %858 : vector<8x121xf32>
    %860 = vector.extract_strided_slice %666 {offsets = [0, 15], sizes = [8, 1], strides = [1, 1]} : vector<8x16xf32> to vector<8x1xf32>
    %861 = vector.broadcast %860 : vector<8x1xf32> to vector<8x85xf32>
    %862 = arith.mulf %727, %861 : vector<8x85xf32>
    %c0_i32_247 = arith.constant 0 : i32
    %863 = arith.sitofp %c0_i32_247 : i32 to f32
    %864 = vector.broadcast %863 : f32 to vector<8x36xf32>
    %865 = tpu.concatenate %864, %862 in 1 : vector<8x36xf32>, vector<8x85xf32> -> vector<8x121xf32>
    %866 = arith.addf %859, %865 : vector<8x121xf32>
    %867 = vector.broadcast %667 : vector<8x1xf32> to vector<8x121xf32>
    %868 = arith.addf %866, %867 : vector<8x121xf32>
    %cst_248 = arith.constant 3.000000e+00 : f32
    %869 = vector.broadcast %cst_248 : f32 to vector<8x121xf32>
    %870 = arith.addf %868, %869 : vector<8x121xf32>
    %cst_249 = arith.constant 0.000000e+00 : f32
    %cst_250 = arith.constant 6.000000e+00 : f32
    %871 = vector.broadcast %cst_249 : f32 to vector<8x121xf32>
    %872 = arith.maximumf %871, %870 : vector<8x121xf32>
    %873 = vector.broadcast %cst_250 : f32 to vector<8x121xf32>
    %874 = arith.minimumf %873, %872 : vector<8x121xf32>
    %875 = arith.mulf %868, %874 : vector<8x121xf32>
    %cst_251 = arith.constant 0.166666672 : f32
    %876 = vector.broadcast %cst_251 : f32 to vector<8x121xf32>
    %877 = arith.mulf %875, %876 : vector<8x121xf32>
    %cst_252 = arith.constant 0.000000e+00 : f32
    %cst_253 = arith.constant 6.000000e+00 : f32
    %878 = vector.broadcast %cst_252 : f32 to vector<8x121xf32>
    %879 = arith.maximumf %878, %868 : vector<8x121xf32>
    %880 = vector.broadcast %cst_253 : f32 to vector<8x121xf32>
    %881 = arith.minimumf %880, %879 : vector<8x121xf32>
    %cst_254 = arith.constant 0.000000e+00 : f32
    %882 = vector.broadcast %cst_254 : f32 to vector<8x121xf32>
    %883 = arith.minimumf %868, %882 : vector<8x121xf32>
    %cst_255 = arith.constant 0.00999999977 : f32
    %884 = vector.broadcast %cst_255 : f32 to vector<8x121xf32>
    %885 = arith.mulf %884, %883 : vector<8x121xf32>
    %886 = arith.addf %881, %885 : vector<8x121xf32>
    %cst_256 = arith.constant -3.000000e+00 : f32
    %887 = vector.broadcast %cst_256 : f32 to vector<8x121xf32>
    %888 = arith.cmpf oge, %868, %887 : vector<8x121xf32>
    %cst_257 = arith.constant 3.000000e+00 : f32
    %889 = vector.broadcast %cst_257 : f32 to vector<8x121xf32>
    %890 = arith.cmpf ole, %868, %889 : vector<8x121xf32>
    %891 = arith.andi %888, %890 : vector<8x121xi1>
    %892 = arith.select %891, %877, %886 : vector<8x121xi1>, vector<8x121xf32>
    %cst_258 = arith.constant dense<0.000000e+00> : vector<8xf32>
    %893 = vector.multi_reduction <add>, %892, %cst_258 [1] : vector<8x121xf32> to vector<8xf32>
    %894 = vector.shape_cast %893 : vector<8xf32> to vector<8x1xf32>
    %895 = arith.mulf %892, %892 : vector<8x121xf32>
    %cst_259 = arith.constant dense<0.000000e+00> : vector<8xf32>
    %896 = vector.multi_reduction <add>, %895, %cst_259 [1] : vector<8x121xf32> to vector<8xf32>
    %897 = vector.shape_cast %896 : vector<8xf32> to vector<8x1xf32>
    %898 = tpu.concatenate %894, %897 in 1 : vector<8x1xf32>, vector<8x1xf32> -> vector<8x2xf32>
    %cst_260 = arith.constant dense<0.000000e+00> : vector<8x2xf32>
    %899 = tpu.matmul %46, %898, %cst_260 {dimension_numbers = #tpu.dot_dimension_numbers<[1], [0], [0], [1], [0, 0, 1, 1], [], []>} : vector<8x8xf32>, vector<8x2xf32>, vector<8x2xf32> -> vector<8x2xf32>
    %900 = vector.extract_strided_slice %899 {offsets = [0, 0], sizes = [8, 1], strides = [1, 1]} : vector<8x2xf32> to vector<8x1xf32>
    %cst_261 = arith.constant 0.00413223123 : f32
    %901 = vector.broadcast %cst_261 : f32 to vector<8x1xf32>
    %902 = arith.mulf %900, %901 : vector<8x1xf32>
    %903 = vector.extract_strided_slice %899 {offsets = [0, 1], sizes = [8, 1], strides = [1, 1]} : vector<8x2xf32> to vector<8x1xf32>
    %cst_262 = arith.constant 0.00413223123 : f32
    %904 = vector.broadcast %cst_262 : f32 to vector<8x1xf32>
    %905 = arith.mulf %903, %904 : vector<8x1xf32>
    %906 = arith.mulf %902, %902 : vector<8x1xf32>
    %907 = arith.subf %905, %906 : vector<8x1xf32>
    %cst_263 = arith.constant 0.000000e+00 : f32
    %908 = vector.broadcast %cst_263 : f32 to vector<8x1xf32>
    %909 = arith.maximumf %907, %908 : vector<8x1xf32>
    %cst_264 = arith.constant 9.99999974E-6 : f32
    %910 = vector.broadcast %cst_264 : f32 to vector<8x1xf32>
    %911 = arith.addf %909, %910 : vector<8x1xf32>
    %912 = math.rsqrt %911 : vector<8x1xf32>
    %913 = vector.broadcast %902 : vector<8x1xf32> to vector<8x121xf32>
    %914 = arith.subf %892, %913 : vector<8x121xf32>
    %915 = arith.mulf %912, %664 : vector<8x1xf32>
    %916 = vector.broadcast %915 : vector<8x1xf32> to vector<8x121xf32>
    %917 = arith.mulf %914, %916 : vector<8x121xf32>
    %918 = vector.broadcast %665 : vector<8x1xf32> to vector<8x121xf32>
    %919 = arith.addf %917, %918 : vector<8x121xf32>
    %cst_265 = arith.constant 3.000000e+00 : f32
    %920 = vector.broadcast %cst_265 : f32 to vector<8x121xf32>
    %921 = arith.addf %919, %920 : vector<8x121xf32>
    %cst_266 = arith.constant 0.000000e+00 : f32
    %cst_267 = arith.constant 6.000000e+00 : f32
    %922 = vector.broadcast %cst_266 : f32 to vector<8x121xf32>
    %923 = arith.maximumf %922, %921 : vector<8x121xf32>
    %924 = vector.broadcast %cst_267 : f32 to vector<8x121xf32>
    %925 = arith.minimumf %924, %923 : vector<8x121xf32>
    %926 = arith.mulf %919, %925 : vector<8x121xf32>
    %cst_268 = arith.constant 0.166666672 : f32
    %927 = vector.broadcast %cst_268 : f32 to vector<8x121xf32>
    %928 = arith.mulf %926, %927 : vector<8x121xf32>
    %cst_269 = arith.constant 0.000000e+00 : f32
    %cst_270 = arith.constant 6.000000e+00 : f32
    %929 = vector.broadcast %cst_269 : f32 to vector<8x121xf32>
    %930 = arith.maximumf %929, %919 : vector<8x121xf32>
    %931 = vector.broadcast %cst_270 : f32 to vector<8x121xf32>
    %932 = arith.minimumf %931, %930 : vector<8x121xf32>
    %cst_271 = arith.constant 0.000000e+00 : f32
    %933 = vector.broadcast %cst_271 : f32 to vector<8x121xf32>
    %934 = arith.minimumf %919, %933 : vector<8x121xf32>
    %cst_272 = arith.constant 0.00999999977 : f32
    %935 = vector.broadcast %cst_272 : f32 to vector<8x121xf32>
    %936 = arith.mulf %935, %934 : vector<8x121xf32>
    %937 = arith.addf %932, %936 : vector<8x121xf32>
    %cst_273 = arith.constant -3.000000e+00 : f32
    %938 = vector.broadcast %cst_273 : f32 to vector<8x121xf32>
    %939 = arith.cmpf oge, %919, %938 : vector<8x121xf32>
    %cst_274 = arith.constant 3.000000e+00 : f32
    %940 = vector.broadcast %cst_274 : f32 to vector<8x121xf32>
    %941 = arith.cmpf ole, %919, %940 : vector<8x121xf32>
    %942 = arith.andi %939, %941 : vector<8x121xi1>
    %943 = arith.select %942, %928, %937 : vector<8x121xi1>, vector<8x121xf32>
    %cst_275 = arith.constant dense<0.000000e+00> : vector<1x121xf32>
    %944 = tpu.matmul %668, %943, %cst_275 {dimension_numbers = #tpu.dot_dimension_numbers<[1], [0], [0], [1], [0, 0, 1, 1], [], []>} : vector<1x8xf32>, vector<8x121xf32>, vector<1x121xf32> -> vector<1x121xf32>
    %945 = arith.negf %944 : vector<1x121xf32>
    %946 = math.exp %945 : vector<1x121xf32>
    %cst_276 = arith.constant 1.000000e+00 : f32
    %947 = vector.broadcast %cst_276 : f32 to vector<1x121xf32>
    %948 = arith.addf %947, %946 : vector<1x121xf32>
    %949 = arith.divf %947, %948 : vector<1x121xf32>
    %cst_277 = arith.constant dense<0.000000e+00> : vector<8xf32>
    %950 = vector.multi_reduction <add>, %943, %cst_277 [1] : vector<8x121xf32> to vector<8xf32>
    %951 = vector.shape_cast %950 : vector<8xf32> to vector<8x1xf32>
    %cst_278 = arith.constant 0.00826446246 : f32
    %952 = vector.broadcast %cst_278 : f32 to vector<8x1xf32>
    %953 = arith.mulf %951, %952 : vector<8x1xf32>
    %cst_279 = arith.constant dense<0.000000e+00> : vector<2x1xf32>
    %954 = tpu.matmul %669, %953, %cst_279 {dimension_numbers = #tpu.dot_dimension_numbers<[1], [0], [0], [1], [0, 0, 1, 1], [], []>} : vector<2x8xf32>, vector<8x1xf32>, vector<2x1xf32> -> vector<2x1xf32>
    %cst_280 = arith.constant 0.000000e+00 : f32
    %955 = vector.broadcast %cst_280 : f32 to vector<2x1xf32>
    %956 = arith.maximumf %954, %955 : vector<2x1xf32>
    %cst_281 = arith.constant dense<0.000000e+00> : vector<8x1xf32>
    %957 = tpu.matmul %670, %956, %cst_281 {dimension_numbers = #tpu.dot_dimension_numbers<[1], [0], [0], [1], [0, 0, 1, 1], [], []>} : vector<8x2xf32>, vector<2x1xf32>, vector<8x1xf32> -> vector<8x1xf32>
    %cst_282 = arith.constant 3.000000e+00 : f32
    %958 = vector.broadcast %cst_282 : f32 to vector<8x1xf32>
    %959 = arith.addf %957, %958 : vector<8x1xf32>
    %cst_283 = arith.constant 0.166666672 : f32
    %960 = vector.broadcast %cst_283 : f32 to vector<8x1xf32>
    %961 = arith.mulf %959, %960 : vector<8x1xf32>
    %cst_284 = arith.constant 0.000000e+00 : f32
    %cst_285 = arith.constant 1.000000e+00 : f32
    %962 = vector.broadcast %cst_284 : f32 to vector<8x1xf32>
    %963 = arith.maximumf %962, %961 : vector<8x1xf32>
    %964 = vector.broadcast %cst_285 : f32 to vector<8x1xf32>
    %965 = arith.minimumf %964, %963 : vector<8x1xf32>
    %966 = vector.broadcast %965 : vector<8x1xf32> to vector<8x121xf32>
    %967 = vector.broadcast %949 : vector<1x121xf32> to vector<8x121xf32>
    %968 = arith.addf %966, %967 : vector<8x121xf32>
    %969 = arith.mulf %943, %968 : vector<8x121xf32>
    %970 = tpu.concatenate %252, %662, %969 in 0 : vector<8x121xf32>, vector<8x121xf32>, vector<8x121xf32> -> vector<24x121xf32>
    %c0_i32_286 = arith.constant 0 : i32
    %971 = arith.sitofp %c0_i32_286 : i32 to f32
    %972 = vector.broadcast %971 : f32 to vector<24x7xf32>
    %973 = tpu.concatenate %970, %972 in 1 : vector<24x121xf32>, vector<24x7xf32> -> vector<24x128xf32>
    %c0_287 = arith.constant 0 : index
    %c0_288 = arith.constant 0 : index
    %c0_289 = arith.constant 0 : index
    %974 = vector.load %arg3[%c0_287, %c0_288, %c0_289] : memref<1x24x128xf32, #tpu.memory_space<vmem>>, vector<1x24x128xf32>
    %975 = vector.shape_cast %974 : vector<1x24x128xf32> to vector<24x128xf32>
    %976 = vector.shape_cast %973 : vector<24x128xf32> to vector<1x24x128xf32>
    tpu.vector_store %arg3[%c0_287, %c0_288, %c0_289], %976 {strides = array<i32>} : memref<1x24x128xf32, #tpu.memory_space<vmem>>, vector<1x24x128xf32>,
    return
  }
  func.func @transform_0(%arg0: i32) -> (i32, i32, i32) {
    %c0_i32 = arith.constant 0 : i32
    %c0_i32_0 = arith.constant 0 : i32
    %c0_i32_1 = arith.constant 0 : i32
    return %arg0, %c0_i32, %c0_i32_0 : i32, i32, i32
  }
  func.func @transform_1(%arg0: i32) -> (i32, i32) {
    %c0_i32 = arith.constant 0 : i32
    %c0_i32_0 = arith.constant 0 : i32
    %c0_i32_1 = arith.constant 0 : i32
    return %c0_i32, %c0_i32_0 : i32, i32
  }
  func.func @transform_2(%arg0: i32) -> (i32, i32, i32) {
    %c0_i32 = arith.constant 0 : i32
    %c0_i32_0 = arith.constant 0 : i32
    %c0_i32_1 = arith.constant 0 : i32
    return %arg0, %c0_i32, %c0_i32_0 : i32, i32, i32
  }
}

</mosaic_0001>

<bundles_post_ra>
// kernel: tpu_custom_call.1
= control target key start
LH: loop header
LB: loop body
LE: loop exit
PB: predicated region body
PF: predicated region fallthrough
CT: control target
= control target key end

     0   :  { %7 = vsyncpa [#allocation3], 0  ;;  %s3104_s0 = inlined_call_operand.vmem [shape: f32[2,6,64], index: 0, kind: input, shape index: {}]   ;;  %s3105_s1 = inlined_call_operand.vmem [shape: f32[288,16], index: 1, kind: input, shape index: {}]   ;;  %s3106_s2 = inlined_call_operand.hbm [shape: f32[2,24,128], index: 2, kind: output, shape index: {}]  }
   0x1   :  { %9 = vsyncpa [#allocation3 + $0x1], 0  ;;  %s2493_s9 = smov 0   ;;  %s2495_s10 = smov 0  }
   0x2   :  { %s2497_s11 = smov 0   ;;  %s2499_s12 = smov 0  }
   0x3 LB: > { %s2514_s13 = sadd.s32 4294967295, %s2417_s12   ;;  %s2133_s14 = sadd.s32 4294967294, %s2417_s12   ;;  %s2417_s12 = sphi %s2499_s12, %s3154_s12   ;;  %s2413_s11 = sphi %s2497_s11, %s3153_s11   ;;  %s2409_s10 = sphi %s2495_s10, %s3152_s10   ;;  %s2405_s9 = sphi %s2493_s9, %s3151_s9  }
   0x4   : > { %s2518_s15 = sadd.s32 1, %s2417_s12   ;;  %s69_s16 = sadd.s32 1, %s2413_s11 }
   0x5   : > { %s66_s17 = ssub.s32 %s2417_s12, %s2518_s15  ;;  %p79_p0 = scmp.ne.s32.totalorder %s2413_s11, %s2409_s10 }
   0x6   : > { %p67_p1 = scmp.eq.s32.totalorder %s66_s17, 0  ;;  %p80_p2 = scmp.eq.s32.totalorder %s2514_s13, 1 }
   0x7   : > { %p85_p3 = scmp.ne.s32.totalorder %s2409_s10, %s2405_s9  ;;  %p86_p4 = scmp.eq.s32.totalorder %s2133_s14, 1 }
   0x8   : > { %s2529_s18 = scalar_select %p67_p1, %s2413_s11, %s69_s16  }
   0x9   : > { %p2531_p5 = por %p80_p2, %p79_p0  ;;  %p2535_p6 = por %p86_p4, %p85_p3 }
   0xa   : > { %p2136_p7 = scmp.ge.s32.totalorder %s2417_s12, 1  ;;  %p114_p8 = scmp.lt.s32.totalorder %s2417_s12, 3 }
   0xc   : > { %p115_p9 = pnand %p2136_p7, %p114_p8 }
   0xd   : > { %p135_p10 = scmp.lt.s32.totalorder (!%p115_p9), %s2514_s13, 1  ;;  %s2420_s4 = smov (!%p115_p9), 1  }
   0xe   : > { %118 = sbr.rel (%p115_p9) target bundleno = 6314 (0x18aa), region = 28  ;;  %s2423_s7 = smov (!%p115_p9), 112  }
   0xf   : > { %s2424_s8 = smov (!%p115_p9), 120   ;;  %s3114_s14 = smov (!%p115_p9), 96  }
  0x10   : > { %s2426_s16 = smov (!%p115_p9), 104   ;;  %s3115_s17 = smov (!%p115_p9), 80  }
  0x11   : > { %s2428_s21 = smov (!%p115_p9), 88   ;;  %s2429_s22 = smov (!%p115_p9), 11  }
  0x12   : > { %s2435_s28 = smov (!%p115_p9), 44   ;;  %s3113_s29 = smov (!%p115_p9), 21  }
  0x13   : > { %v224_v0 = vld [vmem:[%s3105_s1 + $0x18] sm:$0xff]  ;;  %v2419_v1 = vmov 0   ;;  %s136_s23 = scalar_select %p135_p10, %s2514_s13, 1  ;;  %vm252_vm0 = vcmask 1045504   ;;  %v221_v2 = vld [vmem:[%s3105_s1] sm:$0xff]  ;;  %vm242_vm1 = vcmask 48128   ;;  %v139_v10 = vlaneseq }
  0x14   : > { %2275 = vset.pattern.permute.xlu0 %v2419_v1  ;;  %2276 = vset.pattern.permute.xlu2 %v2419_v1  ;;  %vm3117_vm2 = vcmask 523264   ;;  %v282_v47 = vld [vmem:[%s3105_s1 + $0x40] sm:$0xff]  ;;  %s2437_s30 = smov 66   ;;  %s3111_s3 = smov 36  }
  0x15   : > { %229 = vperm.xlu0 %2275, %v224_v0   ;;  %s2137_s24 = sshll.u32 %s136_s23, 3  ;;  %v2562_v11 = vshrl.u32 %v139_v10, 7  ;;  %v2564_v12 = vand.u32 127, %v139_v10  ;;  %349 = vrot.lane.b32.xlu2 %v282_v47, %s2420_s4  ;;  %v2421_v0 = vmov 0.0   ;;  %s2430_s23 = smov 33  }
  0x16   : > { %s138_s27 = scalar_lea.vmem %s3104_s0, %s2137_s24  ;;  %s2432_s24 = smov 55  }
  0x17   : > { %v220_v3 = vld [vmem:[%s138_s27] sm:$0x3f]  ;;  %v147_v13 = vand.u32 65535, %v2562_v11  ;;  %v184_v14 = vand.u32 65535, %v2564_v12  ;;  %v148_v15 = vshrl.u32 %v2562_v11, 16  ;;  %v185_v17 = vshrl.u32 %v2564_v12, 16 }
  0x18   : > { %2139 = vmatpush.msk.msra.mxu0 %vm252_vm0, %v220_v3  ;;  %v178_v56 = vadd.s32 3, %v2562_v11  ;;  %v215_v57 = vadd.s32 3, %v2564_v12  ;;  %vm143_vm13 = vcmp.lt.s32.totalorder %v2562_v11, 6  ;;  %vm180_vm14 = vcmp.lt.s32.totalorder %v2564_v12, 6  ;;  %s2434_s27 = smov 22   ;;  %s3112_s5 = smov 3  }
  0x19   : > { %2140 = vmatmul.msk.f32.vlgmr.msra.gmra.mxu0 %vm242_vm1, %v221_v2  ;;  %v151_v16 = vmul.u32 43690, %v147_v13  ;;  %v188_v18 = vmul.u32 43690, %v184_v14  ;;  %v150_v19 = vmul.u32 43691, %v147_v13  ;;  %v152_v20 = vmul.u32 43691, %v148_v15  ;;  %s2440_s6 = smov 20   ;;  %s2441_s25 = smov 10  }
  0x1a   : > { %v187_v22 = vmul.u32 43691, %v184_v14  ;;  %v189_v23 = vmul.u32 43691, %v185_v17  ;;  %v153_v29 = vmul.u32 43690, %v148_v15  ;;  %v190_v31 = vmul.u32 43690, %v185_v17  ;;  %s2443_s26 = smov 30  }
  0x1b   : > { %v154_v21 = vshll.u32 %v151_v16, 16  ;;  %v191_v24 = vshll.u32 %v188_v18, 16  ;;  %v156_v25 = vshll.u32 %v152_v20, 16  ;;  %v155_v37 = vshrl.u32 %v151_v16, 16 }
  0x1c   : > { %v193_v27 = vshll.u32 %v189_v23, 16  ;;  %v192_v39 = vshrl.u32 %v188_v18, 16  ;;  %v157_v41 = vshrl.u32 %v152_v20, 16  ;;  %v194_v43 = vshrl.u32 %v189_v23, 16 }
  0x1d   : > { %vm158_vm3 = vc.u32 %v150_v19, %v154_v21  ;;  %v160_v26 = vadd.s32 %v154_v21, %v150_v19  ;;  %vm195_vm4 = vc.u32 %v187_v22, %v191_v24  ;;  %v197_v28 = vadd.s32 %v191_v24, %v187_v22  ;;  %v283_v22 = vld [vmem:[%s3105_s1 + $0x48] sm:$0xff] }
  0x1e   : > { %v159_v30 = vsel %vm158_vm3, 1, %v2419_v1  ;;  %v196_v32 = vsel %vm195_vm4, 1, %v2419_v1  ;;  %vm3125_vm0 = vcmask 7168   ;;  %vm299_vm3 = vcmask 64512  }
  0x1f   : > { %vm162_vm5 = vc.u32 %v160_v26, %v156_v25  ;;  %vm199_vm6 = vc.u32 %v197_v28, %v193_v27  ;;  %v161_v33 = vadd.s32 %v159_v30, %v153_v29  ;;  %v198_v35 = vadd.s32 %v196_v32, %v190_v31 }
  0x20   : > { %v163_v34 = vsel %vm162_vm5, 1, %v2419_v1  ;;  %v200_v36 = vsel %vm199_vm6, 1, %v2419_v1  ;;  %v2431_v32 = vmov 2  }
  0x21   : > { %v165_v38 = vadd.s32 %v163_v34, %v161_v33  ;;  %v202_v40 = vadd.s32 %v200_v36, %v198_v35  ;;  %2280 = vset.pattern.permute.xlu0 %v2431_v32  ;;  %v2433_v35 = vmov 3   ;;  %v284_v36 = vld [vmem:[%s3105_s1 + $0x50] sm:$0xff] }
  0x23   : > { %v166_v42 = vadd.s32 %v165_v38, %v155_v37  ;;  %v203_v44 = vadd.s32 %v202_v40, %v192_v39 }
  0x25   : > { %v167_v45 = vadd.s32 %v166_v42, %v157_v41  ;;  %v204_v46 = vadd.s32 %v203_v44, %v194_v43 }
  0x27   : > { %v168_v48 = vshrl.u32 %v167_v45, 1  ;;  %v205_v49 = vshrl.u32 %v204_v46, 1 }
  0x29   : > { %v169_v50 = vmul.u32 3, %v168_v48  ;;  %v206_v51 = vmul.u32 3, %v205_v49 }
  0x2b   : > { %v170_v52 = vsub.s32 %v2562_v11, %v169_v50  ;;  %v207_v53 = vsub.s32 %v2564_v12, %v206_v51 }
  0x2d   : > { %vm173_vm7 = vcmp.ne.s32.totalorder %v170_v52, 0  ;;  %vm174_vm8 = vcmp.lt.s32.totalorder %v170_v52, 0  ;;  %vm210_vm9 = vcmp.ne.s32.totalorder %v207_v53, 0  ;;  %vm211_vm10 = vcmp.lt.s32.totalorder %v207_v53, 0 }
  0x2e   : > { %vm175_vm11 = vmand %vm174_vm8, %vm173_vm7  ;;  %v176_v54 = vadd.s32 3, %v170_v52  ;;  %v213_v55 = vadd.s32 3, %v207_v53  ;;  %vm418_vm7 = vcmask 89088   ;;  %vm420_vm8 = vcmask 179200  }
  0x2f   : > { %vm212_vm12 = vmand %vm211_vm10, %vm210_vm9  ;;  %vm422_vm9 = vcmask 269312   ;;  %vm424_vm10 = vcmask 359424  }
  0x30   : > { %v177_v58 = vsel %vm175_vm11, %v176_v54, %v170_v52  ;;  %v214_v59 = vsel %vm212_vm12, %v213_v55, %v207_v53  ;;  %vm426_vm11 = vcmask 449536   ;;  %vm3119_vm12 = vcmask 539648  }
  0x31   : > { %v179_v60 = vsel %vm143_vm13, %v177_v58, %v178_v56  ;;  %v216_v61 = vsel %vm180_vm14, %v214_v59, %v215_v57  ;;  %vm3118_vm13 = vcmask 629760   ;;  %vm3107_vm14 = vcmask 23552  }
  0x32   : > { %vm217_vm15 = vcmp.eq.s32.totalorder %v179_v60, %v216_v61 }
  0x33   : > { %v2584_v2 = vsel %vm217_vm15, 1.0, %v2421_v0  ;;  %v285_v0 = vld [vmem:[%s3105_s1 + $0x58] sm:$0xff]  ;;  %vm3109_vm15 = vcmask 719872  }
  0x6f   : > { %v2592_v19 = vpop.permute.xlu2 %349 }
  0x87   : > { %v230_v4 = vpop.permute.xlu0 %229 }
  0x96   : > { %v273_v5 = vpop.f32.mrf.mxu0 }
  0x97   : > { %v2555_v6 = vadd.f32 %v273_v5, %v230_v4 }
  0x99   : > { %v290_v7 = vsel %vm3117_vm2, %v2555_v6, 0.0  ;;  %v293_v8 = vmul.f32 %v2555_v6, %v2555_v6 }
  0x9a   : > { %291 = vadd.xlane.f32.xlu0 %v290_v7 }
  0x9b   : > { %v294_v9 = vsel %vm3117_vm2, %v293_v8, 0.0  ;;  %v2422_v8 = vmov 1  }
  0x9c   : > { %295 = vadd.xlane.f32.xlu1 %v294_v9 }
  0x9d   : > { %2279 = vset.pattern.permute.xlu1 %v2422_v8 }
 0x10d   : > { %v292_v62 = vpop.xlane.xlu0 %291 }
 0x10f   : > { %v296_v63 = vpop.xlane.xlu1 %295 }
 0x110   : > { %v298_v3 = vsel %vm3125_vm0, %v292_v62, %v296_v63 }
 0x111   : > { %318 = vmatpush.msra.mxu1 %v298_v3 }
 0x112   : > { %2143 = vmatmul.msk.f32.vlgmr.msra.gmra.mxu1 %vm299_vm3, %v2584_v2 }
 0x18f   : > { %v320_v4 = vpop.f32.mrf.mxu1 }
 0x190   : > { %v323_v5 = vmul.f32 0.0078125, %v320_v4 }
 0x192   : > { %344 = vperm.xlu2 %2276, %v323_v5   ;;  %v324_v7 = vmul.f32 %v323_v5, %v323_v5 }
 0x194   : > { %326 = vrot.lane.b32.xlu1 %v324_v7, %s2420_s4 }
 0x19a   : > { %2277 = vset.pattern.permute.xlu2 %v2422_v8 }
 0x1ec   : > { %v345_v23 = vpop.permute.xlu2 %344 }
 0x1ed   : > { %v347_v25 = vsub.f32 %v2555_v6, %v345_v23 }
 0x206   : > { %v327_v9 = vpop.permute.xlu1 %326 }
 0x207   : > { %v329_v10 = vsub.f32 %v323_v5, %v327_v9 }
 0x209   : > { %v330_v11 = vmax.f32 %v329_v10, 0.0 }
 0x20b   : > { %v331_v12 = vadd.f32 1e-05, %v330_v11 }
 0x20d   : > { %2323 = vrsqrt.f32 %v331_v12  ;;  %vm338_vm5 = vweird.f32 %v331_v12 }
 0x213   : > { %v2324_v13 = vpop.eup %2323 }
 0x214   : > { %v333_v14 = vmul.f32 %v2324_v13, %v331_v12  ;;  %vm339_vm4 = vweird.f32 %v2324_v13 }
 0x215   : > { %vm340_vm6 = vmor %vm338_vm5, %vm339_vm4  ;;  %vm3108_vm4 = vcmask 695296   ;;  %vm3110_vm5 = vcmask 965632  }
 0x216   : > { %v334_v15 = vmul.f32 %v2324_v13, %v333_v14 }
 0x218   : > { %v335_v16 = vmul.f32 0.5, %v334_v15 }
 0x21a   : > { %v336_v17 = vsub.f32 1.5, %v335_v16 }
 0x21c   : > { %v337_v18 = vmul.f32 %v2324_v13, %v336_v17 }
 0x21e   : > { %v341_v20 = vsel %vm340_vm6, %v2324_v13, %v337_v18  ;;  %vm3116_vm6 = vcmask 293888  }
 0x21f   : > { %v352_v21 = vmul.f32 %v2592_v19, %v341_v20 }
 0x221   : > { %355 = vperm.xlu2 %2277, %v352_v21  }
 0x229   : > { %2278 = vset.pattern.permute.xlu2 %v2419_v1 }
 0x22a   : > { %361 = vperm.xlu2 %2278, %v283_v22  }
 0x232   : > { %2281 = vset.pattern.permute.xlu2 %v2433_v35 }
 0x27b   : > { %v356_v24 = vpop.permute.xlu2 %355 }
 0x27c   : > { %v358_v26 = vmul.f32 %v356_v24, %v347_v25 }
 0x284   : > { %v2600_v27 = vpop.permute.xlu2 %361 }
 0x285   : > { %v364_v28 = vadd.f32 %v2600_v27, %v358_v26 }
 0x287   : > { %371 = vrot.lane.b32.xlu1 %v364_v28, %s2423_s7  ;;  %367 = vrot.lane.b32.xlu2 %v364_v28, %s2424_s8  ;;  %v365_v47 = vsel %vm299_vm3, %v364_v28, 0.0 }
 0x28f   : > { %379 = vrot.lane.b32.xlu1 %v364_v28, %s3114_s14  ;;  %375 = vrot.lane.b32.xlu2 %v364_v28, %s2426_s16 }
 0x297   : > { %387 = vrot.lane.b32.xlu1 %v364_v28, %s3115_s17  ;;  %383 = vrot.lane.b32.xlu2 %v364_v28, %s2428_s21 }
 0x2e1   : > { %v368_v6 = vpop.permute.xlu2 %367 }
 0x2e2   : > { %v370_v29 = vsel %vm299_vm3, %v368_v6, 0.0 }
 0x2e3   : > { %392 = vrot.lane.b32.xlu0 %v370_v29, %s2429_s22 }
 0x2e9   : > { %v376_v30 = vpop.permute.xlu2 %375 }
 0x2ea   : > { %v378_v31 = vsel %vm299_vm3, %v376_v30, 0.0 }
 0x2eb   : > { %400 = vrot.lane.b32.xlu1 %v378_v31, %s2430_s23 }
 0x2f1   : > { %v384_v33 = vpop.permute.xlu2 %383 }
 0x2f2   : > { %v386_v34 = vsel %vm299_vm3, %v384_v33, 0.0 }
 0x2f3   : > { %408 = vrot.lane.b32.xlu1 %v386_v34, %s2432_s24 }
 0x2f9   : > { %v372_v37 = vpop.permute.xlu1 %371 }
 0x2fa   : > { %v374_v38 = vsel %vm299_vm3, %v372_v37, 0.0 }
 0x2fb   : > { %396 = vrot.lane.b32.xlu2 %v374_v38, %s2434_s27  ;;  %441 = vperm.xlu1 %2279, %v284_v36   ;;  %v222_v38 = vld [vmem:[%s3105_s1 + $0x8] sm:$0xff] }
 0x2fc   : > { %2141 = vmatmul.msk.f32.gmra.mxu0 %vm242_vm1, %v222_v38 }
 0x301   : > { %v380_v39 = vpop.permute.xlu1 %379 }
 0x302   : > { %v382_v40 = vsel %vm299_vm3, %v380_v39, 0.0 }
 0x303   : > { %404 = vrot.lane.b32.xlu2 %v382_v40, %s2435_s28  ;;  %2282 = vset.pattern.permute.xlu1 %v2419_v1 }
 0x304   : > { %434 = vperm.xlu1 %2282, %v284_v36  }
 0x309   : > { %v388_v41 = vpop.permute.xlu1 %387 }
 0x30a   : > { %v390_v42 = vsel %vm299_vm3, %v388_v41, 0.0 }
 0x30b   : > { %415 = vrot.lane.b32.xlu2 %v364_v28, %s3113_s29  ;;  %412 = vrot.lane.b32.xlu0 %v390_v42, %s2437_s30  ;;  %s2446_s29 = smov 50  }
 0x30c   : > { %2286 = vset.pattern.permute.xlu1 %v2422_v8 }
 0x313   : > { %455 = vperm.xlu0 %2280, %v284_v36   ;;  %468 = vperm.xlu2 %2281, %v284_v36  }
 0x31b   : > { %2283 = vset.pattern.permute.xlu2 %v2419_v1  ;;  %2285 = vset.pattern.permute.xlu0 %v2419_v1 }
 0x355   : > { %v397_v43 = vpop.permute.xlu2 %396  ;;  %v393_v46 = vpop.permute.xlu0 %392 }
 0x356   : > { %v419_v48 = vsel %vm418_vm7, %v365_v47, %v393_v46 }
 0x357   : > { %v421_v51 = vsel %vm420_vm8, %v419_v48, %v397_v43 }
 0x35d   : > { %v405_v44 = vpop.permute.xlu2 %404  ;;  %v401_v45 = vpop.permute.xlu1 %400 }
 0x35e   : > { %v423_v52 = vsel %vm422_vm9, %v421_v51, %v401_v45  ;;  %v225_v45 = vld [vmem:[%s3105_s1 + $0x20] sm:$0xff] }
 0x35f   : > { %v425_v53 = vsel %vm424_vm10, %v423_v52, %v405_v44 }
 0x365   : > { %v416_v49 = vpop.permute.xlu2 %415  ;;  %v409_v50 = vpop.permute.xlu1 %408 }
 0x366   : > { %v427_v54 = vsel %vm426_vm11, %v425_v53, %v409_v50 }
 0x36d   : > { %v469_v56 = vpop.permute.xlu2 %468  ;;  %v442_v58 = vpop.permute.xlu1 %441 }
 0x376   : > { %v435_v3 = vpop.permute.xlu1 %434 }
 0x379   : > { %v276_v50 = vpop.f32.mrf.mxu0 }
 0x37d   : > { %v413_v55 = vpop.permute.xlu0 %412 }
 0x37e   : > { %v429_v57 = vsel %vm3119_vm12, %v427_v54, %v413_v55  ;;  %vm826_vm12 = vcmask 572416  }
 0x37f   : > { %v431_v59 = vsel %vm3118_vm13, %v429_v57, %v416_v49  ;;  %vm824_vm13 = vcmask 490496  }
 0x380   : > { %v471_v60 = vmul.f32 %v469_v56, %v431_v59  ;;  %v444_v61 = vmul.f32 %v442_v58, %v431_v59  ;;  %v437_v7 = vmul.f32 %v435_v3, %v431_v59 }
 0x382   : > { %473 = vrot.lane.b32.xlu0 %v471_v60, %s3111_s3  ;;  %446 = vrot.lane.b32.xlu2 %v444_v61, %s3112_s5  ;;  %v439_v10 = vsel %vm3108_vm4, %v437_v7, 0.0  ;;  %s2442_s3 = smov 40   ;;  %s2444_s5 = smov 14  }
 0x385   : > { %v456_v62 = vpop.permute.xlu0 %455 }
 0x386   : > { %v458_v63 = vmul.f32 %v456_v62, %v431_v59 }
 0x388   : > { %460 = vrot.lane.b32.xlu1 %v458_v63, %s2430_s23 }
 0x38a   : > { %481 = vperm.xlu2 %2283, %v285_v0  }
 0x3dc   : > { %v447_v4 = vpop.permute.xlu2 %446 }
 0x3dd   : > { %v450_v5 = vsel %vm3107_vm14, 0.0, %v447_v4 }
 0x3de   : > { %v452_v9 = vsel %vm3109_vm15, %v450_v5, 0.0  ;;  %vm499_vm15 = vcmask 990208  }
 0x3df   : > { %v453_v12 = vadd.f32 %v452_v9, %v439_v10 }
 0x3e4   : > { %v482_v18 = vpop.permute.xlu2 %481 }
 0x3f4   : > { %v474_v13 = vpop.permute.xlu0 %473 }
 0x3f5   : > { %v477_v17 = vsel %vm3116_vm6, 0.0, %v474_v13  ;;  %vm820_vm6 = vcmask 326656  }
 0x3fa   : > { %v461_v11 = vpop.permute.xlu1 %460 }
 0x3fb   : > { %v463_v14 = vsel %vm422_vm9, 0.0, %v461_v11 }
 0x3fc   : > { %v465_v15 = vsel %vm3110_vm5, %v463_v14, 0.0 }
 0x3fd   : > { %v466_v16 = vadd.f32 %v465_v15, %v453_v12 }
 0x3ff   : > { %v478_v20 = vadd.f32 %v477_v17, %v466_v16 }
 0x401   : > { %v484_v21 = vadd.f32 %v482_v18, %v478_v20  ;;  %v286_v18 = vld [vmem:[%s3105_s1 + $0x60] sm:$0x1] }
 0x403   : > { %v485_v22 = vadd.f32 3.0, %v484_v21  ;;  %v490_v23 = vmax.f32 %v484_v21, 0.0  ;;  %v492_v24 = vmin.f32 %v484_v21, 0.0  ;;  %vm495_vm14 = vcmp.ge.f32.partialorder %v484_v21, -3.0 }
 0x404   : > { %vm496_vm4 = vcmp.le.f32.partialorder %v484_v21, 3.0 }
 0x405   : > { %v486_v25 = vmax.f32 %v485_v22, 0.0  ;;  %v491_v28 = vmin.f32 %v490_v23, 6.0  ;;  %v493_v6 = vmul.f32 0.01, %v492_v24  ;;  %vm497_vm5 = vmand %vm495_vm14, %vm496_vm4  ;;  %v684_v23 = vld [vmem:[%s3105_s1 + $0x78] sm:$0xff] }
 0x407   : > { %v487_v26 = vmin.f32 %v486_v25, 6.0  ;;  %v494_v31 = vadd.f32 %v493_v6, %v491_v28  ;;  %v685_v6 = vld [vmem:[%s3105_s1 + $0x80] sm:$0xff] }
 0x409   : > { %v488_v29 = vmul.f32 %v487_v26, %v484_v21 }
 0x40b   : > { %v489_v30 = vmul.f32 0.16666667, %v488_v29 }
 0x40d   : > { %v498_v33 = vsel %vm497_vm5, %v489_v30, %v494_v31 }
 0x40e   : > { %v500_v34 = vsel %vm499_vm15, %v498_v33, 0.0  ;;  %v503_v36 = vmul.f32 %v498_v33, %v498_v33 }
 0x40f   : > { %501 = vadd.xlane.f32.xlu1 %v500_v34 }
 0x410   : > { %v504_v37 = vsel %vm499_vm15, %v503_v36, 0.0 }
 0x411   : > { %505 = vadd.xlane.f32.xlu0 %v504_v37 }
 0x482   : > { %v502_v39 = vpop.xlane.xlu1 %501 }
 0x484   : > { %v506_v40 = vpop.xlane.xlu0 %505 }
 0x485   : > { %v507_v41 = vsel %vm3125_vm0, %v502_v39, %v506_v40 }
 0x486   : > { %523 = vmatpush.msra.mxu2 %v507_v41 }
 0x487   : > { %2144 = vmatmul.msk.f32.vlgmr.msra.gmra.mxu2 %vm299_vm3, %v2584_v2 }
 0x50a   : > { %v525_v42 = vpop.f32.mrf.mxu2 }
 0x50b   : > { %v528_v43 = vmul.f32 0.004132231, %v525_v42 }
 0x50d   : > { %v529_v44 = vmul.f32 %v528_v43, %v528_v43 }
 0x50f   : > { %531 = vrot.lane.b32.xlu2 %v529_v44, %s2420_s4 }
 0x517   : > { %234 = vperm.xlu2 %2283, %v225_v45  }
 0x51f   : > { %549 = vperm.xlu2 %2283, %v528_v43  }
 0x527   : > { %2284 = vset.pattern.permute.xlu2 %v2422_v8 }
 0x569   : > { %v532_v46 = vpop.permute.xlu2 %531 }
 0x56a   : > { %v534_v47 = vsub.f32 %v528_v43, %v532_v46 }
 0x56c   : > { %v535_v48 = vmax.f32 %v534_v47, 0.0 }
 0x56e   : > { %v536_v49 = vadd.f32 1e-05, %v535_v48 }
 0x570   : > { %2325 = vrsqrt.f32 %v536_v49  ;;  %vm543_vm4 = vweird.f32 %v536_v49 }
 0x571   : > { %v235_v51 = vpop.permute.xlu2 %234 }
 0x572   : > { %v2665_v52 = vadd.f32 %v276_v50, %v235_v51 }
 0x574   : > { %v694_v53 = vmul.f32 %v2665_v52, %v2665_v52  ;;  %v691_v63 = vsel %vm3117_vm2, %v2665_v52, 0.0 }
 0x576   : > { %v2326_v54 = vpop.eup %2325  ;;  %v695_v55 = vsel %vm3117_vm2, %v694_v53, 0.0  ;;  %vm822_vm2 = vcmask 408576  }
 0x577   : > { %v538_v56 = vmul.f32 %v2326_v54, %v536_v49  ;;  %696 = vadd.xlane.f32.xlu1 %v695_v55  ;;  %vm544_vm14 = vweird.f32 %v2326_v54 }
 0x578   : > { %vm545_vm5 = vmor %vm543_vm4, %vm544_vm14 }
 0x579   : > { %v539_v57 = vmul.f32 %v2326_v54, %v538_v56  ;;  %v550_v0 = vpop.permute.xlu2 %549 }
 0x57a   : > { %v552_v3 = vsub.f32 %v498_v33, %v550_v0 }
 0x57b   : > { %v540_v58 = vmul.f32 0.5, %v539_v57 }
 0x57d   : > { %v541_v59 = vsub.f32 1.5, %v540_v58 }
 0x57f   : > { %v542_v60 = vmul.f32 %v2326_v54, %v541_v59 }
 0x581   : > { %v546_v61 = vsel %vm545_vm5, %v2326_v54, %v542_v60 }
 0x582   : > { %v553_v62 = vmul.f32 %v546_v61, %v2592_v19 }
 0x584   : > { %556 = vperm.xlu2 %2284, %v553_v62   ;;  %v686_v62 = vld [vmem:[%s3105_s1 + $0x88] sm:$0xff] }
 0x58c   : > { %2287 = vset.pattern.permute.xlu2 %v2419_v1 }
 0x590   : > { %745 = vrot.lane.b32.xlu1 %v684_v23, %s2420_s4 }
 0x5ad   : > { %692 = vadd.xlane.f32.xlu2 %v691_v63 }
 0x5c5   : > { %757 = vperm.xlu2 %2287, %v685_v6  }
 0x5cd   : > { %2290 = vset.pattern.permute.xlu2 %v2433_v35 }
 0x5de   : > { %v557_v4 = vpop.permute.xlu2 %556 }
 0x5df   : > { %v559_v5 = vmul.f32 %v557_v4, %v552_v3 }
 0x5e1   : > { %v560_v7 = vadd.f32 %v559_v5, %v2600_v27 }
 0x5e3   : > { %v561_v9 = vadd.f32 3.0, %v560_v7  ;;  %v566_v10 = vmax.f32 %v560_v7, 0.0  ;;  %v568_v11 = vmin.f32 %v560_v7, 0.0  ;;  %vm571_vm14 = vcmp.ge.f32.partialorder %v560_v7, -3.0 }
 0x5e4   : > { %vm572_vm4 = vcmp.le.f32.partialorder %v560_v7, 3.0 }
 0x5e5   : > { %v562_v12 = vmax.f32 %v561_v9, 0.0  ;;  %v567_v14 = vmin.f32 %v566_v10, 6.0  ;;  %v569_v19 = vmul.f32 0.01, %v568_v11  ;;  %vm573_vm5 = vmand %vm571_vm14, %vm572_vm4 }
 0x5e7   : > { %v563_v13 = vmin.f32 %v562_v12, 6.0  ;;  %v570_v17 = vadd.f32 %v569_v19, %v567_v14 }
 0x5e9   : > { %v564_v15 = vmul.f32 %v563_v13, %v560_v7 }
 0x5ea   : > { %v697_v27 = vpop.xlane.xlu1 %696 }
 0x5eb   : > { %v565_v16 = vmul.f32 0.16666667, %v564_v15 }
 0x5ed   : > { %v2678_v20 = vsel %vm573_vm5, %v565_v16, %v570_v17 }
 0x5ee   : > { %593 = vmatpush.msra.mxu3 %v2678_v20 }
 0x5ef   : > { %2145 = vmatmul.msk.f32.vlgmr.msra.gmra.mxu3 %vm299_vm3, %v286_v18 }
 0x602   : > { %v2697_v40 = vpop.permute.xlu1 %745 }
 0x620   : > { %v693_v21 = vpop.xlane.xlu2 %692 }
 0x621   : > { %v698_v22 = vsel %vm3125_vm0, %v693_v21, %v697_v27 }
 0x622   : > { %714 = vmatpush.msrb.mxu3 %v698_v22 }
 0x623   : > { %2150 = vmatmul.msk.f32.vlgmr.msrb.gmra.mxu3 %vm299_vm3, %v2584_v2 }
 0x628   : > { %v2702_v47 = vpop.permute.xlu2 %757 }
 0x672   : > { %v2689_v24 = vpop.f32.mrf.mxu3 }
 0x6a6   : > { %v716_v25 = vpop.f32.mrf.mxu3 }
 0x6a7   : > { %v719_v26 = vmul.f32 0.0078125, %v716_v25  ;;  %v687_v25 = vld [vmem:[%s3105_s1 + $0x90] sm:$0xff] }
 0x6a9   : > { %v720_v28 = vmul.f32 %v719_v26, %v719_v26 }
 0x6ab   : > { %722 = vrot.lane.b32.xlu0 %v720_v28, %s2420_s4 }
 0x6b3   : > { %740 = vperm.xlu0 %2285, %v719_v26  }
 0x6bb   : > { %2288 = vset.pattern.permute.xlu0 %v2422_v8 }
 0x71d   : > { %v723_v29 = vpop.permute.xlu0 %722 }
 0x71e   : > { %v725_v30 = vsub.f32 %v719_v26, %v723_v29  ;;  %v617_v26 = vsel %vm499_vm15, %v2678_v20, 0.0 }
 0x720   : > { %v726_v31 = vmax.f32 %v725_v30, 0.0 }
 0x722   : > { %v727_v33 = vadd.f32 1e-05, %v726_v31 }
 0x724   : > { %2327 = vrsqrt.f32 %v727_v33  ;;  %vm734_vm4 = vweird.f32 %v727_v33 }
 0x725   : > { %v741_v44 = vpop.permute.xlu0 %740 }
 0x726   : > { %v743_v45 = vsub.f32 %v2665_v52, %v741_v44 }
 0x72a   : > { %v2328_v34 = vpop.eup %2327 }
 0x72b   : > { %v729_v36 = vmul.f32 %v2328_v34, %v727_v33  ;;  %vm735_vm14 = vweird.f32 %v2328_v34 }
 0x72c   : > { %vm736_vm5 = vmor %vm734_vm4, %vm735_vm14  ;;  %vm814_vm14 = vcmask 80896   ;;  %vm816_vm4 = vcmask 162816  }
 0x72d   : > { %v730_v37 = vmul.f32 %v2328_v34, %v729_v36 }
 0x72f   : > { %v731_v38 = vmul.f32 0.5, %v730_v37 }
 0x731   : > { %v732_v39 = vsub.f32 1.5, %v731_v38 }
 0x733   : > { %v733_v41 = vmul.f32 %v2328_v34, %v732_v39 }
 0x735   : > { %v737_v42 = vsel %vm736_vm5, %v2328_v34, %v733_v41  ;;  %vm818_vm5 = vcmask 244736  }
 0x736   : > { %v748_v43 = vmul.f32 %v2697_v40, %v737_v42 }
 0x738   : > { %751 = vperm.xlu1 %2286, %v748_v43  }
 0x740   : > { %2289 = vset.pattern.permute.xlu1 %v2431_v32 }
 0x7aa   : > { %v752_v46 = vpop.permute.xlu1 %751 }
 0x7ab   : > { %v754_v48 = vmul.f32 %v752_v46, %v743_v45 }
 0x7ad   : > { %v760_v49 = vadd.f32 %v2702_v47, %v754_v48 }
 0x7af   : > { %767 = vrot.lane.b32.xlu1 %v760_v49, %s2423_s7  ;;  %763 = vrot.lane.b32.xlu0 %v760_v49, %s2424_s8  ;;  %v761_v7 = vsel %vm299_vm3, %v760_v49, 0.0 }
 0x7b7   : > { %775 = vrot.lane.b32.xlu1 %v760_v49, %s3114_s14  ;;  %771 = vrot.lane.b32.xlu0 %v760_v49, %s2426_s16  ;;  %s3121_s14 = smov 2  }
 0x7bf   : > { %783 = vrot.lane.b32.xlu1 %v760_v49, %s3115_s17  ;;  %779 = vrot.lane.b32.xlu0 %v760_v49, %s2428_s21  ;;  %s2453_s17 = smov 48  }
 0x821   : > { %v768_v50 = vpop.permute.xlu1 %767  ;;  %v764_v51 = vpop.permute.xlu0 %763 }
 0x822   : > { %v770_v52 = vsel %vm299_vm3, %v768_v50, 0.0  ;;  %v766_v53 = vsel %vm299_vm3, %v764_v51, 0.0 }
 0x823   : > { %792 = vrot.lane.b32.xlu0 %v770_v52, %s2440_s6  ;;  %788 = vrot.lane.b32.xlu2 %v766_v53, %s2441_s25  ;;  %s2445_s25 = smov 60  }
 0x829   : > { %v776_v54 = vpop.permute.xlu1 %775  ;;  %v772_v55 = vpop.permute.xlu0 %771 }
 0x82a   : > { %v778_v56 = vsel %vm299_vm3, %v776_v54, 0.0  ;;  %v774_v57 = vsel %vm299_vm3, %v772_v55, 0.0 }
 0x82b   : > { %800 = vrot.lane.b32.xlu2 %v778_v56, %s2442_s3  ;;  %796 = vrot.lane.b32.xlu1 %v774_v57, %s2443_s26  ;;  %s2450_s3 = smov 118   ;;  %s2451_s26 = smov 68  }
 0x831   : > { %v784_v58 = vpop.permute.xlu1 %783  ;;  %v780_v59 = vpop.permute.xlu0 %779 }
 0x832   : > { %v786_v60 = vsel %vm299_vm3, %v784_v58, 0.0  ;;  %v782_v61 = vsel %vm299_vm3, %v780_v59, 0.0 }
 0x833   : > { %811 = vrot.lane.b32.xlu2 %v760_v49, %s2444_s5  ;;  %808 = vrot.lane.b32.xlu1 %v786_v60, %s2445_s25  ;;  %s2452_s25 = smov 78  }
 0x834   : > { %804 = vrot.lane.b32.xlu0 %v782_v61, %s2446_s29  ;;  %s2448_s29 = smov 98  }
 0x83b   : > { %850 = vperm.xlu1 %2289, %v686_v62   ;;  %863 = vperm.xlu2 %2290, %v686_v62  }
 0x83c   : > { %837 = vperm.xlu0 %2288, %v686_v62  }
 0x843   : > { %2291 = vset.pattern.permute.xlu1 %v2419_v1  ;;  %2292 = vset.pattern.permute.xlu2 %v2419_v1 }
 0x844   : > { %830 = vperm.xlu1 %2291, %v686_v62  }
 0x87d   : > { %v789_v63 = vpop.permute.xlu2 %788 }
 0x87e   : > { %v815_v9 = vsel %vm814_vm14, %v761_v7, %v789_v63  ;;  %v287_v63 = vld [vmem:[%s3105_s1 + $0x68] sm:$0x3] }
 0x885   : > { %v801_v0 = vpop.permute.xlu2 %800 }
 0x88d   : > { %v812_v5 = vpop.permute.xlu2 %811 }
 0x895   : > { %v793_v4 = vpop.permute.xlu0 %792  ;;  %v864_v15 = vpop.permute.xlu2 %863 }
 0x896   : > { %v817_v10 = vsel %vm816_vm4, %v815_v9, %v793_v4 }
 0x89d   : > { %v797_v3 = vpop.permute.xlu1 %796 }
 0x89e   : > { %v819_v11 = vsel %vm818_vm5, %v817_v10, %v797_v3 }
 0x89f   : > { %v821_v14 = vsel %vm820_vm6, %v819_v11, %v801_v0  ;;  %vm3120_vm6 = vcmask 801792  }
 0x8a5   : > { %v809_v12 = vpop.permute.xlu1 %808 }
 0x8a6   : > { %v805_v13 = vpop.permute.xlu0 %804 }
 0x8a7   : > { %v823_v19 = vsel %vm822_vm2, %v821_v14, %v805_v13  ;;  %vm645_vm2 = vcmask 15360  }
 0x8a8   : > { %v825_v16 = vsel %vm824_vm13, %v823_v19, %v809_v12  ;;  %vm834_vm13 = vcmask 637952  }
 0x8a9   : > { %v827_v17 = vsel %vm826_vm12, %v825_v16, %v812_v5  ;;  %vm846_vm12 = vcmask 654336  }
 0x8aa   : > { %v866_v18 = vmul.f32 %v864_v15, %v827_v17 }
 0x8ac   : > { %868 = vrot.lane.b32.xlu1 %v866_v18, %s2434_s27 }
 0x8ad   : > { %v851_v27 = vpop.permute.xlu1 %850 }
 0x8ae   : > { %v853_v21 = vmul.f32 %v851_v27, %v827_v17  ;;  %v838_v22 = vpop.permute.xlu0 %837 }
 0x8af   : > { %v840_v23 = vmul.f32 %v838_v22, %v827_v17 }
 0x8b0   : > { %855 = vrot.lane.b32.xlu0 %v853_v21, %s2440_s6  ;;  %s2449_s6 = smov 108  }
 0x8b1   : > { %842 = vrot.lane.b32.xlu2 %v840_v23, %s3121_s14  ;;  %s2454_s14 = smov 58  }
 0x8b6   : > { %v831_v6 = vpop.permute.xlu1 %830 }
 0x8b7   : > { %v833_v30 = vmul.f32 %v831_v6, %v827_v17 }
 0x8b9   : > { %875 = vperm.xlu2 %2292, %v687_v25   ;;  %v835_v33 = vsel %vm834_vm13, %v833_v30, 0.0 }
 0x8c1   : > { %2293 = vset.pattern.permute.xlu2 %v2422_v8 }
 0x8da   : > { %618 = vadd.xlane.f32.xlu0 %v617_v26 }
 0x90b   : > { %v843_v28 = vpop.permute.xlu2 %842 }
 0x90c   : > { %v845_v29 = vsel %vm645_vm2, 0.0, %v843_v28 }
 0x90d   : > { %v847_v31 = vsel %vm846_vm12, %v845_v29, 0.0 }
 0x90e   : > { %v848_v36 = vadd.f32 %v847_v31, %v835_v33 }
 0x913   : > { %v876_v43 = vpop.permute.xlu2 %875 }
 0x91e   : > { %v869_v37 = vpop.permute.xlu1 %868 }
 0x91f   : > { %v871_v42 = vsel %vm420_vm8, 0.0, %v869_v37 }
 0x922   : > { %v856_v34 = vpop.permute.xlu0 %855 }
 0x923   : > { %v858_v38 = vsel %vm816_vm4, 0.0, %v856_v34  ;;  %vm893_vm4 = vcmask 818176  }
 0x924   : > { %v860_v39 = vsel %vm3120_vm6, %v858_v38, 0.0 }
 0x925   : > { %v861_v41 = vadd.f32 %v860_v39, %v848_v36 }
 0x927   : > { %v872_v44 = vadd.f32 %v871_v42, %v861_v41 }
 0x929   : > { %v878_v45 = vadd.f32 %v876_v43, %v872_v44 }
 0x92b   : > { %v879_v46 = vadd.f32 3.0, %v878_v45  ;;  %v884_v48 = vmax.f32 %v878_v45, 0.0  ;;  %v886_v49 = vmin.f32 %v878_v45, 0.0  ;;  %vm889_vm5 = vcmp.ge.f32.partialorder %v878_v45, -3.0 }
 0x92c   : > { %vm890_vm12 = vcmp.le.f32.partialorder %v878_v45, 3.0 }
 0x92d   : > { %v880_v50 = vmax.f32 %v879_v46, 0.0  ;;  %v885_v52 = vmin.f32 %v884_v48, 6.0  ;;  %v887_v53 = vmul.f32 0.01, %v886_v49  ;;  %vm891_vm13 = vmand %vm889_vm5, %vm890_vm12  ;;  %vm3122_vm5 = vcmask 1041408   ;;  %v288_v48 = vld [vmem:[%s3105_s1 + $0x70] sm:$0xff] }
 0x92e   : > { %v689_v46 = vld [vmem:[%s3105_s1 + $0xa0] sm:$0x3]  ;;  %v688_v49 = vld [vmem:[%s3105_s1 + $0x98] sm:$0x1] }
 0x92f   : > { %v881_v51 = vmin.f32 %v880_v50, 6.0  ;;  %v888_v56 = vadd.f32 %v887_v53, %v885_v52  ;;  %v690_v52 = vld [vmem:[%s3105_s1 + $0xa8] sm:$0xff] }
 0x931   : > { %v882_v54 = vmul.f32 %v881_v51, %v878_v45 }
 0x933   : > { %v883_v55 = vmul.f32 0.16666667, %v882_v54 }
 0x935   : > { %v892_v57 = vsel %vm891_vm13, %v883_v55, %v888_v56 }
 0x936   : > { %v894_v58 = vsel %vm893_vm4, %v892_v57, 0.0  ;;  %v897_v59 = vmul.f32 %v892_v57, %v892_v57 }
 0x937   : > { %895 = vadd.xlane.f32.xlu1 %v894_v58 }
 0x938   : > { %v898_v60 = vsel %vm893_vm4, %v897_v59, 0.0 }
 0x939   : > { %899 = vadd.xlane.f32.xlu2 %v898_v60 }
 0x94d   : > { %v619_v61 = vpop.xlane.xlu0 %618 }
 0x94e   : > { %v620_v62 = vmul.f32 0.008264462, %v619_v61 }
 0x950   : > { %639 = vmatpush.msrb.mxu1 %v620_v62 }
 0x951   : > { %2147 = vmatmul.msk.f32.vlgmr.msrb.gmra.mxu1 %vm299_vm3, %v287_v63 }
 0x9aa   : > { %v896_v0 = vpop.xlane.xlu1 %895 }
 0x9ac   : > { %v900_v3 = vpop.xlane.xlu2 %899 }
 0x9ad   : > { %v901_v4 = vsel %vm3125_vm0, %v896_v0, %v900_v3  ;;  %v1077_v3 = vld [vmem:[%s3105_s1 + $0x38] sm:$0xff] }
 0x9ae   : > { %917 = vmatpush.msra.mxu1 %v901_v4 }
 0x9af   : > { %2151 = vmatmul.msk.f32.vlgmr.msra.gmra.mxu1 %vm299_vm3, %v2584_v2 }
 0x9ce   : > { %v641_v5 = vpop.f32.mrf.mxu1 }
 0x9cf   : > { %v644_v7 = vmax.f32 %v641_v5, 0.0 }
 0x9d1   : > { %2148 = vmatpush.msk.msrb.mxu2 %vm3122_vm5, %v644_v7 }
 0x9d2   : > { %2149 = vmatmul.msk.f32.vlgmr.msrb.gmra.mxu2 %vm645_vm2, %v288_v48 }
 0xa2c   : > { %v919_v9 = vpop.f32.mrf.mxu1 }
 0xa2d   : > { %v922_v10 = vmul.f32 0.005, %v919_v9 }
 0xa2f   : > { %943 = vperm.xlu1 %2291, %v922_v10   ;;  %v923_v11 = vmul.f32 %v922_v10, %v922_v10 }
 0xa31   : > { %925 = vrot.lane.b32.xlu0 %v923_v11, %s2420_s4 }
 0xa55   : > { %v2779_v59 = vpop.f32.mrf.mxu2 }
 0xaa1   : > { %v944_v25 = vpop.permute.xlu1 %943 }
 0xaa2   : > { %v946_v26 = vsub.f32 %v892_v57, %v944_v25 }
 0xaa3   : > { %v926_v12 = vpop.permute.xlu0 %925 }
 0xaa4   : > { %v928_v13 = vsub.f32 %v922_v10, %v926_v12 }
 0xaa6   : > { %v929_v14 = vmax.f32 %v928_v13, 0.0 }
 0xaa8   : > { %v930_v19 = vadd.f32 1e-05, %v929_v14 }
 0xaaa   : > { %2329 = vrsqrt.f32 %v930_v19  ;;  %vm937_vm13 = vweird.f32 %v930_v19 }
 0xab0   : > { %v2330_v15 = vpop.eup %2329 }
 0xab1   : > { %v932_v16 = vmul.f32 %v2330_v15, %v930_v19  ;;  %vm938_vm12 = vweird.f32 %v2330_v15 }
 0xab2   : > { %vm939_vm6 = vmor %vm937_vm13, %vm938_vm12 }
 0xab3   : > { %v933_v17 = vmul.f32 %v2330_v15, %v932_v16 }
 0xab5   : > { %v934_v18 = vmul.f32 0.5, %v933_v17 }
 0xab7   : > { %v935_v27 = vsub.f32 1.5, %v934_v18  ;;  %v1076_v18 = vld [vmem:[%s3105_s1 + $0x30] sm:$0xff] }
 0xab9   : > { %v936_v21 = vmul.f32 %v2330_v15, %v935_v27 }
 0xabb   : > { %v940_v22 = vsel %vm939_vm6, %v2330_v15, %v936_v21 }
 0xabc   : > { %v947_v23 = vmul.f32 %v940_v22, %v2697_v40 }
 0xabe   : > { %950 = vperm.xlu2 %2293, %v947_v23  }
 0xac6   : > { %2294 = vset.pattern.permute.xlu2 %v2419_v1 }
 0xac7   : > { %1080 = vperm.xlu2 %2294, %v1077_v3  }
 0xb18   : > { %v951_v28 = vpop.permute.xlu2 %950 }
 0xb19   : > { %v953_v6 = vmul.f32 %v951_v28, %v946_v26 }
 0xb1b   : > { %v954_v29 = vadd.f32 %v953_v6, %v2702_v47  ;;  %v223_v47 = vld [vmem:[%s3105_s1 + $0x10] sm:$0xff] }
 0xb1c   : > { %2142 = vmatmul.msk.f32.gmra.mxu0 %vm242_vm1, %v223_v47 }
 0xb1d   : > { %v955_v30 = vadd.f32 3.0, %v954_v29  ;;  %v960_v31 = vmax.f32 %v954_v29, 0.0  ;;  %v962_v33 = vmin.f32 %v954_v29, 0.0  ;;  %vm965_vm6 = vcmp.ge.f32.partialorder %v954_v29, -3.0 }
 0xb1e   : > { %vm966_vm12 = vcmp.le.f32.partialorder %v954_v29, 3.0 }
 0xb1f   : > { %v956_v34 = vmax.f32 %v955_v30, 0.0  ;;  %v961_v37 = vmin.f32 %v960_v31, 6.0  ;;  %v963_v38 = vmul.f32 0.01, %v962_v33  ;;  %vm967_vm13 = vmand %vm965_vm6, %vm966_vm12  ;;  %v1106_v30 = vld [vmem:[%s3105_s1 + $0xb0] sm:$0xff] }
 0xb21   : > { %v957_v36 = vmin.f32 %v956_v34, 6.0  ;;  %v964_v41 = vadd.f32 %v963_v38, %v961_v37  ;;  %v1081_v27 = vpop.permute.xlu2 %1080 }
 0xb23   : > { %v958_v39 = vmul.f32 %v957_v36, %v954_v29 }
 0xb25   : > { %v959_v40 = vmul.f32 0.16666667, %v958_v39 }
 0xb27   : > { %v968_v42 = vsel %vm967_vm13, %v959_v40, %v964_v41 }
 0xb28   : > { %987 = vmatpush.msra.mxu2 %v968_v42  ;;  %v1011_v43 = vsel %vm893_vm4, %v968_v42, 0.0 }
 0xb29   : > { %1012 = vadd.xlane.f32.xlu0 %v1011_v43  ;;  %2152 = vmatmul.msk.f32.vlgmr.msra.gmra.mxu2 %vm299_vm3, %v688_v49  ;;  %v1107_v49 = vld [vmem:[%s3105_s1 + $0xb8] sm:$0xff] }
 0xb99   : > { %v2776_v53 = vpop.f32.mrf.mxu0 }
 0xb9c   : > { %v1013_v44 = vpop.xlane.xlu0 %1012 }
 0xb9d   : > { %v1014_v45 = vmul.f32 0.01, %v1013_v44 }
 0xb9f   : > { %1033 = vmatpush.msra.mxu3 %v1014_v45 }
 0xba0   : > { %2154 = vmatmul.msk.f32.vlgmr.msra.gmra.mxu3 %vm299_vm3, %v689_v46 }
 0xbac   : > { %v989_v60 = vpop.f32.mrf.mxu2 }
 0xbad   : > { %v2153_v61 = vmul.f32 -1.442695, %v989_v60 }
 0xbaf   : > { %2331 = vpow2.f32 %v2153_v61 }
 0xbb5   : > { %v2332_v62 = vpop.eup %2331 }
 0xbb6   : > { %v995_v63 = vadd.f32 1.0, %v2332_v62 }
 0xbb8   : > { %2333 = vrcp.f32 %v995_v63  ;;  %vm1001_vm1 = vweird.f32 %v995_v63  ;;  %v1007_v9 = vand.u32 2147483648, %v995_v63  ;;  %v1005_v11 = vand.u32 2147483647, %v995_v63 }
 0xbba   : > { %v1008_v12 = vor.u32 1.1754944e-38, %v1007_v9  ;;  %vm1006_vm13 = vcmp.eq.f32.partialorder %v1005_v11, 8.507059e+37 }
 0xbbe   : > { %v2334_v0 = vpop.eup %2333 }
 0xbbf   : > { %v997_v4 = vmul.f32 %v2334_v0, %v995_v63  ;;  %vm1002_vm6 = vweird.f32 %v2334_v0 }
 0xbc0   : > { %vm1003_vm12 = vmor %vm1001_vm1, %vm1002_vm6 }
 0xbc1   : > { %v998_v5 = vsub.f32 1.0, %v997_v4 }
 0xbc3   : > { %v999_v7 = vmul.f32 %v2334_v0, %v998_v5 }
 0xbc5   : > { %v1000_v10 = vadd.f32 %v2334_v0, %v999_v7 }
 0xbc7   : > { %v1004_v13 = vsel %vm1003_vm12, %v2334_v0, %v1000_v10  ;;  %v1108_v0 = vld [vmem:[%s3105_s1 + $0xc0] sm:$0xff]  ;;  %vm3128_vm12 = vcmask 539648  }
 0xbc8   : > { %v1009_v14 = vsel %vm1006_vm13, %v1008_v12, %v1004_v13  ;;  %vm1260_vm13 = vcmask 809984  }
 0xbc9   : > { %v1073_v19 = vperm.slane %v1009_v14, 0 }
 0xc23   : > { %v1035_v50 = vpop.f32.mrf.mxu3 }
 0xc24   : > { %v1038_v51 = vmax.f32 %v1035_v50, 0.0 }
 0xc26   : > { %2155 = vmatpush.msk.msrb.mxu0 %vm3122_vm5, %v1038_v51 }
 0xc27   : > { %2156 = vmatmul.msk.f32.vlgmr.msrb.gmra.mxu0 %vm645_vm2, %v690_v52 }
 0xca4   : > { %v1062_v54 = vpop.f32.mrf.mxu0 }
 0xca5   : > { %v1063_v55 = vadd.f32 3.0, %v1062_v54 }
 0xca7   : > { %v1065_v56 = vmul.f32 0.16666667, %v1063_v55 }
 0xca9   : > { %v1066_v57 = vmax.f32 %v1065_v56, 0.0 }
 0xcab   : > { %v1067_v58 = vmin.f32 %v1066_v57, 1.0 }
 0xcad   : > { %1070 = vperm.xlu1 %2291, %v1067_v58  }
 0xcb5   : > { %2297 = vset.pattern.permute.xlu1 %v2431_v32 }
 0xd1f   : > { %v1071_v15 = vpop.permute.xlu1 %1070 }
 0xd20   : > { %v1074_v16 = vadd.f32 %v1073_v19, %v1071_v15 }
 0xd22   : > { %v1075_v17 = vmul.f32 %v1074_v16, %v968_v42 }
 0xd24   : > { %1101 = vmatpush.msrb.mxu1 %v1075_v17 }
 0xd25   : > { %2157 = vmatmul.msk.f32.vlgmr.msrb.gmra.mxu1 %vm299_vm3, %v1076_v18 }
 0xda2   : > { %v1103_v21 = vpop.f32.mrf.mxu1 }
 0xda3   : > { %v1104_v22 = vadd.f32 %v1103_v21, %v1081_v27 }
 0xda5   : > { %v1116_v23 = vmul.f32 %v1104_v22, %v1104_v22  ;;  %v1113_v25 = vsel %vm893_vm4, %v1104_v22, 0.0 }
 0xda6   : > { %1114 = vadd.xlane.f32.xlu1 %v1113_v25 }
 0xda7   : > { %v1117_v26 = vsel %vm893_vm4, %v1116_v23, 0.0 }
 0xda8   : > { %1118 = vadd.xlane.f32.xlu2 %v1117_v26 }
 0xdbf   : > { %1167 = vrot.lane.b32.xlu1 %v1106_v30, %s2420_s4 }
 0xe19   : > { %v1115_v6 = vpop.xlane.xlu1 %1114 }
 0xe1b   : > { %v1119_v28 = vpop.xlane.xlu2 %1118 }
 0xe1c   : > { %v1120_v29 = vsel %vm3125_vm0, %v1115_v6, %v1119_v28 }
 0xe1d   : > { %1136 = vmatpush.msrb.mxu2 %v1120_v29 }
 0xe1e   : > { %2158 = vmatmul.msk.f32.vlgmr.msrb.gmra.mxu2 %vm299_vm3, %v2584_v2 }
 0xe31   : > { %v2799_v45 = vpop.permute.xlu1 %1167 }
 0xea1   : > { %v1138_v31 = vpop.f32.mrf.mxu2 }
 0xea2   : > { %v1141_v33 = vmul.f32 0.005, %v1138_v31 }
 0xea4   : > { %1162 = vperm.xlu2 %2294, %v1141_v33   ;;  %v1142_v34 = vmul.f32 %v1141_v33, %v1141_v33 }
 0xea6   : > { %1144 = vrot.lane.b32.xlu0 %v1142_v34, %s2420_s4 }
 0xeac   : > { %2298 = vset.pattern.permute.xlu2 %v2433_v35 }
 0xefe   : > { %v1163_v51 = vpop.permute.xlu2 %1162 }
 0xeff   : > { %v1165_v52 = vsub.f32 %v1104_v22, %v1163_v51 }
 0xf18   : > { %v1145_v36 = vpop.permute.xlu0 %1144 }
 0xf19   : > { %v1147_v37 = vsub.f32 %v1141_v33, %v1145_v36 }
 0xf1b   : > { %v1148_v38 = vmax.f32 %v1147_v37, 0.0 }
 0xf1d   : > { %v1149_v39 = vadd.f32 1e-05, %v1148_v38 }
 0xf1f   : > { %2335 = vrsqrt.f32 %v1149_v39  ;;  %vm1156_vm1 = vweird.f32 %v1149_v39 }
 0xf25   : > { %v2336_v40 = vpop.eup %2335 }
 0xf26   : > { %v1151_v41 = vmul.f32 %v2336_v40, %v1149_v39  ;;  %vm1157_vm4 = vweird.f32 %v2336_v40 }
 0xf27   : > { %vm1158_vm6 = vmor %vm1156_vm1, %vm1157_vm4  ;;  %vm3129_vm4 = vcmask 629760   ;;  %vm3124_vm1 = vcmask 900096  }
 0xf28   : > { %v1152_v42 = vmul.f32 %v2336_v40, %v1151_v41 }
 0xf2a   : > { %v1153_v43 = vmul.f32 0.5, %v1152_v42  ;;  %v226_v42 = vld [vmem:[%s3105_s1 + $0x28] sm:$0xff] }
 0xf2c   : > { %v1154_v47 = vsub.f32 1.5, %v1153_v43  ;;  %v1109_v43 = vld [vmem:[%s3105_s1 + $0xc8] sm:$0xff] }
 0xf2e   : > { %v1155_v44 = vmul.f32 %v2336_v40, %v1154_v47 }
 0xf30   : > { %v1159_v46 = vsel %vm1158_vm6, %v2336_v40, %v1155_v44  ;;  %vm1268_vm6 = vcmask 891904  }
 0xf31   : > { %v1170_v48 = vmul.f32 %v2799_v45, %v1159_v46 }
 0xf33   : > { %1173 = vperm.xlu0 %2288, %v1170_v48  }
 0xf3b   : > { %2295 = vset.pattern.permute.xlu0 %v2419_v1 }
 0xf3c   : > { %1179 = vperm.xlu0 %2295, %v1107_v49  }
 0xf44   : > { %2296 = vset.pattern.permute.xlu0 %v2422_v8 }
 0xfa5   : > { %v1174_v50 = vpop.permute.xlu0 %1173 }
 0xfa6   : > { %v1176_v54 = vmul.f32 %v1174_v50, %v1165_v52 }
 0xfae   : > { %v2807_v55 = vpop.permute.xlu0 %1179 }
 0xfaf   : > { %v1182_v56 = vadd.f32 %v2807_v55, %v1176_v54 }
 0xfb1   : > { %1193 = vrot.lane.b32.xlu0 %v1182_v56, %s2448_s29  ;;  %1189 = vrot.lane.b32.xlu2 %v1182_v56, %s2449_s6  ;;  %v1183_v27 = vsel %vm814_vm14, %v1182_v56, 0.0  ;;  %s3132_s29 = smov 80   ;;  %s3133_s6 = smov 96  }
 0xfb2   : > { %1185 = vrot.lane.b32.xlu1 %v1182_v56, %s2450_s3  ;;  %s2455_s3 = smov 9  }
 0xfb9   : > { %1205 = vrot.lane.b32.xlu0 %v1182_v56, %s2451_s26  ;;  %1201 = vrot.lane.b32.xlu2 %v1182_v56, %s2452_s25  ;;  %s2456_s26 = smov 77   ;;  %s2457_s25 = smov 12  }
 0xfba   : > { %1197 = vrot.lane.b32.xlu1 %v1182_v56, %s2428_s21 }
 0xfc1   : > { %1213 = vrot.lane.b32.xlu2 %v1182_v56, %s2453_s17  ;;  %s2474_s17 = smov 25  }
 0xfc2   : > { %1209 = vrot.lane.b32.xlu1 %v1182_v56, %s2454_s14 }
0x100b   : > { %v1190_v57 = vpop.permute.xlu2 %1189 }
0x100c   : > { %v1192_v58 = vsel %vm814_vm14, %v1190_v57, 0.0 }
0x100d   : > { %1222 = vrot.lane.b32.xlu1 %v1192_v58, %s2434_s27 }
0x1013   : > { %v1202_v60 = vpop.permute.xlu2 %1201 }
0x1014   : > { %v1204_v61 = vsel %vm814_vm14, %v1202_v60, 0.0 }
0x1015   : > { %1234 = vrot.lane.b32.xlu1 %v1204_v61, %s2432_s24 }
0x101b   : > { %v1214_v62 = vpop.permute.xlu2 %1213 }
0x101c   : > { %v1216_v63 = vsel %vm814_vm14, %v1214_v62, 0.0 }
0x101d   : > { %1246 = vrot.lane.b32.xlu1 %v1216_v63, %s2428_s21 }
0x1023   : > { %v1194_v3 = vpop.permute.xlu0 %1193 }
0x1024   : > { %v1196_v4 = vsel %vm814_vm14, %v1194_v3, 0.0  ;;  %v1186_v5 = vpop.permute.xlu1 %1185 }
0x1025   : > { %v1188_v7 = vsel %vm814_vm14, %v1186_v5, 0.0  ;;  %1226 = vrot.lane.b32.xlu2 %v1196_v4, %s2430_s23  ;;  %1284 = vperm.xlu1 %2297, %v1108_v0  }
0x1026   : > { %1218 = vrot.lane.b32.xlu0 %v1188_v7, %s2429_s22 }
0x102b   : > { %v1206_v9 = vpop.permute.xlu0 %1205 }
0x102c   : > { %v1208_v10 = vsel %vm814_vm14, %v1206_v9, 0.0  ;;  %v1198_v11 = vpop.permute.xlu1 %1197 }
0x102d   : > { %v1200_v12 = vsel %vm814_vm14, %v1198_v11, 0.0  ;;  %1238 = vrot.lane.b32.xlu2 %v1208_v10, %s2437_s30  ;;  %2299 = vset.pattern.permute.xlu1 %v2419_v1 }
0x102e   : > { %1230 = vrot.lane.b32.xlu0 %v1200_v12, %s2435_s28  ;;  %1264 = vperm.xlu1 %2299, %v1108_v0  }
0x1034   : > { %v1210_v13 = vpop.permute.xlu1 %1209 }
0x1035   : > { %v1212_v14 = vsel %vm814_vm14, %v1210_v13, 0.0  ;;  %1249 = vrot.lane.b32.xlu2 %v1182_v56, %s2455_s3  ;;  %vm3130_vm14 = vcmask 719872  }
0x1036   : > { %1242 = vrot.lane.b32.xlu0 %v1212_v14, %s2456_s26  ;;  %2306 = vset.pattern.permute.xlu1 %v2433_v35 }
0x103d   : > { %1297 = vperm.xlu2 %2298, %v1108_v0  }
0x103e   : > { %1271 = vperm.xlu0 %2296, %v1108_v0  }
0x1045   : > { %2300 = vset.pattern.permute.xlu2 %v2419_v1 }
0x1046   : > { %2301 = vset.pattern.permute.xlu0 %v2419_v1 }
0x107f   : > { %v1227_v19 = vpop.permute.xlu2 %1226  ;;  %v1223_v15 = vpop.permute.xlu1 %1222 }
0x1087   : > { %v1239_v16 = vpop.permute.xlu2 %1238  ;;  %v1235_v18 = vpop.permute.xlu1 %1234 }
0x108f   : > { %v1250_v25 = vpop.permute.xlu2 %1249  ;;  %v1247_v28 = vpop.permute.xlu1 %1246 }
0x1097   : > { %v1298_v33 = vpop.permute.xlu2 %1297  ;;  %v1285_v36 = vpop.permute.xlu1 %1284 }
0x1098   : > { %v1219_v17 = vpop.permute.xlu0 %1218 }
0x1099   : > { %v1252_v21 = vsel %vm418_vm7, %v1183_v27, %v1219_v17 }
0x109a   : > { %v1253_v22 = vsel %vm420_vm8, %v1252_v21, %v1223_v15 }
0x109b   : > { %v1254_v35 = vsel %vm422_vm9, %v1253_v22, %v1227_v19 }
0x10a0   : > { %v1231_v23 = vpop.permute.xlu0 %1230  ;;  %v1265_v44 = vpop.permute.xlu1 %1264 }
0x10a1   : > { %v1255_v26 = vsel %vm424_vm10, %v1254_v35, %v1231_v23 }
0x10a2   : > { %v1256_v6 = vsel %vm426_vm11, %v1255_v26, %v1235_v18 }
0x10a3   : > { %v1257_v30 = vsel %vm3128_vm12, %v1256_v6, %v1239_v16  ;;  %vm3123_vm12 = vcmask 982016   ;;  %v1510_v6 = vld [vmem:[%s3105_s1 + $0xe8] sm:$0xff] }
0x10a8   : > { %v1243_v29 = vpop.permute.xlu0 %1242 }
0x10a9   : > { %v1258_v31 = vsel %vm3129_vm4, %v1257_v30, %v1243_v29  ;;  %vm1305_vm4 = vcmask 97280  }
0x10aa   : > { %v1259_v34 = vsel %vm3130_vm14, %v1258_v31, %v1247_v28  ;;  %vm3131_vm14 = vcmask 523264  }
0x10ab   : > { %v1261_v37 = vsel %vm1260_vm13, %v1259_v34, %v1250_v25 }
0x10ac   : > { %v1300_v38 = vmul.f32 %v1298_v33, %v1261_v37  ;;  %v1287_v39 = vmul.f32 %v1285_v36, %v1261_v37  ;;  %v1267_v48 = vmul.f32 %v1265_v44, %v1261_v37 }
0x10ae   : > { %1302 = vrot.lane.b32.xlu1 %v1300_v38, %s2457_s25  ;;  %1289 = vrot.lane.b32.xlu0 %v1287_v39, %s2429_s22  ;;  %v1269_v50 = vsel %vm1268_vm6, %v1267_v48, 0.0 }
0x10b0   : > { %v1272_v40 = vpop.permute.xlu0 %1271 }
0x10b1   : > { %v1274_v41 = vmul.f32 %v1272_v40, %v1261_v37 }
0x10b3   : > { %1276 = vrot.lane.b32.xlu2 %v1274_v41, %s2420_s4 }
0x10b6   : > { %239 = vperm.xlu0 %2301, %v226_v42  }
0x10bb   : > { %1310 = vperm.xlu2 %2300, %v1109_v43  }
0x10c3   : > { %2302 = vset.pattern.permute.xlu2 %v2422_v8 }
0x110d   : > { %v1277_v47 = vpop.permute.xlu2 %1276 }
0x110e   : > { %v1279_v46 = vsel %vm3125_vm0, 0.0, %v1277_v47 }
0x110f   : > { %v1281_v49 = vsel %vm3124_vm1, %v1279_v46, 0.0 }
0x1110   : > { %v1282_v52 = vadd.f32 %v1281_v49, %v1269_v50  ;;  %v1511_v49 = vld [vmem:[%s3105_s1 + $0xf0] sm:$0xff] }
0x1115   : > { %v1311_v61 = vpop.permute.xlu2 %1310 }
0x1120   : > { %v1290_v51 = vpop.permute.xlu0 %1289  ;;  %v1303_v54 = vpop.permute.xlu1 %1302 }
0x1121   : > { %v1292_v56 = vsel %vm418_vm7, 0.0, %v1290_v51  ;;  %v1306_v60 = vsel %vm1305_vm4, 0.0, %v1303_v54 }
0x1122   : > { %v1294_v57 = vsel %vm3123_vm12, %v1292_v56, 0.0 }
0x1123   : > { %v1295_v58 = vadd.f32 %v1294_v57, %v1282_v52 }
0x1125   : > { %v1307_v62 = vadd.f32 %v1306_v60, %v1295_v58  ;;  %v2458_v58 = vmov 4   ;;  %v2459_v60 = vmov 5  }
0x1127   : > { %v1313_v63 = vadd.f32 %v1311_v61, %v1307_v62  ;;  %v2460_v61 = vmov 7  }
0x1128   : > { %v240_v0 = vpop.permute.xlu0 %239 }
0x1129   : > { %v2860_v3 = vadd.f32 %v2776_v53, %v240_v0  ;;  %v1314_v4 = vadd.f32 3.0, %v1313_v63  ;;  %v1319_v5 = vmax.f32 %v1313_v63, 0.0  ;;  %v1321_v7 = vmin.f32 %v1313_v63, 0.0 }
0x112a   : > { %vm1324_vm5 = vcmp.ge.f32.partialorder %v1313_v63, -3.0  ;;  %vm1325_vm12 = vcmp.le.f32.partialorder %v1313_v63, 3.0  ;;  %v2461_v0 = vmov 6  }
0x112b   : > { %v1517_v9 = vsel %vm3131_vm14, %v2860_v3, 0.0  ;;  %v1315_v10 = vmax.f32 %v1314_v4, 0.0  ;;  %v1320_v12 = vmin.f32 %v1319_v5, 6.0  ;;  %v1322_v13 = vmul.f32 0.01, %v1321_v7  ;;  %vm1326_vm1 = vmand %vm1324_vm5, %vm1325_vm12 }
0x112c   : > { %1518 = vadd.xlane.f32.xlu0 %v1517_v9  ;;  %v1520_v27 = vmul.f32 %v2860_v3, %v2860_v3  ;;  %v2463_v7 = vmov 9  }
0x112d   : > { %v1316_v11 = vmin.f32 %v1315_v10, 6.0  ;;  %v1323_v15 = vadd.f32 %v1322_v13, %v1320_v12 }
0x112e   : > { %v1521_v21 = vsel %vm3131_vm14, %v1520_v27, 0.0  ;;  %v2467_v27 = vmov 10   ;;  %vm3135_vm14 = vcmask 539648  }
0x112f   : > { %v1317_v14 = vmul.f32 %v1316_v11, %v1313_v63 }
0x1131   : > { %v1318_v19 = vmul.f32 0.16666667, %v1317_v14 }
0x1133   : > { %v2864_v16 = vsel %vm1326_vm1, %v1318_v19, %v1323_v15 }
0x1134   : > { %v1328_v53 = vsel %vm499_vm15, %v2864_v16, 0.0  ;;  %v1331_v17 = vmul.f32 %v2864_v16, %v2864_v16 }
0x1135   : > { %1329 = vadd.xlane.f32.xlu1 %v1328_v53  ;;  %v2464_v53 = vmov 12  }
0x1136   : > { %v1332_v18 = vsel %vm499_vm15, %v1331_v17, 0.0  ;;  %v2465_v17 = vmov 14  }
0x1137   : > { %1333 = vadd.xlane.f32.xlu2 %v1332_v18  ;;  %v2466_v18 = vmov 11  }
0x113d   : > { %1522 = vadd.xlane.f32.xlu1 %v1521_v21  ;;  %v2468_v21 = vmov 13  }
0x1156   : > { %1571 = vrot.lane.b32.xlu1 %v1510_v6, %s2420_s4 }
0x119f   : > { %v1519_v35 = vpop.xlane.xlu0 %1518 }
0x11a8   : > { %v1330_v22 = vpop.xlane.xlu1 %1329 }
0x11aa   : > { %v1334_v23 = vpop.xlane.xlu2 %1333 }
0x11ab   : > { %v1335_v25 = vsel %vm3125_vm0, %v1330_v22, %v1334_v23  ;;  %v2469_v22 = vmov 15  }
0x11ac   : > { %1351 = vmatpush.msrb.mxu3 %v1335_v25 }
0x11ad   : > { %2159 = vmatmul.msk.f32.vlgmr.msrb.gmra.mxu3 %vm299_vm3, %v2584_v2 }
0x11b0   : > { %v1523_v26 = vpop.xlane.xlu1 %1522 }
0x11b1   : > { %v1524_v28 = vsel %vm3125_vm0, %v1519_v35, %v1523_v26 }
0x11b2   : > { %1540 = vmatpush.msra.mxu3 %v1524_v28 }
0x11b5   : > { %2165 = vmatmul.msk.f32.vlgmr.msra.gmra.mxu3 %vm299_vm3, %v2584_v2 }
0x11c8   : > { %v2888_v44 = vpop.permute.xlu1 %1571 }
0x1230   : > { %v2884_v29 = vpop.f32.mrf.mxu3 }
0x1231   : > { %v2934_v23 = vmul.f32 0.004132231, %v2884_v29 }
0x1233   : > { %v1357_v25 = vmul.f32 %v2934_v23, %v2934_v23 }
0x1238   : > { %v1542_v30 = vpop.f32.mrf.mxu3 }
0x1239   : > { %v1545_v31 = vmul.f32 0.0078125, %v1542_v30 }
0x123b   : > { %1566 = vperm.xlu0 %2301, %v1545_v31   ;;  %v1546_v33 = vmul.f32 %v1545_v31, %v1545_v31 }
0x123d   : > { %1548 = vrot.lane.b32.xlu2 %v1546_v33, %s2420_s4 }
0x1243   : > { %2304 = vset.pattern.permute.xlu0 %v2422_v8 }
0x1297   : > { %v1549_v34 = vpop.permute.xlu2 %1548 }
0x1298   : > { %v1551_v36 = vsub.f32 %v1545_v31, %v1549_v34 }
0x129a   : > { %v1552_v37 = vmax.f32 %v1551_v36, 0.0 }
0x129c   : > { %v1553_v38 = vadd.f32 1e-05, %v1552_v37 }
0x129e   : > { %2337 = vrsqrt.f32 %v1553_v38  ;;  %vm1560_vm1 = vweird.f32 %v1553_v38 }
0x12a4   : > { %v2338_v39 = vpop.eup %2337 }
0x12a5   : > { %v1555_v40 = vmul.f32 %v2338_v39, %v1553_v38  ;;  %vm1561_vm5 = vweird.f32 %v2338_v39 }
0x12a6   : > { %vm1562_vm12 = vmor %vm1560_vm1, %vm1561_vm5  ;;  %vm3136_vm5 = vcmask 629760  }
0x12a7   : > { %v1556_v41 = vmul.f32 %v2338_v39, %v1555_v40 }
0x12a9   : > { %v1557_v42 = vmul.f32 0.5, %v1556_v41 }
0x12ab   : > { %v1558_v43 = vsub.f32 1.5, %v1557_v42 }
0x12ad   : > { %v1559_v47 = vmul.f32 %v2338_v39, %v1558_v43  ;;  %v1567_v51 = vpop.permute.xlu0 %1566 }
0x12ae   : > { %v1569_v52 = vsub.f32 %v2860_v3, %v1567_v51  ;;  %v2462_v3 = vmov 8  }
0x12af   : > { %v1563_v46 = vsel %vm1562_vm12, %v2338_v39, %v1559_v47  ;;  %vm1664_vm12 = vcmask 703488  }
0x12b0   : > { %v1574_v48 = vmul.f32 %v2888_v44, %v1563_v46 }
0x12b2   : > { %1577 = vperm.xlu2 %2302, %v1574_v48  }
0x12ba   : > { %2303 = vset.pattern.permute.xlu2 %v2419_v1 }
0x12bb   : > { %1583 = vperm.xlu2 %2303, %v1511_v49  }
0x12c3   : > { %2305 = vset.pattern.permute.xlu2 %v2431_v32  ;;  %v1512_v32 = vld [vmem:[%s3105_s1 + $0xf8] sm:$0xff] }
0x130c   : > { %v1578_v50 = vpop.permute.xlu2 %1577 }
0x130d   : > { %v1580_v54 = vmul.f32 %v1578_v50, %v1569_v52 }
0x1315   : > { %v2897_v56 = vpop.permute.xlu2 %1583 }
0x1316   : > { %v2900_v57 = vadd.f32 %v2897_v56, %v1580_v54 }
0x1318   : > { %1597 = vrot.lane.b32.xlu2 %v2900_v57, %s2426_s16  ;;  %1593 = vrot.lane.b32.xlu0 %v2900_v57, %s2423_s7  ;;  %s3134_s7 = smov 21   ;;  %v1587_v29 = vsel %vm299_vm3, %v2900_v57, 0.0  ;;  %s2470_s16 = smov 13  }
0x1319   : > { %1589 = vrot.lane.b32.xlu1 %v2900_v57, %s2424_s8  ;;  %s3137_s8 = smov 3  }
0x1320   : > { %1609 = vrot.lane.b32.xlu2 %v2900_v57, %s3132_s29  ;;  %1605 = vrot.lane.b32.xlu0 %v2900_v57, %s2428_s21  ;;  %s3138_s21 = smov 2  }
0x1321   : > { %1601 = vrot.lane.b32.xlu1 %v2900_v57, %s3133_s6 }
0x1328   : > { %1668 = vperm.xlu2 %2305, %v1512_v32   ;;  %1655 = vperm.xlu0 %2304, %v1512_v32  }
0x1329   : > { %1681 = vperm.xlu1 %2306, %v1512_v32  }
0x1330   : > { %2307 = vset.pattern.permute.xlu2 %v2458_v58  ;;  %2309 = vset.pattern.permute.xlu0 %v2461_v0 }
0x1331   : > { %2308 = vset.pattern.permute.xlu1 %v2459_v60  ;;  %1693 = vperm.xlu2 %2307, %v1512_v32  }
0x1332   : > { %1706 = vperm.xlu1 %2308, %v1512_v32  }
0x1339   : > { %2310 = vset.pattern.permute.xlu2 %v2460_v61 }
0x133a   : > { %1637 = vrot.lane.b32.xlu1 %v2900_v57, %s3134_s7 }
0x133b   : > { %2311 = vset.pattern.permute.xlu1 %v2462_v3 }
0x1372   : > { %v1598_v62 = vpop.permute.xlu2 %1597 }
0x1373   : > { %v1600_v63 = vsel %vm299_vm3, %v1598_v62, 0.0 }
0x1374   : > { %1622 = vrot.lane.b32.xlu2 %v1600_v63, %s2430_s23 }
0x137a   : > { %v1610_v4 = vpop.permute.xlu2 %1609 }
0x137b   : > { %v1612_v5 = vsel %vm299_vm3, %v1610_v4, 0.0 }
0x137c   : > { %1732 = vperm.xlu2 %2310, %v1512_v32  }
0x1382   : > { %v1669_v35 = vpop.permute.xlu2 %1668 }
0x1384   : > { %1634 = vrot.lane.b32.xlu2 %v1612_v5, %s2437_s30 }
0x1385   : > { %2312 = vset.pattern.permute.xlu2 %v2463_v7 }
0x138a   : > { %v1594_v9 = vpop.permute.xlu0 %1593 }
0x138b   : > { %v1596_v10 = vsel %vm299_vm3, %v1594_v9, 0.0  ;;  %v1590_v11 = vpop.permute.xlu1 %1589  ;;  %v1694_v28 = vpop.permute.xlu2 %1693 }
0x138c   : > { %v1592_v12 = vsel %vm299_vm3, %v1590_v11, 0.0  ;;  %1618 = vrot.lane.b32.xlu0 %v1596_v10, %s2434_s27  ;;  %1758 = vperm.xlu2 %2312, %v1512_v32  }
0x138d   : > { %1614 = vrot.lane.b32.xlu1 %v1592_v12, %s2429_s22 }
0x1392   : > { %v1606_v13 = vpop.permute.xlu0 %1605 }
0x1393   : > { %v1608_v14 = vsel %vm299_vm3, %v1606_v13, 0.0  ;;  %v1602_v19 = vpop.permute.xlu1 %1601  ;;  %v1513_v13 = vld [vmem:[%s3105_s1 + $0x100] sm:$0xff] }
0x1394   : > { %v1604_v15 = vsel %vm299_vm3, %v1602_v19, 0.0  ;;  %1630 = vrot.lane.b32.xlu0 %v1608_v14, %s2432_s24  ;;  %2315 = vset.pattern.permute.xlu2 %v2464_v53  ;;  %s2472_s24 = smov 23  }
0x1395   : > { %1626 = vrot.lane.b32.xlu1 %v1604_v15, %s2435_s28  ;;  %1798 = vperm.xlu2 %2315, %v1512_v32   ;;  %s2473_s28 = smov 34  }
0x139a   : > { %v1656_v30 = vpop.permute.xlu0 %1655 }
0x139b   : > { %v1682_v26 = vpop.permute.xlu1 %1681 }
0x139c   : > { %1719 = vperm.xlu0 %2309, %v1512_v32  }
0x139d   : > { %1745 = vperm.xlu1 %2311, %v1512_v32   ;;  %2317 = vset.pattern.permute.xlu2 %v2465_v17 }
0x139e   : > { %1824 = vperm.xlu2 %2317, %v1512_v32  }
0x13a4   : > { %2314 = vset.pattern.permute.xlu0 %v2466_v18  ;;  %v1707_v6 = vpop.permute.xlu1 %1706 }
0x13a5   : > { %2313 = vset.pattern.permute.xlu1 %v2467_v27  ;;  %1785 = vperm.xlu0 %2314, %v1512_v32  }
0x13a6   : > { %1772 = vperm.xlu1 %2313, %v1512_v32   ;;  %2320 = vset.pattern.permute.xlu2 %v2419_v1 }
0x13ac   : > { %v1638_v33 = vpop.permute.xlu1 %1637 }
0x13ad   : > { %2319 = vset.pattern.permute.xlu0 %v2419_v1 }
0x13ae   : > { %2316 = vset.pattern.permute.xlu1 %v2468_v21  ;;  %1649 = vperm.xlu0 %2319, %v1512_v32  }
0x13af   : > { %1810 = vperm.xlu1 %2316, %v1512_v32  }
0x13b7   : > { %2318 = vset.pattern.permute.xlu1 %v2469_v22 }
0x13b8   : > { %1837 = vperm.xlu1 %2318, %v1512_v32  }
0x13c0   : > { %1359 = vrot.lane.b32.xlu1 %v1357_v25, %s2420_s4 }
0x13c1   : > { %2321 = vset.pattern.permute.xlu1 %v2422_v8 }
0x13ce   : > { %v1623_v31 = vpop.permute.xlu2 %1622 }
0x13d6   : > { %v1733_v36 = vpop.permute.xlu2 %1732 }
0x13de   : > { %v1635_v43 = vpop.permute.xlu2 %1634 }
0x13e6   : > { %v1759_v61 = vpop.permute.xlu2 %1758 }
0x13ef   : > { %v1799_v4 = vpop.permute.xlu2 %1798 }
0x13f8   : > { %v1825_v19 = vpop.permute.xlu2 %1824 }
0x13fe   : > { %v1619_v34 = vpop.permute.xlu0 %1618 }
0x13ff   : > { %v1615_v37 = vpop.permute.xlu1 %1614 }
0x1400   : > { %v1640_v38 = vsel %vm418_vm7, %v1587_v29, %v1615_v37 }
0x1401   : > { %v1641_v39 = vsel %vm420_vm8, %v1640_v38, %v1619_v34 }
0x1402   : > { %v1642_v8 = vsel %vm422_vm9, %v1641_v39, %v1623_v31 }
0x1406   : > { %v1631_v40 = vpop.permute.xlu0 %1630 }
0x1407   : > { %v1627_v41 = vpop.permute.xlu1 %1626 }
0x1408   : > { %v1643_v42 = vsel %vm424_vm10, %v1642_v8, %v1627_v41 }
0x1409   : > { %v1644_v47 = vsel %vm426_vm11, %v1643_v42, %v1631_v40 }
0x140a   : > { %v1645_v46 = vsel %vm3135_vm14, %v1644_v47, %v1635_v43  ;;  %vm1677_vm14 = vcmask 711680  }
0x140b   : > { %v2949_v48 = vsel %vm3136_vm5, %v1645_v46, %v1638_v33  ;;  %vm3140_vm5 = vcmask 695296  }
0x140c   : > { %v1696_v49 = vmul.f32 %v1694_v28, %v2949_v48  ;;  %v1684_v50 = vmul.f32 %v1682_v26, %v2949_v48  ;;  %v1658_v51 = vmul.f32 %v1656_v30, %v2949_v48  ;;  %v1735_v32 = vmul.f32 %v1733_v36, %v2949_v48 }
0x140d   : > { %v1671_v58 = vmul.f32 %v1669_v35, %v2949_v48  ;;  %v1761_v63 = vmul.f32 %v1759_v61, %v2949_v48  ;;  %v1709_v0 = vmul.f32 %v1707_v6, %v2949_v48  ;;  %v1801_v7 = vmul.f32 %v1799_v4, %v2949_v48 }
0x140e   : > { %1698 = vrot.lane.b32.xlu0 %v1696_v49, %s2429_s22  ;;  %1686 = vrot.lane.b32.xlu1 %v1684_v50, %s3137_s8  ;;  %v1720_v54 = vpop.permute.xlu0 %1719  ;;  %s2471_s22 = smov 24   ;;  %v1827_v17 = vmul.f32 %v1825_v19, %v2949_v48 }
0x140f   : > { %1660 = vrot.lane.b32.xlu2 %v1658_v51, %s2420_s4  ;;  %v1746_v52 = vpop.permute.xlu1 %1745  ;;  %v1722_v57 = vmul.f32 %v1720_v54, %v2949_v48 }
0x1410   : > { %v1748_v9 = vmul.f32 %v1746_v52, %v2949_v48 }
0x1416   : > { %1737 = vrot.lane.b32.xlu0 %v1735_v32, %s2444_s5  ;;  %1724 = vrot.lane.b32.xlu1 %v1722_v57, %s2470_s16  ;;  %s2176_s5 = smul.u32 24, %s2514_s13 }
0x1417   : > { %1673 = vrot.lane.b32.xlu2 %v1671_v58, %s3138_s21  ;;  %v1786_v10 = vpop.permute.xlu0 %1785 }
0x1418   : > { %v1773_v60 = vpop.permute.xlu1 %1772  ;;  %v1788_v14 = vmul.f32 %v1786_v10, %v2949_v48 }
0x1419   : > { %v1775_v62 = vmul.f32 %v1773_v60, %v2949_v48 }
0x141e   : > { %1777 = vrot.lane.b32.xlu0 %v1775_v62, %s2471_s22  ;;  %1763 = vrot.lane.b32.xlu1 %v1761_v63, %s2472_s24 }
0x141f   : > { %1711 = vrot.lane.b32.xlu2 %v1709_v0, %s2457_s25  ;;  %s3139_s25 = smov 36  }
0x1420   : > { %v1650_v34 = vpop.permute.xlu0 %1649 }
0x1421   : > { %v1811_v3 = vpop.permute.xlu1 %1810 }
0x1422   : > { %v1813_v5 = vmul.f32 %v1811_v3, %v2949_v48 }
0x1426   : > { %1815 = vrot.lane.b32.xlu0 %v1813_v5, %s2473_s28  ;;  %1803 = vrot.lane.b32.xlu1 %v1801_v7, %s2430_s23  ;;  %s2475_s23 = smov 35  }
0x1427   : > { %1750 = vrot.lane.b32.xlu2 %v1748_v9, %s2434_s27 }
0x142a   : > { %v1838_v11 = vpop.permute.xlu1 %1837 }
0x142b   : > { %v1840_v12 = vmul.f32 %v1838_v11, %v2949_v48 }
0x142e   : > { %1849 = vperm.xlu0 %2319, %v1513_v13   ;;  %1842 = vrot.lane.b32.xlu1 %v1840_v12, %s3139_s25 }
0x142f   : > { %1790 = vrot.lane.b32.xlu2 %v1788_v14, %s2474_s17 }
0x1432   : > { %v1360_v15 = vpop.permute.xlu1 %1359 }
0x1433   : > { %v1362_v53 = vsub.f32 %v2934_v23, %v1360_v15 }
0x1435   : > { %v1363_v18 = vmax.f32 %v1362_v53, 0.0 }
0x1437   : > { %v1364_v27 = vadd.f32 1e-05, %v1363_v18  ;;  %1829 = vrot.lane.b32.xlu2 %v1827_v17, %s2475_s23  ;;  %s2067_s23 = scalar_lea.hbm %s3106_s2, %s2176_s5 }
0x1438   : > { %s2070_s14 = sshll.u32 %s2067_s23, 4  ;;  %s2071_s14 = int_to_ptr.hbm [resolvable:$true] %s2070_s14 }
0x1439   : > { %2339 = vrsqrt.f32 %v1364_v27  ;;  %vm1371_vm11 = vweird.f32 %v1364_v27  ;;  %s2369_s29 = sshra.s32 %s2071_s14, 4  ;;  %s2370_s29 = int_to_ptr.hbm [resolvable:$true] %s2369_s29 }
0x143a   : > { %s2371_s6 = scalar_lea.hbm %s2370_s29, 24  ;;  %p2376_p0 = scmp.lt.s32.totalorder %s2370_s29, %s3106_s2 }
0x143b   : > { %p2372_p11 = scmp.ne.s32.totalorder %s2370_s29, %s2371_s6 }
0x143d   : > { %p2373_p12 = pnand %p2372_p11, %p2531_p5 }
0x143f   : > { %v2340_v21 = vpop.eup %2339  ;;  %1377 = vperm.xlu2 %2320, %v2934_v23   ;;  %v1652_v23 = vmul.f32 %v1650_v34, %v2949_v48  ;;  %p2374_p13 = pneg %p2373_p12 }
0x1440   : > { %v1366_v22 = vmul.f32 %v2340_v21, %v1364_v27  ;;  %vm1372_vm10 = vweird.f32 %v2340_v21 }
0x1441   : > { %vm1373_vm1 = vmor %vm1371_vm11, %vm1372_vm10  ;;  %v1653_v39 = vsel %vm3140_vm5, %v1652_v23, 0.0  ;;  %vm1702_vm10 = vcmask 785408   ;;  %vm3141_vm11 = vcmask 23552   ;;  %vm1754_vm5 = vcmask 875520  }
0x1442   : > { %v1367_v25 = vmul.f32 %v2340_v21, %v1366_v22 }
0x1444   : > { %v1368_v35 = vmul.f32 0.5, %v1367_v25 }
0x1446   : > { %v1369_v26 = vsub.f32 1.5, %v1368_v35 }
0x1448   : > { %v1370_v28 = vmul.f32 %v2340_v21, %v1369_v26 }
0x144a   : > { %v1374_v6 = vsel %vm1373_vm1, %v2340_v21, %v1370_v28  ;;  %vm3142_vm1 = vcmask 719872  }
0x144b   : > { %v1381_v30 = vmul.f32 %v1374_v6, %v2799_v45 }
0x144d   : > { %1384 = vperm.xlu1 %2321, %v1381_v30  }
0x1469   : > { %v1661_v31 = vpop.permute.xlu2 %1660 }
0x146a   : > { %v1663_v36 = vsel %vm3125_vm0, 0.0, %v1661_v31  ;;  %vm1715_vm0 = vcmask 793600  }
0x146b   : > { %v1665_v38 = vsel %vm1664_vm12, %v1663_v36, 0.0  ;;  %vm1740_vm12 = vcmask 113664  }
0x146c   : > { %v1666_v41 = vadd.f32 %v1665_v38, %v1653_v39 }
0x1471   : > { %v1674_v33 = vpop.permute.xlu2 %1673 }
0x1472   : > { %v1676_v29 = vsel %vm645_vm2, 0.0, %v1674_v33 }
0x1473   : > { %v1678_v40 = vsel %vm1677_vm14, %v1676_v29, 0.0  ;;  %vm1727_vm14 = vcmask 105472  }
0x1474   : > { %v1679_v42 = vadd.f32 %v1678_v40, %v1666_v41 }
0x1479   : > { %v1712_v37 = vpop.permute.xlu2 %1711 }
0x147a   : > { %v1714_v51 = vsel %vm1305_vm4, 0.0, %v1712_v37  ;;  %vm1780_vm4 = vcmask 195584  }
0x147b   : > { %v1716_v54 = vsel %vm1715_vm0, %v1714_v51, 0.0  ;;  %vm1793_vm0 = vcmask 203776  }
0x1480   : > { %v1699_v8 = vpop.permute.xlu0 %1698  ;;  %v1687_v45 = vpop.permute.xlu1 %1686 }
0x1481   : > { %v1701_v43 = vsel %vm418_vm7, 0.0, %v1699_v8  ;;  %v1689_v47 = vsel %vm3141_vm11, 0.0, %v1687_v45  ;;  %v1751_v48 = vpop.permute.xlu2 %1750  ;;  %vm3143_vm7 = vcmask 801792   ;;  %vm1768_vm11 = vcmask 883712  }
0x1482   : > { %v1690_v46 = vsel %vm3142_vm1, %v1689_v47, 0.0  ;;  %v1703_v50 = vsel %vm1702_vm10, %v1701_v43, 0.0  ;;  %v1753_v3 = vsel %vm420_vm8, 0.0, %v1751_v48  ;;  %vm1766_vm10 = vcmask 187392  }
0x1483   : > { %v1691_v49 = vadd.f32 %v1690_v46, %v1679_v42  ;;  %v1755_v7 = vsel %vm1754_vm5, %v1753_v3, 0.0  ;;  %vm3144_vm8 = vcmask 900096   ;;  %vm1832_vm1 = vcmask 285696  }
0x1485   : > { %v1704_v52 = vadd.f32 %v1703_v50, %v1691_v49 }
0x1487   : > { %v1717_v60 = vadd.f32 %v1716_v54, %v1704_v52 }
0x1488   : > { %v1738_v57 = vpop.permute.xlu0 %1737  ;;  %v1725_v32 = vpop.permute.xlu1 %1724 }
0x1489   : > { %v1741_v58 = vsel %vm1740_vm12, 0.0, %v1738_v57  ;;  %v1728_v61 = vsel %vm1727_vm14, 0.0, %v1725_v32  ;;  %v1791_v5 = vpop.permute.xlu2 %1790  ;;  %vm1820_vm12 = vcmask 973824   ;;  %vm3145_vm14 = vcmask 965632  }
0x148a   : > { %v1729_v62 = vsel %vm3143_vm7, %v1728_v61, 0.0  ;;  %v1742_v0 = vsel %vm1260_vm13, %v1741_v58, 0.0  ;;  %v1794_v53 = vsel %vm1793_vm0, 0.0, %v1791_v5  ;;  %vm1818_vm13 = vcmask 277504  }
0x148b   : > { %v1730_v63 = vadd.f32 %v1729_v62, %v1717_v60  ;;  %v1795_v27 = vsel %vm3144_vm8, %v1794_v53, 0.0  ;;  %vm3147_vm7 = vcmask 293888   ;;  %vm3149_vm8 = vcmask 1041408  }
0x148d   : > { %v1743_v4 = vadd.f32 %v1742_v0, %v1730_v63 }
0x148f   : > { %v1756_v12 = vadd.f32 %v1755_v7, %v1743_v4 }
0x1490   : > { %v1778_v9 = vpop.permute.xlu0 %1777  ;;  %v1764_v10 = vpop.permute.xlu1 %1763 }
0x1491   : > { %v1781_v11 = vsel %vm1780_vm4, 0.0, %v1778_v9  ;;  %v1767_v13 = vsel %vm1766_vm10, 0.0, %v1764_v10  ;;  %v1830_v18 = vpop.permute.xlu2 %1829 }
0x1492   : > { %v1769_v14 = vsel %vm1768_vm11, %v1767_v13, 0.0  ;;  %v1782_v15 = vsel %vm1268_vm6, %v1781_v11, 0.0  ;;  %v1833_v6 = vsel %vm1832_vm1, 0.0, %v1830_v18  ;;  %vm3146_vm6 = vcmask 982016  }
0x1493   : > { %v1770_v19 = vadd.f32 %v1769_v14, %v1756_v12  ;;  %v1834_v34 = vsel %vm3146_vm6, %v1833_v6, 0.0 }
0x1495   : > { %v1783_v17 = vadd.f32 %v1782_v15, %v1770_v19 }
0x1497   : > { %v1796_v35 = vadd.f32 %v1795_v27, %v1783_v17  ;;  %v1111_v17 = vld [vmem:[%s3105_s1 + $0xd8] sm:$0x3]  ;;  %v671_v27 = vadd.f32 3.0, %v2779_v59  ;;  %v2146_v59 = vmul.f32 -1.442695, %v2689_v24 }
0x1498   : > { %v1816_v21 = vpop.permute.xlu0 %1815  ;;  %v1804_v22 = vpop.permute.xlu1 %1803 }
0x1499   : > { %v1819_v25 = vsel %vm1818_vm13, 0.0, %v1816_v21  ;;  %v1806_v26 = vsel %vm422_vm9, 0.0, %v1804_v22  ;;  %v1378_v57 = vpop.permute.xlu2 %1377  ;;  %vm3148_vm13 = vcmask 7168   ;;  %v673_v22 = vmul.f32 0.16666667, %v671_v27 }
0x149a   : > { %v1807_v28 = vsel %vm3145_vm14, %v1806_v26, 0.0  ;;  %v1821_v31 = vsel %vm1820_vm12, %v1819_v25, 0.0  ;;  %v1380_v32 = vsub.f32 %v2864_v16, %v1378_v57  ;;  %v1110_v16 = vld [vmem:[%s3105_s1 + $0xd0] sm:$0x1]  ;;  %2341 = vpow2.f32 %v2146_v59 }
0x149b   : > { %v1808_v30 = vadd.f32 %v1807_v28, %v1796_v35  ;;  %v674_v26 = vmax.f32 %v673_v22, 0.0 }
0x149d   : > { %v1822_v33 = vadd.f32 %v1821_v31, %v1808_v30  ;;  %v1112_v30 = vld [vmem:[%s3105_s1 + $0xe0] sm:$0xff] }
0x149f   : > { %v1835_v36 = vadd.f32 %v1834_v34, %v1822_v33 }
0x14a0   : > { %v1843_v37 = vpop.permute.xlu1 %1842  ;;  %v1850_v38 = vpop.permute.xlu0 %1849 }
0x14a1   : > { %v1845_v23 = vsel %vm3147_vm7, 0.0, %v1843_v37  ;;  %v2342_v31 = vpop.eup %2341 }
0x14a2   : > { %v1846_v29 = vadd.f32 %v1845_v23, %v1835_v36  ;;  %v601_v33 = vadd.f32 1.0, %v2342_v31 }
0x14a4   : > { %v1852_v39 = vadd.f32 %v1850_v38, %v1846_v29  ;;  %2343 = vrcp.f32 %v601_v33  ;;  %vm607_vm1 = vweird.f32 %v601_v33  ;;  %v613_v29 = vand.u32 2147483648, %v601_v33 }
0x14a6   : > { %v1853_v40 = vadd.f32 3.0, %v1852_v39  ;;  %v1858_v41 = vmax.f32 %v1852_v39, 0.0  ;;  %v1860_v8 = vmin.f32 %v1852_v39, 0.0  ;;  %vm1863_vm9 = vcmp.ge.f32.partialorder %v1852_v39, -3.0 }
0x14a7   : > { %vm1864_vm5 = vcmp.le.f32.partialorder %v1852_v39, 3.0 }
0x14a8   : > { %v1854_v45 = vmax.f32 %v1853_v40, 0.0  ;;  %v1859_v43 = vmin.f32 %v1858_v41, 6.0  ;;  %v1861_v47 = vmul.f32 0.01, %v1860_v8  ;;  %vm1865_vm4 = vmand %vm1863_vm9, %vm1864_vm5  ;;  %v614_v41 = vor.u32 1.1754944e-38, %v613_v29 }
0x14aa   : > { %v1855_v42 = vmin.f32 %v1854_v45, 6.0  ;;  %v1862_v48 = vadd.f32 %v1861_v47, %v1859_v43  ;;  %v2344_v34 = vpop.eup %2343 }
0x14ab   : > { %v603_v36 = vmul.f32 %v2344_v34, %v601_v33  ;;  %vm608_vm12 = vweird.f32 %v2344_v34 }
0x14ac   : > { %v1856_v46 = vmul.f32 %v1855_v42, %v1852_v39  ;;  %v611_v39 = vand.u32 2147483647, %v601_v33  ;;  %vm609_vm14 = vmor %vm607_vm1, %vm608_vm12  ;;  %vm3150_vm12 = vcmask 1041408  }
0x14ad   : > { %v604_v37 = vsub.f32 1.0, %v603_v36 }
0x14ae   : > { %v1857_v49 = vmul.f32 0.16666667, %v1856_v46  ;;  %vm612_vm6 = vcmp.eq.f32.partialorder %v611_v39, 8.507059e+37  ;;  %v1515_v39 = vld [vmem:[%s3105_s1 + $0x110] sm:$0x3] }
0x14af   : > { %v605_v23 = vmul.f32 %v2344_v34, %v604_v37 }
0x14b0   : > { %v2998_v50 = vsel %vm1865_vm4, %v1857_v49, %v1862_v48 }
0x14b1   : > { %v1867_v51 = vsel %vm499_vm15, %v2998_v50, 0.0  ;;  %v1870_v52 = vmul.f32 %v2998_v50, %v2998_v50  ;;  %v606_v38 = vadd.f32 %v2344_v34, %v605_v23 }
0x14b2   : > { %1868 = vadd.xlane.f32.xlu0 %v1867_v51 }
0x14b3   : > { %v1871_v54 = vsel %vm499_vm15, %v1870_v52, 0.0  ;;  %v610_v8 = vsel %vm609_vm14, %v2344_v34, %v606_v38 }
0x14b4   : > { %1872 = vadd.xlane.f32.xlu2 %v1871_v54  ;;  %v615_v24 = vsel %vm612_vm6, %v614_v41, %v610_v8  ;;  %v1516_v8 = vld [vmem:[%s3105_s1 + $0x118] sm:$0xff] }
0x14b5   : > { %v681_v45 = vperm.slane %v615_v24, 0 }
0x14bf   : > { %v1385_v58 = vpop.permute.xlu1 %1384 }
0x14c0   : > { %v1387_v60 = vmul.f32 %v1385_v58, %v1380_v32 }
0x14c2   : > { %v1388_v61 = vadd.f32 %v1387_v60, %v2807_v55 }
0x14c4   : > { %v1389_v62 = vadd.f32 3.0, %v1388_v61  ;;  %v1394_v63 = vmax.f32 %v1388_v61, 0.0  ;;  %v1396_v0 = vmin.f32 %v1388_v61, 0.0  ;;  %vm1399_vm10 = vcmp.ge.f32.partialorder %v1388_v61, -3.0 }
0x14c5   : > { %vm1400_vm11 = vcmp.le.f32.partialorder %v1388_v61, 3.0 }
0x14c6   : > { %v1390_v3 = vmax.f32 %v1389_v62, 0.0  ;;  %v1395_v5 = vmin.f32 %v1394_v63, 6.0  ;;  %v1397_v7 = vmul.f32 0.01, %v1396_v0  ;;  %vm1401_vm0 = vmand %vm1399_vm10, %vm1400_vm11 }
0x14c8   : > { %v1391_v4 = vmin.f32 %v1390_v3, 6.0  ;;  %v1398_v11 = vadd.f32 %v1397_v7, %v1395_v5 }
0x14ca   : > { %v1392_v9 = vmul.f32 %v1391_v4, %v1388_v61 }
0x14cc   : > { %v1393_v10 = vmul.f32 0.16666667, %v1392_v9 }
0x14ce   : > { %v3010_v12 = vsel %vm1401_vm0, %v1393_v10, %v1398_v11 }
0x14cf   : > { %1421 = vmatpush.msra.mxu0 %v3010_v12  ;;  %v1445_v55 = vsel %vm499_vm15, %v3010_v12, 0.0 }
0x14d0   : > { %1446 = vadd.xlane.f32.xlu1 %v1445_v55  ;;  %2160 = vmatmul.msk.f32.vlgmr.msra.gmra.mxu0 %vm299_vm3, %v1110_v16 }
0x1525   : > { %v1869_v13 = vpop.xlane.xlu0 %1868 }
0x1527   : > { %v1873_v14 = vpop.xlane.xlu2 %1872 }
0x1528   : > { %v1874_v19 = vsel %vm3148_vm13, %v1869_v13, %v1873_v14 }
0x1529   : > { %1890 = vmatpush.msrb.mxu0 %v1874_v19 }
0x152a   : > { %2166 = vmatmul.msk.f32.vlgmr.msrb.gmra.mxu0 %vm299_vm3, %v2584_v2  ;;  %v675_v2 = vmin.f32 %v674_v26, 1.0 }
0x1543   : > { %v1447_v15 = vpop.xlane.xlu1 %1446 }
0x1544   : > { %v1448_v53 = vmul.f32 0.008264462, %v1447_v15 }
0x1546   : > { %1467 = vmatpush.msra.mxu1 %v1448_v53 }
0x1547   : > { %2162 = vmatmul.msk.f32.vlgmr.msra.gmra.mxu1 %vm299_vm3, %v1111_v17 }
0x154d   : > { %v3023_v18 = vpop.f32.mrf.mxu0 }
0x154e   : > { %v2161_v7 = vmul.f32 -1.442695, %v3023_v18 }
0x15a7   : > { %v1892_v21 = vpop.f32.mrf.mxu0 }
0x15a8   : > { %v1895_v25 = vmul.f32 0.004132231, %v1892_v21 }
0x15aa   : > { %1916 = vperm.xlu2 %2320, %v1895_v25   ;;  %v1896_v35 = vmul.f32 %v1895_v25, %v1895_v25 }
0x15ac   : > { %1898 = vrot.lane.b32.xlu0 %v1896_v35, %s2420_s4  ;;  %s132_s4 = sand.u32 1, %s2409_s10  }
0x15ad   : > { %s2175_s7 = smul.u32 24, %s132_s4  ;;  %s2056_s13 = scalar_lea.sflag [#allocation3], %s132_s4 }
0x15af   : > { %s3038_s8 = scalar_lea.vmem [#allocation2], %s2175_s7  ;;  %s2375_s7 = scalar_lea.hbm %s3106_s2, 48 }
0x15b0   : > { %s2068_s27 = sshll.u32 %s3038_s8, 4  ;;  %p2377_p1 = scmp.lt.s32.totalorder %s2375_s7, %s2371_s6  ;;  %s2069_s27 = int_to_ptr.vmem [resolvable:$true] %s2068_s27 }
0x15b2   : > { %678 = vperm.xlu2 %2320, %v675_v2   ;;  %p2378_p2 = por %p2377_p1, %p2376_p0 }
0x15b4   : > { %p2379_p3 = pnand %p2378_p2, %p2374_p13 }
0x15c4   : > { %v1469_v28 = vpop.f32.mrf.mxu1 }
0x15c5   : > { %v1472_v6 = vmax.f32 %v1469_v28, 0.0 }
0x15c7   : > { %2163 = vmatpush.msk.msra.mxu2 %vm3149_vm8, %v1472_v6 }
0x15c8   : > { %2164 = vmatmul.msk.f32.vlgmr.msra.gmra.mxu2 %vm645_vm2, %v1112_v30 }
0x1604   : > { %v1917_v40 = vpop.permute.xlu2 %1916 }
0x1605   : > { %v1919_v11 = vsub.f32 %v2998_v50, %v1917_v40  ;;  %v1514_v40 = vld [vmem:[%s3105_s1 + $0x108] sm:$0x1] }
0x160c   : > { %v679_v42 = vpop.permute.xlu2 %678 }
0x160d   : > { %v682_v43 = vadd.f32 %v681_v45, %v679_v42 }
0x160f   : > { %v683_v47 = vmul.f32 %v682_v43, %v2678_v20 }
0x1611   : > { %v2049_v46 = vsel %vm499_vm15, %v683_v47, 0.0 }
0x1612   : > { %2052 = vst [vmem:[%s3038_s8] sm:$0xff] %v2049_v46 }
0x161e   : > { %v1899_v49 = vpop.permute.xlu0 %1898 }
0x161f   : > { %v1901_v48 = vsub.f32 %v1895_v25, %v1899_v49 }
0x1621   : > { %v1902_v51 = vmax.f32 %v1901_v48, 0.0 }
0x1623   : > { %v1903_v52 = vadd.f32 1e-05, %v1902_v51 }
0x1625   : > { %2345 = vrsqrt.f32 %v1903_v52  ;;  %vm1910_vm9 = vweird.f32 %v1903_v52 }
0x1626   : > { %2347 = vpow2.f32 %v2161_v7 }
0x162b   : > { %v2346_v54 = vpop.eup %2345 }
0x162c   : > { %v1905_v57 = vmul.f32 %v2346_v54, %v1903_v52  ;;  %vm1911_vm7 = vweird.f32 %v2346_v54  ;;  %v2348_v9 = vpop.eup %2347 }
0x162d   : > { %vm1912_vm5 = vmor %vm1910_vm9, %vm1911_vm7  ;;  %v1429_v10 = vadd.f32 1.0, %v2348_v9 }
0x162e   : > { %v1906_v32 = vmul.f32 %v2346_v54, %v1905_v57 }
0x162f   : > { %2349 = vrcp.f32 %v1429_v10  ;;  %vm1435_vm0 = vweird.f32 %v1429_v10  ;;  %v1439_v6 = vand.u32 2147483647, %v1429_v10 }
0x1630   : > { %v1907_v58 = vmul.f32 0.5, %v1906_v32 }
0x1631   : > { %vm1440_vm1 = vcmp.eq.f32.partialorder %v1439_v6, 8.507059e+37 }
0x1632   : > { %v1908_v60 = vsub.f32 1.5, %v1907_v58 }
0x1634   : > { %v1909_v61 = vmul.f32 %v2346_v54, %v1908_v60 }
0x1635   : > { %v2350_v55 = vpop.eup %2349 }
0x1636   : > { %v1913_v20 = vsel %vm1912_vm5, %v2346_v54, %v1909_v61  ;;  %vm1436_vm13 = vweird.f32 %v2350_v55 }
0x1637   : > { %v1920_v62 = vmul.f32 %v1913_v20, %v2888_v44  ;;  %vm1437_vm8 = vmor %vm1435_vm0, %vm1436_vm13 }
0x1639   : > { %1923 = vperm.xlu1 %2321, %v1920_v62  }
0x1641   : > { %2322 = vset.pattern.permute.xlu1 %v2419_v1  ;;  %v1431_v1 = vmul.f32 %v2350_v55, %v1429_v10 }
0x1643   : > { %v1432_v17 = vsub.f32 1.0, %v1431_v1 }
0x1645   : > { %v1433_v25 = vmul.f32 %v2350_v55, %v1432_v17 }
0x1647   : > { %v1434_v28 = vadd.f32 %v2350_v55, %v1433_v25 }
0x1649   : > { %v1438_v59 = vsel %vm1437_vm8, %v2350_v55, %v1434_v28 }
0x164b   : > { %v1496_v63 = vpop.f32.mrf.mxu2 }
0x164c   : > { %v1497_v0 = vadd.f32 3.0, %v1496_v63 }
0x164e   : > { %v1499_v3 = vmul.f32 0.16666667, %v1497_v0 }
0x1650   : > { %v1500_v4 = vmax.f32 %v1499_v3, 0.0 }
0x1652   : > { %v1501_v5 = vmin.f32 %v1500_v4, 1.0 }
0x1654   : > { %1504 = vperm.xlu1 %2322, %v1501_v5  }
0x16ab   : > { %v1924_v16 = vpop.permute.xlu1 %1923 }
0x16ac   : > { %v1926_v44 = vmul.f32 %v1924_v16, %v1919_v11 }
0x16ae   : > { %v1927_v13 = vadd.f32 %v1926_v44, %v2897_v56  ;;  %v1441_v56 = vand.u32 2147483648, %v1429_v10 }
0x16b0   : > { %v1928_v14 = vadd.f32 3.0, %v1927_v13  ;;  %v1933_v19 = vmax.f32 %v1927_v13, 0.0  ;;  %v1935_v15 = vmin.f32 %v1927_v13, 0.0  ;;  %vm1938_vm4 = vcmp.ge.f32.partialorder %v1927_v13, -3.0 }
0x16b1   : > { %vm1939_vm10 = vcmp.le.f32.partialorder %v1927_v13, 3.0  ;;  %v1442_v30 = vor.u32 1.1754944e-38, %v1441_v56 }
0x16b2   : > { %v1929_v53 = vmax.f32 %v1928_v14, 0.0  ;;  %v1934_v21 = vmin.f32 %v1933_v19, 6.0  ;;  %v1936_v18 = vmul.f32 0.01, %v1935_v15  ;;  %vm1940_vm11 = vmand %vm1938_vm4, %vm1939_vm10 }
0x16b3   : > { %v1443_v31 = vsel %vm1440_vm1, %v1442_v30, %v1438_v59 }
0x16b4   : > { %v1930_v27 = vmin.f32 %v1929_v53, 6.0  ;;  %v1937_v50 = vadd.f32 %v1936_v18, %v1934_v21  ;;  %v1507_v33 = vperm.slane %v1443_v31, 0 }
0x16b6   : > { %v1931_v22 = vmul.f32 %v1930_v27, %v1927_v13 }
0x16b8   : > { %v1932_v35 = vmul.f32 0.16666667, %v1931_v22 }
0x16ba   : > { %v3046_v26 = vsel %vm1940_vm11, %v1932_v35, %v1937_v50 }
0x16bb   : > { %1960 = vmatpush.msrb.mxu1 %v3046_v26  ;;  %v1984_v2 = vsel %vm499_vm15, %v3046_v26, 0.0 }
0x16bc   : > { %1985 = vadd.xlane.f32.xlu0 %v1984_v2  ;;  %2167 = vmatmul.msk.f32.vlgmr.msrb.gmra.mxu1 %vm299_vm3, %v1514_v40 }
0x16c6   : > { %v1505_v34 = vpop.permute.xlu1 %1504 }
0x16c7   : > { %v1508_v36 = vadd.f32 %v1507_v33, %v1505_v34 }
0x16c9   : > { %v1509_v37 = vmul.f32 %v1508_v36, %v3010_v12 }
0x16cb   : > { %v2050_v23 = vsel %vm499_vm15, %v1509_v37, 0.0 }
0x16cc   : > { %2053 = vst [vmem:[%s3038_s8 + $0x8] sm:$0xff] %v2050_v23 }
0x172f   : > { %v1986_v29 = vpop.xlane.xlu0 %1985 }
0x1730   : > { %v1987_v38 = vmul.f32 0.008264462, %v1986_v29 }
0x1732   : > { %2006 = vmatpush.msrb.mxu2 %v1987_v38 }
0x1733   : > { %2169 = vmatmul.msk.f32.vlgmr.msrb.gmra.mxu2 %vm299_vm3, %v1515_v39 }
0x1739   : > { %v1962_v46 = vpop.f32.mrf.mxu1 }
0x173a   : > { %v2168_v49 = vmul.f32 -1.442695, %v1962_v46 }
0x173c   : > { %2351 = vpow2.f32 %v2168_v49 }
0x1742   : > { %v2352_v48 = vpop.eup %2351 }
0x1743   : > { %v1968_v51 = vadd.f32 1.0, %v2352_v48 }
0x1745   : > { %2353 = vrcp.f32 %v1968_v51  ;;  %vm1974_vm3 = vweird.f32 %v1968_v51  ;;  %v1980_v58 = vand.u32 2147483648, %v1968_v51  ;;  %v1978_v61 = vand.u32 2147483647, %v1968_v51 }
0x1747   : > { %v1981_v20 = vor.u32 1.1754944e-38, %v1980_v58  ;;  %vm1979_vm6 = vcmp.eq.f32.partialorder %v1978_v61, 8.507059e+37 }
0x174b   : > { %v2354_v52 = vpop.eup %2353 }
0x174c   : > { %v1970_v54 = vmul.f32 %v2354_v52, %v1968_v51 }
0x174e   : > { %v1971_v57 = vsub.f32 1.0, %v1970_v54 }
0x1750   : > { %v1972_v32 = vmul.f32 %v2354_v52, %v1971_v57 }
0x1752   : > { %v1973_v60 = vadd.f32 %v2354_v52, %v1972_v32 }
0x17b6   : > { %v2008_v41 = vpop.f32.mrf.mxu2 }
0x17b7   : > { %v2011_v12 = vmax.f32 %v2008_v41, 0.0 }
0x17b9   : > { %2170 = vmatpush.msk.msrb.mxu3 %vm3150_vm12, %v2011_v12 }
0x17ba   : > { %2171 = vmatmul.msk.f32.vlgmr.msrb.gmra.mxu3 %vm645_vm2, %v1516_v8  ;;  %vm1975_vm2 = vweird.f32 %v2354_v52 }
0x17bb   : > { %vm1976_vm14 = vmor %vm1974_vm3, %vm1975_vm2 }
0x17bc   : > { %v1977_v62 = vsel %vm1976_vm14, %v2354_v52, %v1973_v60 }
0x17bd   : > { %v1982_v63 = vsel %vm1979_vm6, %v1981_v20, %v1977_v62 }
0x17be   : > { %v2046_v0 = vperm.slane %v1982_v63, 0 }
0x183d   : > { %v2035_v24 = vpop.f32.mrf.mxu3 }
0x183e   : > { %v2036_v45 = vadd.f32 3.0, %v2035_v24 }
0x1840   : > { %v2038_v42 = vmul.f32 0.16666667, %v2036_v45 }
0x1842   : > { %v2039_v43 = vmax.f32 %v2038_v42, 0.0 }
0x1844   : > { %v2040_v47 = vmin.f32 %v2039_v43, 1.0 }
0x1846   : > { %2043 = vperm.xlu2 %2320, %v2040_v47  }
0x18a0   : > { %v2044_v3 = vpop.permute.xlu2 %2043 }
0x18a1   : > { %v2047_v4 = vadd.f32 %v2046_v0, %v2044_v3 }
0x18a3   : > { %v2048_v5 = vmul.f32 %v2047_v4, %v3046_v26 }
0x18a5   : > { %v2051_v7 = vsel %vm499_vm15, %v2048_v5, 0.0 }
0x18a6   : > { %2054 = vst [vmem:[%s3038_s8 + $0x10] sm:$0xff] %v2051_v7 }
0x18a7   : > { %2382 = shalt.err (!%p2379_p3)
}
0x18a8   : > { %s2476_s4 = smov 128   ;;  %s2477_s8 = smov 8  }
0x18a9   : > { %2177 = dma.vmem_to_hbm [thread:$0]  (%p2531_p5), %s2069_s27, 384, %s2071_s14, %s2056_s13, %s2476_s4, %s2476_s4, %s2477_s8  }
0x18aa PF: > { %p2183_p4 = scmp.ge.s32.totalorder %s2417_s12, 2  ;;  %s2085_s22 = sand.u32 1, %s2405_s9  }
0x18ab   : > { %s2086_s24 = scalar_lea.sflag [#allocation3], %s2085_s22 }
0x18ac   : > { %p2180_p7 = pnand %p2183_p4, %p2535_p6 }
0x18ae   : > { %p2181_p8 = pneg %p2180_p7 }
0x18b0   : > { %2400 = dma.done.wait (%p2181_p8), %s2086_s24, 384  }
0x18b1   : > { %2402 = vsyncadd (%p2181_p8), %s2086_s24, 4294966912  ;;  %p12_p9 = scmp.ge.s32.totalorder %s2518_s15, 4   ;;  %s3151_s9 = smov %s2409_s10 }
0x18b2   : > { %s3152_s10 = smov %s2413_s11  ;;  %s3153_s11 = smov %s2529_s18 }
0x18b3   : > { %s3154_s12 = smov %s2518_s15  ;;  %14 = sbr.rel (!%p12_p9) target bundleno = 3 (0x3), region = 63 }
0x18b8   :  { %2092 = vsyncpa [#allocation3], 1 }
0x18b9   :  { %2094 = vsyncpa [#allocation3 + $0x1], 1 }

</bundles_post_ra>
